<compile_context>
chip_gen: v5e
topology: v5e:2x2
jax: 0.10.0
libtpu: 0.0.40
codegen_flags: <defaults>
</compile_context>

<pallas_src>
import functools

import jax
import jax.numpy as jnp
from jax.experimental import pallas as pl
from jax.experimental.pallas import tpu as pltpu

LN_EPS = 1e-5     # nn.LayerNorm default eps
LANE = 128        # vreg lane width: feature dims and batch tiles align to this


# ---------------------------------------------------------------------------
# Activations (match torch defaults); only ops with known Mosaic lowerings.
# ---------------------------------------------------------------------------
def _relu(x):
    return jnp.maximum(x, 0.0)


def _tanh(x):
    return jnp.tanh(x)


def _leaky_relu(x):
    return jnp.where(x >= 0, x, 0.01 * x)            # nn.LeakyReLU default slope


def _elu(x):
    return jnp.where(x >= 0, x, jnp.exp(x) - 1.0)     # nn.ELU default alpha=1.0


_ACTIVATIONS = {"relu": _relu, "tanh": _tanh, "leaky_relu": _leaky_relu, "elu": _elu}


def _round_up(x, m):
    return ((x + m - 1) // m) * m


def _tpu_info():
    """(on_tpu, bf16_vpu_ok, physical_vmem_bytes) with safe fallbacks."""
    on_tpu, bf16_vpu_ok, vmem = False, False, 64 * 1024 * 1024
    try:
        dev = jax.devices()[0]
        on_tpu = dev.platform == "tpu"
        kind = (getattr(dev, "device_kind", "") or "").lower()
        # v4 / v5e have no bf16 VPU -> keep inter-layer activations in f32 there.
        bf16_vpu_ok = on_tpu and ("v4" not in kind) and ("v5" not in kind)
    except Exception:
        pass
    try:
        vmem = int(pltpu.get_tpu_info().vmem_capacity_bytes)
    except Exception:
        pass
    return on_tpu, bf16_vpu_ok, vmem


# ---------------------------------------------------------------------------
# Fused MLP kernel (layer loop unrolls at trace time; activations stay in VMEM).
# ---------------------------------------------------------------------------
def _make_fused_mlp_kernel(hidden_true, hidden_pad, activation, acts_dtype):
    act = _ACTIVATIONS.get(activation, _relu)
    num_hidden = len(hidden_true)

    def kernel(*refs):
        # refs = (x, [w, b, gamma, beta] * num_hidden, w_out, b_out, out)
        x_ref = refs[0]
        w_out_ref, b_out_ref, o_ref = refs[-3], refs[-2], refs[-1]

        h = x_ref[...]
        idx = 1
        for layer in range(num_hidden):
            w_ref, b_ref, g_ref, beta_ref = refs[idx:idx + 4]
            idx += 4
            n_true, n_pad = hidden_true[layer], hidden_pad[layer]

            # Linear on the MXU (bf16 inputs on bf16-class parts), f32 accumulation.
            z = jnp.dot(h.astype(w_ref.dtype), w_ref[...],
                        preferred_element_type=jnp.float32)
            z = z + b_ref[...].astype(jnp.float32)

            # LayerNorm over the TRUE feature width (padded columns hold exact
            # zeros: zero weight columns + zero bias); biased variance like torch.
            inv_n = 1.0 / n_true
            mean = jnp.sum(z, axis=-1, keepdims=True) * inv_n
            centered = z - mean
            if n_pad != n_true:
                col = jax.lax.broadcasted_iota(jnp.int32, (1, n_pad), 1)
                masked = jnp.where(col < n_true, centered, 0.0)
            else:
                masked = centered
            var = jnp.sum(masked * masked, axis=-1, keepdims=True) * inv_n
            z = centered * jax.lax.rsqrt(var + LN_EPS)
            # gamma/beta are zero-padded -> padded columns come out exactly 0.
            z = z * g_ref[...].astype(jnp.float32) + beta_ref[...].astype(jnp.float32)

            # Activation (act(0)==0 keeps padded columns at 0); Dropout = identity (eval).
            h = act(z).astype(acts_dtype)

        # Final Linear(H -> 1) as a transposed-RHS matmul:
        #   (1, H) x (TB, H)^T -> (1, TB)   i.e. one lane-dense packed output row.
        y = jnp.einsum("oh,bh->ob",
                       w_out_ref[...].astype(jnp.float32),
                       h.astype(jnp.float32),
                       preferred_element_type=jnp.float32)
        o_ref[...] = y + b_out_ref[...].astype(jnp.float32)

    return kernel


# ---------------------------------------------------------------------------
# Wrapper: one pallas_call for the whole network.
# ---------------------------------------------------------------------------
def deep_learning_regressor_forward(params, x, *, batch_tile=None, activation="relu",
                                    use_bf16_matmul=None, bf16_activations=None,
                                    single_buffer_params=True):
    """Forward pass: (batch, input_dim) f32 -> (batch, 1) f32 (eval/inference mode)."""
    hidden = params["hidden"]
    w_out, b_out = params["final"]
    batch, input_dim = x.shape
    num_hidden = len(hidden)

    on_tpu, bf16_vpu_ok, phys_vmem = _tpu_info()
    if use_bf16_matmul is None:
        use_bf16_matmul = on_tpu                         # bf16 MXU path on v5e/v6e/v7x
    if bf16_activations is None:
        bf16_activations = bool(use_bf16_matmul) and bf16_vpu_ok
    w_dtype = jnp.bfloat16 if use_bf16_matmul else jnp.float32
    acts_dtype = jnp.bfloat16 if bf16_activations else jnp.float32

    # ---- feature padding to lane width (zero-pad; kernel masks the true width) ----
    hidden_true = [int(w.shape[1]) for (w, _, _, _) in hidden]
    hidden_pad = [_round_up(h, LANE) for h in hidden_true]
    in_pad = _round_up(input_dim, LANE)
    dims_pad = [in_pad] + hidden_pad

    # ---- batch tile: multiple of 128 so the packed output store stays unmasked ----
    if batch_tile is None:
        tile_cap = 2048 if phys_vmem >= (96 << 20) else 512
        want = _round_up(-(-batch // 2), LANE) if batch > LANE else LANE   # >= 2 tiles
        batch_tile = max(LANE, min(tile_cap, want))
    else:
        batch_tile = max(LANE, _round_up(int(batch_tile), LANE))

    # ---- VMEM budget derived from the actual part (64 MiB v7x / 128 MiB v5e,v6e) ----
    w_itemsize = 2 if use_bf16_matmul else 4
    w_bytes = sum(dims_pad[i] * dims_pad[i + 1] for i in range(num_hidden)) * w_itemsize
    vec_bytes = 4 * (3 * sum(hidden_pad) + dims_pad[-1] + 1)   # b/gamma/beta + w_out + b_out
    param_bytes = (w_bytes + vec_bytes) * (1 if single_buffer_params else 2)
    widest = max(dims_pad)

    def vmem_need(tb):
        act_bytes = 4 * tb * 4 * widest                   # live activation slabs / temps
        io_bytes = 2 * 4 * tb * in_pad + 2 * 4 * tb       # double-buffered x tile + out row
        return param_bytes + act_bytes + io_bytes

    while batch_tile > LANE and vmem_need(batch_tile) > 0.6 * phys_vmem:
        smaller = max(LANE, (batch_tile // 2) // LANE * LANE)
        if smaller == batch_tile:
            break
        batch_tile = smaller

    padded_batch = _round_up(batch, batch_tile)
    num_tiles = padded_batch // batch_tile
    vmem_limit = min(int(0.85 * phys_vmem), max(32 << 20, 2 * vmem_need(batch_tile)))

    # ---- pad & cast operands (for big models, pre-pad params once outside the step) ----
    def pad2(a, rows, cols, dtype):
        a = a.astype(dtype)
        r, c = a.shape
        if r == rows and c == cols:
            return a
        return jnp.pad(a, ((0, rows - r), (0, cols - c)))

    x_p = pad2(x, padded_batch, in_pad, x.dtype)

    def resident(shape):
        # Constant block index -> DMA'd once; Buffered(1) disables double buffering
        # so resident params occupy 1x (not 2x) their size in VMEM.
        if single_buffer_params:
            return pl.BlockSpec(shape, lambda i: (0,) * len(shape),
                                pipeline_mode=pl.Buffered(1))
        return pl.BlockSpec(shape, lambda i: (0,) * len(shape))

    in_specs = [pl.BlockSpec((batch_tile, in_pad), lambda i: (i, 0))]
    inputs = [x_p]
    prev_pad = in_pad
    for (w, b, g, beta), h_pad in zip(hidden, hidden_pad):
        w_p = pad2(w, prev_pad, h_pad, w_dtype)
        b_p = pad2(b, 1, h_pad, jnp.float32)
        g_p = pad2(g, 1, h_pad, jnp.float32)
        beta_p = pad2(beta, 1, h_pad, jnp.float32)
        inputs += [w_p, b_p, g_p, beta_p]
        in_specs += [resident(w_p.shape), resident(b_p.shape),
                     resident(g_p.shape), resident(beta_p.shape)]
        prev_pad = h_pad
    w_out_p = pad2(w_out, 1, dims_pad[-1], jnp.float32)    # final projection stays f32
    b_out_p = b_out.astype(jnp.float32)
    inputs += [w_out_p, b_out_p]
    in_specs += [resident(w_out_p.shape), resident(b_out_p.shape)]

    # Packed, lane-dense output: one (1, batch_tile) row per grid step.
    out_spec = pl.BlockSpec((1, batch_tile), lambda i: (0, i))
    out_shape = jax.ShapeDtypeStruct((1, padded_batch), jnp.float32)

    # ---- advisory cost estimate ----
    matmul_flops = 2 * padded_batch * sum(dims_pad[i] * dims_pad[i + 1]
                                          for i in range(num_hidden))
    flops = matmul_flops + 2 * padded_batch * dims_pad[-1] \
        + 10 * padded_batch * sum(hidden_pad)
    transcendentals = padded_batch * max(num_hidden, 1)             # rsqrt per row/layer
    if activation in ("tanh", "elu"):
        transcendentals += padded_batch * sum(hidden_pad)           # per-element exp/tanh
    bytes_accessed = int(x_p.size * x_p.dtype.itemsize + padded_batch * 4
                         + w_bytes + vec_bytes)
    cost = pl.CostEstimate(flops=int(flops), transcendentals=int(transcendentals),
                           bytes_accessed=bytes_accessed)

    kernel = _make_fused_mlp_kernel(hidden_true, hidden_pad, activation, acts_dtype)
    out = pl.pallas_call(
        kernel,
        grid=(num_tiles,),
        in_specs=in_specs,
        out_specs=out_spec,
        out_shape=out_shape,
        compiler_params=pltpu.CompilerParams(
            dimension_semantics=("parallel",),
            vmem_limit_bytes=int(vmem_limit)),
        cost_estimate=cost,
    )(*inputs)

    return out[0, :batch].reshape(batch, 1)


# ---------------------------------------------------------------------------
# Parameter init (Xavier normal weights, zero biases, LN gamma=1 / beta=0).
# Weights stored as (in_features, out_features): kernel computes x @ W + b,
# equivalent to PyTorch's x @ W.T + b.  Final weight stored as a (1, H) row.
# ---------------------------------------------------------------------------
def init_params(key, input_dim, hidden_layers):
    params = {"hidden": [], "final": None}
    prev = int(input_dim)
    for h in hidden_layers:
        h = int(h)
        key, wk = jax.random.split(key)
        std = (2.0 / (prev + h)) ** 0.5
        w = std * jax.random.normal(wk, (prev, h), dtype=jnp.float32)
        b = jnp.zeros((1, h), dtype=jnp.float32)
        gamma = jnp.ones((1, h), dtype=jnp.float32)
        beta = jnp.zeros((1, h), dtype=jnp.float32)
        params["hidden"].append((w, b, gamma, beta))
        prev = h
    key, wk = jax.random.split(key)
    std = (2.0 / (prev + 1)) ** 0.5
    w_out = std * jax.random.normal(wk, (1, prev), dtype=jnp.float32)
    b_out = jnp.zeros((1, 1), dtype=jnp.float32)
    params["final"] = (w_out, b_out)
    return params


# ---------------------------------------------------------------------------
# Pure-JAX reference (f32, full precision matmuls) for the correctness check.
# ---------------------------------------------------------------------------
def _reference_forward(params, x, activation="relu"):
    act = _ACTIVATIONS.get(activation, _relu)
    h = x
    for (w, b, gamma, beta) in params["hidden"]:
        h = jnp.dot(h, w, precision=jax.lax.Precision.HIGHEST) + b
        mean = jnp.mean(h, axis=-1, keepdims=True)
        var = jnp.mean((h - mean) ** 2, axis=-1, keepdims=True)
        h = (h - mean) / jnp.sqrt(var + LN_EPS)
        h = h * gamma + beta
        h = act(h)
    w_out, b_out = params["final"]
    return jnp.sum(h * w_out, axis=-1, keepdims=True) + b_out


if __name__ == "__main__":
    key = jax.random.PRNGKey(0)
    input_dim = 16
    hidden_layers = [32, 32]
    batch = 256    # -> two 128-row batch tiles (keeps both TCs busy on megacore parts)

    key, pkey, xkey = jax.random.split(key, 3)
    params = init_params(pkey, input_dim, hidden_layers)
    x = jax.random.normal(xkey, (batch, input_dim), dtype=jnp.float32)

    ref = _reference_forward(params, x, activation="relu")

    def run(**kwargs):
        fwd = jax.jit(functools.partial(deep_learning_regressor_forward,
                                        activation="relu", **kwargs))
        return jax.block_until_ready(fwd(params, x))

    # Strict check: pure-f32 kernel vs. f32 reference.
    try:
        out_f32 = run(use_bf16_matmul=False)
        single_buffer_ok = True
    except Exception:
        # Fallback for jax/libtpu builds that reject Buffered(1) single-buffering.
        out_f32 = run(use_bf16_matmul=False, single_buffer_params=False)
        single_buffer_ok = False
    assert out_f32.shape == (batch, 1), out_f32.shape
    assert jnp.allclose(out_f32, ref, atol=2e-4, rtol=2e-4)

    # Default config (bf16 MXU path on TPU): looser tolerance vs. the f32 reference.
    out_fast = run(single_buffer_params=single_buffer_ok)
    assert out_fast.shape == (batch, 1), out_fast.shape
    assert bool(jnp.all(jnp.isfinite(out_fast)))
    assert jnp.allclose(out_fast, ref, atol=2e-1, rtol=2e-1)

    print("KERNEL_OK")
</pallas_src>

<mosaic_0001>
module attributes {stable_mosaic.version = 11 : i64} {
  func.func @kernel(%arg0: i32, %arg1: memref<128x128xf32, #tpu.memory_space<vmem>>, %arg2: memref<128x128xf32, #tpu.memory_space<vmem>>, %arg3: memref<1x128xf32, #tpu.memory_space<vmem>>, %arg4: memref<1x128xf32, #tpu.memory_space<vmem>>, %arg5: memref<1x128xf32, #tpu.memory_space<vmem>>, %arg6: memref<128x128xf32, #tpu.memory_space<vmem>>, %arg7: memref<1x128xf32, #tpu.memory_space<vmem>>, %arg8: memref<1x128xf32, #tpu.memory_space<vmem>>, %arg9: memref<1x128xf32, #tpu.memory_space<vmem>>, %arg10: memref<1x128xf32, #tpu.memory_space<vmem>>, %arg11: memref<1x1xf32, #tpu.memory_space<vmem>>, %arg12: memref<1x128xf32, #tpu.memory_space<vmem>>) attributes {dimension_semantics = [#tpu.dimension_semantics<parallel>], iteration_bounds = array<i64: 2>, scalar_prefetch = 0 : i64, scratch_operands = 0 : i64, tpu.core_type = #tpu.core_type<tc>, window_params = [{transform_indices = @transform_0, window_bounds = array<i64: 128, 128>}, {pipeline_mode = #tpu.pipeline_mode<synchronous>, transform_indices = @transform_1, window_bounds = array<i64: 128, 128>}, {pipeline_mode = #tpu.pipeline_mode<synchronous>, transform_indices = @transform_2, window_bounds = array<i64: 1, 128>}, {pipeline_mode = #tpu.pipeline_mode<synchronous>, transform_indices = @transform_3, window_bounds = array<i64: 1, 128>}, {pipeline_mode = #tpu.pipeline_mode<synchronous>, transform_indices = @transform_4, window_bounds = array<i64: 1, 128>}, {pipeline_mode = #tpu.pipeline_mode<synchronous>, transform_indices = @transform_5, window_bounds = array<i64: 128, 128>}, {pipeline_mode = #tpu.pipeline_mode<synchronous>, transform_indices = @transform_6, window_bounds = array<i64: 1, 128>}, {pipeline_mode = #tpu.pipeline_mode<synchronous>, transform_indices = @transform_7, window_bounds = array<i64: 1, 128>}, {pipeline_mode = #tpu.pipeline_mode<synchronous>, transform_indices = @transform_8, window_bounds = array<i64: 1, 128>}, {pipeline_mode = #tpu.pipeline_mode<synchronous>, transform_indices = @transform_9, window_bounds = array<i64: 1, 128>}, {pipeline_mode = #tpu.pipeline_mode<synchronous>, transform_indices = @transform_10, window_bounds = array<i64: 1, 1>}, {transform_indices = @transform_11, window_bounds = array<i64: 1, 128>}]} {
    %c0 = arith.constant 0 : index
    %c0_0 = arith.constant 0 : index
    %0 = vector.load %arg1[%c0, %c0_0] : memref<128x128xf32, #tpu.memory_space<vmem>>, vector<128x128xf32>
    %c0_1 = arith.constant 0 : index
    %c0_2 = arith.constant 0 : index
    %1 = vector.load %arg2[%c0_1, %c0_2] : memref<128x128xf32, #tpu.memory_space<vmem>>, vector<128x128xf32>
    %cst = arith.constant dense<0.000000e+00> : vector<128x128xf32>
    %2 = tpu.matmul %0, %1, %cst {dimension_numbers = #tpu.dot_dimension_numbers<[1], [0], [0], [1], [0, 0, 1, 1], [], []>} : vector<128x128xf32>, vector<128x128xf32>, vector<128x128xf32> -> vector<128x128xf32>
    %c0_3 = arith.constant 0 : index
    %c0_4 = arith.constant 0 : index
    %3 = vector.load %arg3[%c0_3, %c0_4] : memref<1x128xf32, #tpu.memory_space<vmem>>, vector<1x128xf32>
    %4 = vector.broadcast %3 : vector<1x128xf32> to vector<128x128xf32>
    %5 = arith.addf %2, %4 : vector<128x128xf32>
    %cst_5 = arith.constant dense<0.000000e+00> : vector<128xf32>
    %6 = vector.multi_reduction <add>, %5, %cst_5 [1] : vector<128x128xf32> to vector<128xf32>
    %7 = vector.shape_cast %6 : vector<128xf32> to vector<128x1xf32>
    %cst_6 = arith.constant 3.125000e-02 : f32
    %8 = vector.broadcast %cst_6 : f32 to vector<128x1xf32>
    %9 = arith.mulf %7, %8 : vector<128x1xf32>
    %10 = vector.broadcast %9 : vector<128x1xf32> to vector<128x128xf32>
    %11 = arith.subf %5, %10 : vector<128x128xf32>
    %12 = tpu.iota {dimensions = array<i32: 1>} : vector<1x128xi32>
    %c32_i32 = arith.constant 32 : i32
    %13 = vector.broadcast %c32_i32 : i32 to vector<1x128xi32>
    %14 = arith.cmpi slt, %12, %13 : vector<1x128xi32>
    %cst_7 = arith.constant 0.000000e+00 : f32
    %15 = vector.shape_cast %14 : vector<1x128xi1> to vector<1x128xi1>
    %16 = vector.broadcast %15 : vector<1x128xi1> to vector<128x128xi1>
    %17 = vector.broadcast %cst_7 : f32 to vector<128x128xf32>
    %18 = arith.select %16, %11, %17 : vector<128x128xi1>, vector<128x128xf32>
    %19 = arith.mulf %18, %18 : vector<128x128xf32>
    %cst_8 = arith.constant dense<0.000000e+00> : vector<128xf32>
    %20 = vector.multi_reduction <add>, %19, %cst_8 [1] : vector<128x128xf32> to vector<128xf32>
    %21 = vector.shape_cast %20 : vector<128xf32> to vector<128x1xf32>
    %cst_9 = arith.constant 3.125000e-02 : f32
    %22 = vector.broadcast %cst_9 : f32 to vector<128x1xf32>
    %23 = arith.mulf %21, %22 : vector<128x1xf32>
    %cst_10 = arith.constant 9.99999974E-6 : f32
    %24 = vector.broadcast %cst_10 : f32 to vector<128x1xf32>
    %25 = arith.addf %23, %24 : vector<128x1xf32>
    %26 = math.rsqrt %25 : vector<128x1xf32>
    %27 = vector.broadcast %26 : vector<128x1xf32> to vector<128x128xf32>
    %28 = arith.mulf %11, %27 : vector<128x128xf32>
    %c0_11 = arith.constant 0 : index
    %c0_12 = arith.constant 0 : index
    %29 = vector.load %arg4[%c0_11, %c0_12] : memref<1x128xf32, #tpu.memory_space<vmem>>, vector<1x128xf32>
    %30 = vector.broadcast %29 : vector<1x128xf32> to vector<128x128xf32>
    %31 = arith.mulf %28, %30 : vector<128x128xf32>
    %c0_13 = arith.constant 0 : index
    %c0_14 = arith.constant 0 : index
    %32 = vector.load %arg5[%c0_13, %c0_14] : memref<1x128xf32, #tpu.memory_space<vmem>>, vector<1x128xf32>
    %33 = vector.broadcast %32 : vector<1x128xf32> to vector<128x128xf32>
    %34 = arith.addf %31, %33 : vector<128x128xf32>
    %cst_15 = arith.constant 0.000000e+00 : f32
    %35 = vector.broadcast %cst_15 : f32 to vector<128x128xf32>
    %36 = arith.maximumf %34, %35 : vector<128x128xf32>
    %c0_16 = arith.constant 0 : index
    %c0_17 = arith.constant 0 : index
    %37 = vector.load %arg6[%c0_16, %c0_17] : memref<128x128xf32, #tpu.memory_space<vmem>>, vector<128x128xf32>
    %cst_18 = arith.constant dense<0.000000e+00> : vector<128x128xf32>
    %38 = tpu.matmul %36, %37, %cst_18 {dimension_numbers = #tpu.dot_dimension_numbers<[1], [0], [0], [1], [0, 0, 1, 1], [], []>} : vector<128x128xf32>, vector<128x128xf32>, vector<128x128xf32> -> vector<128x128xf32>
    %c0_19 = arith.constant 0 : index
    %c0_20 = arith.constant 0 : index
    %39 = vector.load %arg7[%c0_19, %c0_20] : memref<1x128xf32, #tpu.memory_space<vmem>>, vector<1x128xf32>
    %40 = vector.broadcast %39 : vector<1x128xf32> to vector<128x128xf32>
    %41 = arith.addf %38, %40 : vector<128x128xf32>
    %cst_21 = arith.constant dense<0.000000e+00> : vector<128xf32>
    %42 = vector.multi_reduction <add>, %41, %cst_21 [1] : vector<128x128xf32> to vector<128xf32>
    %43 = vector.shape_cast %42 : vector<128xf32> to vector<128x1xf32>
    %cst_22 = arith.constant 3.125000e-02 : f32
    %44 = vector.broadcast %cst_22 : f32 to vector<128x1xf32>
    %45 = arith.mulf %43, %44 : vector<128x1xf32>
    %46 = vector.broadcast %45 : vector<128x1xf32> to vector<128x128xf32>
    %47 = arith.subf %41, %46 : vector<128x128xf32>
    %48 = tpu.iota {dimensions = array<i32: 1>} : vector<1x128xi32>
    %c32_i32_23 = arith.constant 32 : i32
    %49 = vector.broadcast %c32_i32_23 : i32 to vector<1x128xi32>
    %50 = arith.cmpi slt, %48, %49 : vector<1x128xi32>
    %cst_24 = arith.constant 0.000000e+00 : f32
    %51 = vector.shape_cast %50 : vector<1x128xi1> to vector<1x128xi1>
    %52 = vector.broadcast %51 : vector<1x128xi1> to vector<128x128xi1>
    %53 = vector.broadcast %cst_24 : f32 to vector<128x128xf32>
    %54 = arith.select %52, %47, %53 : vector<128x128xi1>, vector<128x128xf32>
    %55 = arith.mulf %54, %54 : vector<128x128xf32>
    %cst_25 = arith.constant dense<0.000000e+00> : vector<128xf32>
    %56 = vector.multi_reduction <add>, %55, %cst_25 [1] : vector<128x128xf32> to vector<128xf32>
    %57 = vector.shape_cast %56 : vector<128xf32> to vector<128x1xf32>
    %cst_26 = arith.constant 3.125000e-02 : f32
    %58 = vector.broadcast %cst_26 : f32 to vector<128x1xf32>
    %59 = arith.mulf %57, %58 : vector<128x1xf32>
    %cst_27 = arith.constant 9.99999974E-6 : f32
    %60 = vector.broadcast %cst_27 : f32 to vector<128x1xf32>
    %61 = arith.addf %59, %60 : vector<128x1xf32>
    %62 = math.rsqrt %61 : vector<128x1xf32>
    %63 = vector.broadcast %62 : vector<128x1xf32> to vector<128x128xf32>
    %64 = arith.mulf %47, %63 : vector<128x128xf32>
    %c0_28 = arith.constant 0 : index
    %c0_29 = arith.constant 0 : index
    %65 = vector.load %arg8[%c0_28, %c0_29] : memref<1x128xf32, #tpu.memory_space<vmem>>, vector<1x128xf32>
    %66 = vector.broadcast %65 : vector<1x128xf32> to vector<128x128xf32>
    %67 = arith.mulf %64, %66 : vector<128x128xf32>
    %c0_30 = arith.constant 0 : index
    %c0_31 = arith.constant 0 : index
    %68 = vector.load %arg9[%c0_30, %c0_31] : memref<1x128xf32, #tpu.memory_space<vmem>>, vector<1x128xf32>
    %69 = vector.broadcast %68 : vector<1x128xf32> to vector<128x128xf32>
    %70 = arith.addf %67, %69 : vector<128x128xf32>
    %cst_32 = arith.constant 0.000000e+00 : f32
    %71 = vector.broadcast %cst_32 : f32 to vector<128x128xf32>
    %72 = arith.maximumf %70, %71 : vector<128x128xf32>
    %c0_33 = arith.constant 0 : index
    %c0_34 = arith.constant 0 : index
    %73 = vector.load %arg10[%c0_33, %c0_34] : memref<1x128xf32, #tpu.memory_space<vmem>>, vector<1x128xf32>
    "tpu.trace_start"() <{level = 10 : i32, message = "oh,bh->ob"}> : () -> ()
    %cst_35 = arith.constant dense<0.000000e+00> : vector<1x128xf32>
    %74 = tpu.matmul %73, %72, %cst_35 {dimension_numbers = #tpu.dot_dimension_numbers<[1], [1], [0], [0], [0, 0, 1, 0], [], []>} : vector<1x128xf32>, vector<128x128xf32>, vector<1x128xf32> -> vector<1x128xf32>
    "tpu.trace_stop"() : () -> ()
    %c0_36 = arith.constant 0 : index
    %c0_37 = arith.constant 0 : index
    %75 = vector.load %arg11[%c0_36, %c0_37] : memref<1x1xf32, #tpu.memory_space<vmem>>, vector<1x1xf32>
    %76 = vector.broadcast %75 : vector<1x1xf32> to vector<1x128xf32>
    %77 = arith.addf %74, %76 : vector<1x128xf32>
    %c0_38 = arith.constant 0 : index
    %c0_39 = arith.constant 0 : index
    %78 = vector.load %arg12[%c0_38, %c0_39] : memref<1x128xf32, #tpu.memory_space<vmem>>, vector<1x128xf32>
    tpu.vector_store %arg12[%c0_38, %c0_39], %77 {strides = array<i32>} : memref<1x128xf32, #tpu.memory_space<vmem>>, vector<1x128xf32>,
    return
  }
  func.func @transform_0(%arg0: i32) -> (i32, i32) {
    %c0_i32 = arith.constant 0 : i32
    %c0_i32_0 = arith.constant 0 : i32
    return %arg0, %c0_i32 : i32, i32
  }
  func.func @transform_1(%arg0: i32) -> (i32, i32) {
    %c0_i32 = arith.constant 0 : i32
    %c0_i32_0 = arith.constant 0 : i32
    %c0_i32_1 = arith.constant 0 : i32
    return %c0_i32, %c0_i32_0 : i32, i32
  }
  func.func @transform_2(%arg0: i32) -> (i32, i32) {
    %c0_i32 = arith.constant 0 : i32
    %c0_i32_0 = arith.constant 0 : i32
    %c0_i32_1 = arith.constant 0 : i32
    return %c0_i32, %c0_i32_0 : i32, i32
  }
  func.func @transform_3(%arg0: i32) -> (i32, i32) {
    %c0_i32 = arith.constant 0 : i32
    %c0_i32_0 = arith.constant 0 : i32
    %c0_i32_1 = arith.constant 0 : i32
    return %c0_i32, %c0_i32_0 : i32, i32
  }
  func.func @transform_4(%arg0: i32) -> (i32, i32) {
    %c0_i32 = arith.constant 0 : i32
    %c0_i32_0 = arith.constant 0 : i32
    %c0_i32_1 = arith.constant 0 : i32
    return %c0_i32, %c0_i32_0 : i32, i32
  }
  func.func @transform_5(%arg0: i32) -> (i32, i32) {
    %c0_i32 = arith.constant 0 : i32
    %c0_i32_0 = arith.constant 0 : i32
    %c0_i32_1 = arith.constant 0 : i32
    return %c0_i32, %c0_i32_0 : i32, i32
  }
  func.func @transform_6(%arg0: i32) -> (i32, i32) {
    %c0_i32 = arith.constant 0 : i32
    %c0_i32_0 = arith.constant 0 : i32
    %c0_i32_1 = arith.constant 0 : i32
    return %c0_i32, %c0_i32_0 : i32, i32
  }
  func.func @transform_7(%arg0: i32) -> (i32, i32) {
    %c0_i32 = arith.constant 0 : i32
    %c0_i32_0 = arith.constant 0 : i32
    %c0_i32_1 = arith.constant 0 : i32
    return %c0_i32, %c0_i32_0 : i32, i32
  }
  func.func @transform_8(%arg0: i32) -> (i32, i32) {
    %c0_i32 = arith.constant 0 : i32
    %c0_i32_0 = arith.constant 0 : i32
    %c0_i32_1 = arith.constant 0 : i32
    return %c0_i32, %c0_i32_0 : i32, i32
  }
  func.func @transform_9(%arg0: i32) -> (i32, i32) {
    %c0_i32 = arith.constant 0 : i32
    %c0_i32_0 = arith.constant 0 : i32
    %c0_i32_1 = arith.constant 0 : i32
    return %c0_i32, %c0_i32_0 : i32, i32
  }
  func.func @transform_10(%arg0: i32) -> (i32, i32) {
    %c0_i32 = arith.constant 0 : i32
    %c0_i32_0 = arith.constant 0 : i32
    %c0_i32_1 = arith.constant 0 : i32
    return %c0_i32, %c0_i32_0 : i32, i32
  }
  func.func @transform_11(%arg0: i32) -> (i32, i32) {
    %c0_i32 = arith.constant 0 : i32
    %c0_i32_0 = arith.constant 0 : i32
    return %c0_i32, %arg0 : i32, i32
  }
}

module attributes {stable_mosaic.version = 11 : i64} {
  func.func @kernel(%arg0: i32, %arg1: memref<128x128xf32, #tpu.memory_space<vmem>>, %arg2: memref<128x128xf32, #tpu.memory_space<vmem>>, %arg3: memref<1x128xf32, #tpu.memory_space<vmem>>, %arg4: memref<1x128xf32, #tpu.memory_space<vmem>>, %arg5: memref<1x128xf32, #tpu.memory_space<vmem>>, %arg6: memref<128x128xf32, #tpu.memory_space<vmem>>, %arg7: memref<1x128xf32, #tpu.memory_space<vmem>>, %arg8: memref<1x128xf32, #tpu.memory_space<vmem>>, %arg9: memref<1x128xf32, #tpu.memory_space<vmem>>, %arg10: memref<1x128xf32, #tpu.memory_space<vmem>>, %arg11: memref<1x1xf32, #tpu.memory_space<vmem>>, %arg12: memref<1x128xf32, #tpu.memory_space<vmem>>) attributes {dimension_semantics = [#tpu.dimension_semantics<parallel>], iteration_bounds = array<i64: 2>, scalar_prefetch = 0 : i64, scratch_operands = 0 : i64, tpu.core_type = #tpu.core_type<tc>, window_params = [{transform_indices = @transform_0, window_bounds = array<i64: 128, 128>}, {pipeline_mode = #tpu.pipeline_mode<synchronous>, transform_indices = @transform_1, window_bounds = array<i64: 128, 128>}, {pipeline_mode = #tpu.pipeline_mode<synchronous>, transform_indices = @transform_2, window_bounds = array<i64: 1, 128>}, {pipeline_mode = #tpu.pipeline_mode<synchronous>, transform_indices = @transform_3, window_bounds = array<i64: 1, 128>}, {pipeline_mode = #tpu.pipeline_mode<synchronous>, transform_indices = @transform_4, window_bounds = array<i64: 1, 128>}, {pipeline_mode = #tpu.pipeline_mode<synchronous>, transform_indices = @transform_5, window_bounds = array<i64: 128, 128>}, {pipeline_mode = #tpu.pipeline_mode<synchronous>, transform_indices = @transform_6, window_bounds = array<i64: 1, 128>}, {pipeline_mode = #tpu.pipeline_mode<synchronous>, transform_indices = @transform_7, window_bounds = array<i64: 1, 128>}, {pipeline_mode = #tpu.pipeline_mode<synchronous>, transform_indices = @transform_8, window_bounds = array<i64: 1, 128>}, {pipeline_mode = #tpu.pipeline_mode<synchronous>, transform_indices = @transform_9, window_bounds = array<i64: 1, 128>}, {pipeline_mode = #tpu.pipeline_mode<synchronous>, transform_indices = @transform_10, window_bounds = array<i64: 1, 1>}, {transform_indices = @transform_11, window_bounds = array<i64: 1, 128>}]} {
    %c0 = arith.constant 0 : index
    %c0_0 = arith.constant 0 : index
    %0 = vector.load %arg1[%c0, %c0_0] : memref<128x128xf32, #tpu.memory_space<vmem>>, vector<128x128xf32>
    %c0_1 = arith.constant 0 : index
    %c0_2 = arith.constant 0 : index
    %1 = vector.load %arg2[%c0_1, %c0_2] : memref<128x128xf32, #tpu.memory_space<vmem>>, vector<128x128xf32>
    %cst = arith.constant dense<0.000000e+00> : vector<128x128xf32>
    %2 = tpu.matmul %0, %1, %cst {dimension_numbers = #tpu.dot_dimension_numbers<[1], [0], [0], [1], [0, 0, 1, 1], [], []>} : vector<128x128xf32>, vector<128x128xf32>, vector<128x128xf32> -> vector<128x128xf32>
    %c0_3 = arith.constant 0 : index
    %c0_4 = arith.constant 0 : index
    %3 = vector.load %arg3[%c0_3, %c0_4] : memref<1x128xf32, #tpu.memory_space<vmem>>, vector<1x128xf32>
    %4 = vector.broadcast %3 : vector<1x128xf32> to vector<128x128xf32>
    %5 = arith.addf %2, %4 : vector<128x128xf32>
    %cst_5 = arith.constant dense<0.000000e+00> : vector<128xf32>
    %6 = vector.multi_reduction <add>, %5, %cst_5 [1] : vector<128x128xf32> to vector<128xf32>
    %7 = vector.shape_cast %6 : vector<128xf32> to vector<128x1xf32>
    %cst_6 = arith.constant 3.125000e-02 : f32
    %8 = vector.broadcast %cst_6 : f32 to vector<128x1xf32>
    %9 = arith.mulf %7, %8 : vector<128x1xf32>
    %10 = vector.broadcast %9 : vector<128x1xf32> to vector<128x128xf32>
    %11 = arith.subf %5, %10 : vector<128x128xf32>
    %12 = tpu.iota {dimensions = array<i32: 1>} : vector<1x128xi32>
    %c32_i32 = arith.constant 32 : i32
    %13 = vector.broadcast %c32_i32 : i32 to vector<1x128xi32>
    %14 = arith.cmpi slt, %12, %13 : vector<1x128xi32>
    %cst_7 = arith.constant 0.000000e+00 : f32
    %15 = vector.shape_cast %14 : vector<1x128xi1> to vector<1x128xi1>
    %16 = vector.broadcast %15 : vector<1x128xi1> to vector<128x128xi1>
    %17 = vector.broadcast %cst_7 : f32 to vector<128x128xf32>
    %18 = arith.select %16, %11, %17 : vector<128x128xi1>, vector<128x128xf32>
    %19 = arith.mulf %18, %18 : vector<128x128xf32>
    %cst_8 = arith.constant dense<0.000000e+00> : vector<128xf32>
    %20 = vector.multi_reduction <add>, %19, %cst_8 [1] : vector<128x128xf32> to vector<128xf32>
    %21 = vector.shape_cast %20 : vector<128xf32> to vector<128x1xf32>
    %cst_9 = arith.constant 3.125000e-02 : f32
    %22 = vector.broadcast %cst_9 : f32 to vector<128x1xf32>
    %23 = arith.mulf %21, %22 : vector<128x1xf32>
    %cst_10 = arith.constant 9.99999974E-6 : f32
    %24 = vector.broadcast %cst_10 : f32 to vector<128x1xf32>
    %25 = arith.addf %23, %24 : vector<128x1xf32>
    %26 = math.rsqrt %25 : vector<128x1xf32>
    %27 = vector.broadcast %26 : vector<128x1xf32> to vector<128x128xf32>
    %28 = arith.mulf %11, %27 : vector<128x128xf32>
    %c0_11 = arith.constant 0 : index
    %c0_12 = arith.constant 0 : index
    %29 = vector.load %arg4[%c0_11, %c0_12] : memref<1x128xf32, #tpu.memory_space<vmem>>, vector<1x128xf32>
    %30 = vector.broadcast %29 : vector<1x128xf32> to vector<128x128xf32>
    %31 = arith.mulf %28, %30 : vector<128x128xf32>
    %c0_13 = arith.constant 0 : index
    %c0_14 = arith.constant 0 : index
    %32 = vector.load %arg5[%c0_13, %c0_14] : memref<1x128xf32, #tpu.memory_space<vmem>>, vector<1x128xf32>
    %33 = vector.broadcast %32 : vector<1x128xf32> to vector<128x128xf32>
    %34 = arith.addf %31, %33 : vector<128x128xf32>
    %cst_15 = arith.constant 0.000000e+00 : f32
    %35 = vector.broadcast %cst_15 : f32 to vector<128x128xf32>
    %36 = arith.maximumf %34, %35 : vector<128x128xf32>
    %c0_16 = arith.constant 0 : index
    %c0_17 = arith.constant 0 : index
    %37 = vector.load %arg6[%c0_16, %c0_17] : memref<128x128xf32, #tpu.memory_space<vmem>>, vector<128x128xf32>
    %cst_18 = arith.constant dense<0.000000e+00> : vector<128x128xf32>
    %38 = tpu.matmul %36, %37, %cst_18 {dimension_numbers = #tpu.dot_dimension_numbers<[1], [0], [0], [1], [0, 0, 1, 1], [], []>} : vector<128x128xf32>, vector<128x128xf32>, vector<128x128xf32> -> vector<128x128xf32>
    %c0_19 = arith.constant 0 : index
    %c0_20 = arith.constant 0 : index
    %39 = vector.load %arg7[%c0_19, %c0_20] : memref<1x128xf32, #tpu.memory_space<vmem>>, vector<1x128xf32>
    %40 = vector.broadcast %39 : vector<1x128xf32> to vector<128x128xf32>
    %41 = arith.addf %38, %40 : vector<128x128xf32>
    %cst_21 = arith.constant dense<0.000000e+00> : vector<128xf32>
    %42 = vector.multi_reduction <add>, %41, %cst_21 [1] : vector<128x128xf32> to vector<128xf32>
    %43 = vector.shape_cast %42 : vector<128xf32> to vector<128x1xf32>
    %cst_22 = arith.constant 3.125000e-02 : f32
    %44 = vector.broadcast %cst_22 : f32 to vector<128x1xf32>
    %45 = arith.mulf %43, %44 : vector<128x1xf32>
    %46 = vector.broadcast %45 : vector<128x1xf32> to vector<128x128xf32>
    %47 = arith.subf %41, %46 : vector<128x128xf32>
    %48 = tpu.iota {dimensions = array<i32: 1>} : vector<1x128xi32>
    %c32_i32_23 = arith.constant 32 : i32
    %49 = vector.broadcast %c32_i32_23 : i32 to vector<1x128xi32>
    %50 = arith.cmpi slt, %48, %49 : vector<1x128xi32>
    %cst_24 = arith.constant 0.000000e+00 : f32
    %51 = vector.shape_cast %50 : vector<1x128xi1> to vector<1x128xi1>
    %52 = vector.broadcast %51 : vector<1x128xi1> to vector<128x128xi1>
    %53 = vector.broadcast %cst_24 : f32 to vector<128x128xf32>
    %54 = arith.select %52, %47, %53 : vector<128x128xi1>, vector<128x128xf32>
    %55 = arith.mulf %54, %54 : vector<128x128xf32>
    %cst_25 = arith.constant dense<0.000000e+00> : vector<128xf32>
    %56 = vector.multi_reduction <add>, %55, %cst_25 [1] : vector<128x128xf32> to vector<128xf32>
    %57 = vector.shape_cast %56 : vector<128xf32> to vector<128x1xf32>
    %cst_26 = arith.constant 3.125000e-02 : f32
    %58 = vector.broadcast %cst_26 : f32 to vector<128x1xf32>
    %59 = arith.mulf %57, %58 : vector<128x1xf32>
    %cst_27 = arith.constant 9.99999974E-6 : f32
    %60 = vector.broadcast %cst_27 : f32 to vector<128x1xf32>
    %61 = arith.addf %59, %60 : vector<128x1xf32>
    %62 = math.rsqrt %61 : vector<128x1xf32>
    %63 = vector.broadcast %62 : vector<128x1xf32> to vector<128x128xf32>
    %64 = arith.mulf %47, %63 : vector<128x128xf32>
    %c0_28 = arith.constant 0 : index
    %c0_29 = arith.constant 0 : index
    %65 = vector.load %arg8[%c0_28, %c0_29] : memref<1x128xf32, #tpu.memory_space<vmem>>, vector<1x128xf32>
    %66 = vector.broadcast %65 : vector<1x128xf32> to vector<128x128xf32>
    %67 = arith.mulf %64, %66 : vector<128x128xf32>
    %c0_30 = arith.constant 0 : index
    %c0_31 = arith.constant 0 : index
    %68 = vector.load %arg9[%c0_30, %c0_31] : memref<1x128xf32, #tpu.memory_space<vmem>>, vector<1x128xf32>
    %69 = vector.broadcast %68 : vector<1x128xf32> to vector<128x128xf32>
    %70 = arith.addf %67, %69 : vector<128x128xf32>
    %cst_32 = arith.constant 0.000000e+00 : f32
    %71 = vector.broadcast %cst_32 : f32 to vector<128x128xf32>
    %72 = arith.maximumf %70, %71 : vector<128x128xf32>
    %c0_33 = arith.constant 0 : index
    %c0_34 = arith.constant 0 : index
    %73 = vector.load %arg10[%c0_33, %c0_34] : memref<1x128xf32, #tpu.memory_space<vmem>>, vector<1x128xf32>
    "tpu.trace_start"() <{level = 10 : i32, message = "oh,bh->ob"}> : () -> ()
    %cst_35 = arith.constant dense<0.000000e+00> : vector<1x128xf32>
    %74 = tpu.matmul %73, %72, %cst_35 {dimension_numbers = #tpu.dot_dimension_numbers<[1], [1], [0], [0], [0, 0, 1, 0], [], []>} : vector<1x128xf32>, vector<128x128xf32>, vector<1x128xf32> -> vector<1x128xf32>
    "tpu.trace_stop"() : () -> ()
    %c0_36 = arith.constant 0 : index
    %c0_37 = arith.constant 0 : index
    %75 = vector.load %arg11[%c0_36, %c0_37] : memref<1x1xf32, #tpu.memory_space<vmem>>, vector<1x1xf32>
    %76 = vector.broadcast %75 : vector<1x1xf32> to vector<1x128xf32>
    %77 = arith.addf %74, %76 : vector<1x128xf32>
    %c0_38 = arith.constant 0 : index
    %c0_39 = arith.constant 0 : index
    %78 = vector.load %arg12[%c0_38, %c0_39] : memref<1x128xf32, #tpu.memory_space<vmem>>, vector<1x128xf32>
    tpu.vector_store %arg12[%c0_38, %c0_39], %77 {strides = array<i32>} : memref<1x128xf32, #tpu.memory_space<vmem>>, vector<1x128xf32>,
    return
  }
  func.func @transform_0(%arg0: i32) -> (i32, i32) {
    %c0_i32 = arith.constant 0 : i32
    %c0_i32_0 = arith.constant 0 : i32
    return %arg0, %c0_i32 : i32, i32
  }
  func.func @transform_1(%arg0: i32) -> (i32, i32) {
    %c0_i32 = arith.constant 0 : i32
    %c0_i32_0 = arith.constant 0 : i32
    %c0_i32_1 = arith.constant 0 : i32
    return %c0_i32, %c0_i32_0 : i32, i32
  }
  func.func @transform_2(%arg0: i32) -> (i32, i32) {
    %c0_i32 = arith.constant 0 : i32
    %c0_i32_0 = arith.constant 0 : i32
    %c0_i32_1 = arith.constant 0 : i32
    return %c0_i32, %c0_i32_0 : i32, i32
  }
  func.func @transform_3(%arg0: i32) -> (i32, i32) {
    %c0_i32 = arith.constant 0 : i32
    %c0_i32_0 = arith.constant 0 : i32
    %c0_i32_1 = arith.constant 0 : i32
    return %c0_i32, %c0_i32_0 : i32, i32
  }
  func.func @transform_4(%arg0: i32) -> (i32, i32) {
    %c0_i32 = arith.constant 0 : i32
    %c0_i32_0 = arith.constant 0 : i32
    %c0_i32_1 = arith.constant 0 : i32
    return %c0_i32, %c0_i32_0 : i32, i32
  }
  func.func @transform_5(%arg0: i32) -> (i32, i32) {
    %c0_i32 = arith.constant 0 : i32
    %c0_i32_0 = arith.constant 0 : i32
    %c0_i32_1 = arith.constant 0 : i32
    return %c0_i32, %c0_i32_0 : i32, i32
  }
  func.func @transform_6(%arg0: i32) -> (i32, i32) {
    %c0_i32 = arith.constant 0 : i32
    %c0_i32_0 = arith.constant 0 : i32
    %c0_i32_1 = arith.constant 0 : i32
    return %c0_i32, %c0_i32_0 : i32, i32
  }
  func.func @transform_7(%arg0: i32) -> (i32, i32) {
    %c0_i32 = arith.constant 0 : i32
    %c0_i32_0 = arith.constant 0 : i32
    %c0_i32_1 = arith.constant 0 : i32
    return %c0_i32, %c0_i32_0 : i32, i32
  }
  func.func @transform_8(%arg0: i32) -> (i32, i32) {
    %c0_i32 = arith.constant 0 : i32
    %c0_i32_0 = arith.constant 0 : i32
    %c0_i32_1 = arith.constant 0 : i32
    return %c0_i32, %c0_i32_0 : i32, i32
  }
  func.func @transform_9(%arg0: i32) -> (i32, i32) {
    %c0_i32 = arith.constant 0 : i32
    %c0_i32_0 = arith.constant 0 : i32
    %c0_i32_1 = arith.constant 0 : i32
    return %c0_i32, %c0_i32_0 : i32, i32
  }
  func.func @transform_10(%arg0: i32) -> (i32, i32) {
    %c0_i32 = arith.constant 0 : i32
    %c0_i32_0 = arith.constant 0 : i32
    %c0_i32_1 = arith.constant 0 : i32
    return %c0_i32, %c0_i32_0 : i32, i32
  }
  func.func @transform_11(%arg0: i32) -> (i32, i32) {
    %c0_i32 = arith.constant 0 : i32
    %c0_i32_0 = arith.constant 0 : i32
    return %c0_i32, %arg0 : i32, i32
  }
}

</mosaic_0001>

<bundles_post_ra>
// kernel: deep_learning_regressor_forward.1
= control target key start
LH: loop header
LB: loop body
LE: loop exit
PB: predicated region body
PF: predicated region fallthrough
CT: control target
= control target key end

     0   :  { %s2463_s0 = inlined_call_operand.vmem [shape: f32[256,128], index: 0, kind: input, shape index: {}]   ;;  %s2464_s1 = inlined_call_operand.vmem [shape: f32[128,128], index: 1, kind: input, shape index: {}]   ;;  %s2465_s2 = inlined_call_operand.vmem [shape: f32[1,128], index: 2, kind: input, shape index: {}]   ;;  %s2466_s3 = inlined_call_operand.vmem [shape: f32[1,128], index: 3, kind: input, shape index: {}]   ;;  %s2467_s4 = inlined_call_operand.vmem [shape: f32[1,128], index: 4, kind: input, shape index: {}]   ;;  %s2468_s5 = inlined_call_operand.vmem [shape: f32[128,128], index: 5, kind: input, shape index: {}]   ;;  %s2469_s6 = inlined_call_operand.vmem [shape: f32[1,128], index: 6, kind: input, shape index: {}]   ;;  %s2470_s7 = inlined_call_operand.vmem [shape: f32[1,128], index: 7, kind: input, shape index: {}]   ;;  %s2471_s8 = inlined_call_operand.vmem [shape: f32[1,128], index: 8, kind: input, shape index: {}]   ;;  %s2472_s9 = inlined_call_operand.vmem [shape: f32[1,128], index: 9, kind: input, shape index: {}]   ;;  %s2473_s10 = inlined_call_operand.<no memory space> [shape: f32[1,1], index: 10, kind: input, shape index: {}]   ;;  %s2474_s11 = inlined_call_operand.hbm [shape: f32[1,256], index: 11, kind: output, shape index: {}]  }
   0x1   :  { %2475 = sst [smem:[#allocation6_spill]] %s2463_s0  ;;  %v16_v0 = vstv %s2473_s10 }
   0x2   :  { %17 = vst [vmem:[#allocation2] sm:$0x1] %v16_v0 }
   0x3   :  { %18 = vsyncpa [#allocation4], 0 }
   0x4   :  { %20 = vsyncpa [#allocation4 + $0x1], 0  ;;  %s1724_s19 = smov 0   ;;  %s1726_s20 = smov 0  }
   0x5   :  { %s1728_s21 = smov 0   ;;  %s1730_s22 = smov 0  }
   0x6 LB: > { %s1745_s10 = sadd.s32 4294967295, %s1658_s22   ;;  %s1460_s23 = sadd.s32 4294967294, %s1658_s22   ;;  %s1658_s22 = sphi %s1730_s22, %s2492_s22   ;;  %s1654_s21 = sphi %s1728_s21, %s2491_s21   ;;  %s1650_s20 = sphi %s1726_s20, %s2490_s20   ;;  %s1646_s19 = sphi %s1724_s19, %s2489_s19  }
   0x7   : > { %s1749_s24 = sadd.s32 1, %s1658_s22   ;;  %s269_s25 = sadd.s32 1, %s1654_s21 }
   0x8   : > { %s266_s26 = ssub.s32 %s1658_s22, %s1749_s24  ;;  %p279_p0 = scmp.ne.s32.totalorder %s1654_s21, %s1650_s20 }
   0x9   : > { %p267_p1 = scmp.eq.s32.totalorder %s266_s26, 0  ;;  %p280_p2 = scmp.eq.s32.totalorder %s1745_s10, 1 }
   0xa   : > { %p285_p3 = scmp.ne.s32.totalorder %s1650_s20, %s1646_s19  ;;  %p286_p4 = scmp.eq.s32.totalorder %s1460_s23, 1 }
   0xb   : > { %s1760_s27 = scalar_select %p267_p1, %s1654_s21, %s269_s25  }
   0xc   : > { %p1762_p5 = por %p280_p2, %p279_p0  ;;  %p1766_p6 = por %p286_p4, %p285_p3 }
   0xd   : > { %p1463_p7 = scmp.ge.s32.totalorder %s1658_s22, 1  ;;  %p343_p8 = scmp.lt.s32.totalorder %s1658_s22, 3 }
   0xf   : > { %p344_p9 = pnand %p1463_p7, %p343_p8 }
  0x10   : > { %s1464_s16 = sshll.u32 (!%p344_p9), %s1745_s10, 4  ;;  %s2478_s0 = sld [smem:[#allocation6_spill]] (!%p344_p9) }
  0x11   : > { %347 = sbr.rel (%p344_p9) target bundleno = 1397 (0x575), region = 64  ;;  %p383_p10 = scmp.lt.s32.totalorder (!%p344_p9), %s1464_s16, 31 }
  0x12   : > { %s380_s18 = sand.u32 (!%p344_p9), 1, %s1650_s20   ;;  %s1401_s26 = scalar_lea.hbm (!%p344_p9), %s2474_s11, %s1745_s10 }
  0x13   : > { %s381_s30 = scalar_lea.vmem (!%p344_p9), [#allocation3], %s380_s18  ;;  %s1616_s10 = scalar_lea.hbm (!%p344_p9), %s2474_s11, 2 }
  0x14   : > { %s1403_s12 = sshll.u32 (!%p344_p9), %s381_s30, 4  ;;  %s1404_s12 = int_to_ptr.vmem [resolvable:$true] %s1403_s12 }
  0x16   : > { %v419_v1 = vld [vmem:[%s2464_s1 + $0x78] sm:$0xff]  ;;  %v418_v2 = vld [vmem:[%s2464_s1 + $0x70] sm:$0xff]  ;;  %v417_v3 = vld [vmem:[%s2464_s1 + $0x68] sm:$0xff]  ;;  %s2494_s16 = smov (!%p383_p10, %s1464_s16), 31  ;;  %v553_v48 = vlaneseq }
  0x17   : > { %424 = vmatpush.msra.mxu0 %v419_v1  ;;  %1468 = vmatpush.msra.mxu3 %v419_v1  ;;  %v416_v4 = vld [vmem:[%s2464_s1 + $0x60] sm:$0xff]  ;;  %v415_v5 = vld [vmem:[%s2464_s1 + $0x58] sm:$0xff]  ;;  %v414_v6 = vld [vmem:[%s2464_s1 + $0x50] sm:$0xff]  ;;  %s1465_s17 = sshll.u32 %s2494_s16, 3  ;;  %s1393_s16 = scalar_lea.sflag [#allocation4], %s380_s18 }
  0x18   : > { %v413_v7 = vld [vmem:[%s2464_s1 + $0x48] sm:$0xff]  ;;  %v412_v8 = vld [vmem:[%s2464_s1 + $0x40] sm:$0xff]  ;;  %v411_v9 = vld [vmem:[%s2464_s1 + $0x38] sm:$0xff]  ;;  %s1821_s13 = scalar_lea.vmem %s2478_s0, %s1465_s17  ;;  %v1857_v49 = vand.u32 127, %v553_v48 }
  0x19   : > { %425 = vmatpush.msra.mxu0 %v418_v2  ;;  %1469 = vmatpush.msra.mxu3 %v418_v2  ;;  %v410_v10 = vld [vmem:[%s2464_s1 + $0x30] sm:$0xff]  ;;  %v409_v11 = vld [vmem:[%s2464_s1 + $0x28] sm:$0xff]  ;;  %v408_v12 = vld [vmem:[%s2464_s1 + $0x20] sm:$0xff] }
  0x1a   : > { %v407_v13 = vld [vmem:[%s2464_s1 + $0x18] sm:$0xff]  ;;  %v406_v14 = vld [vmem:[%s2464_s1 + $0x10] sm:$0xff]  ;;  %v405_v15 = vld [vmem:[%s2464_s1 + $0x8] sm:$0xff]  ;;  %vm555_vm0 = vcmp.lt.s32.totalorder %v1857_v49, 32 }
  0x1b   : > { %426 = vmatpush.msra.mxu0 %v417_v3  ;;  %1470 = vmatpush.msra.mxu3 %v417_v3  ;;  %v404_v16 = vld [vmem:[%s2464_s1] sm:$0xff]  ;;  %v389_v18 = vld [vmem:[%s1821_s13 + $0x8] sm:$0xff]  ;;  %v390_v19 = vld [vmem:[%s1821_s13 + $0x10] sm:$0xff] }
  0x1c   : > { %v388_v17 = vld [vmem:[%s1821_s13] sm:$0xff]  ;;  %v391_v20 = vld [vmem:[%s1821_s13 + $0x18] sm:$0xff]  ;;  %v393_v22 = vld [vmem:[%s1821_s13 + $0x28] sm:$0xff] }
  0x1d   : > { %427 = vmatpush.msra.mxu0 %v416_v4  ;;  %1471 = vmatpush.msra.mxu3 %v416_v4  ;;  %v392_v21 = vld [vmem:[%s1821_s13 + $0x20] sm:$0xff]  ;;  %v394_v23 = vld [vmem:[%s1821_s13 + $0x30] sm:$0xff]  ;;  %v395_v24 = vld [vmem:[%s1821_s13 + $0x38] sm:$0xff] }
  0x1e   : > { %v396_v25 = vld [vmem:[%s1821_s13 + $0x40] sm:$0xff]  ;;  %v397_v26 = vld [vmem:[%s1821_s13 + $0x48] sm:$0xff]  ;;  %v398_v27 = vld [vmem:[%s1821_s13 + $0x50] sm:$0xff] }
  0x1f   : > { %428 = vmatpush.msra.mxu0 %v415_v5  ;;  %1472 = vmatpush.msra.mxu3 %v415_v5  ;;  %v1840_v28 = vld [vmem:[%s2465_s2] ss:$0 sm:$0xff]  ;;  %v399_v29 = vld [vmem:[%s1821_s13 + $0x58] sm:$0xff]  ;;  %v401_v35 = vld [vmem:[%s1821_s13 + $0x68] sm:$0xff] }
  0x20   : > { %v400_v32 = vld [vmem:[%s1821_s13 + $0x60] sm:$0xff]  ;;  %v402_v46 = vld [vmem:[%s1821_s13 + $0x70] sm:$0xff]  ;;  %v403_v47 = vld [vmem:[%s1821_s13 + $0x78] sm:$0xff]  ;;  %s1405_s13 = sshll.u32 %s1401_s26, 4  ;;  %s1406_s13 = int_to_ptr.hbm [resolvable:$true] %s1405_s13 }
  0x21   : > { %429 = vmatpush.msra.mxu0 %v414_v6  ;;  %1473 = vmatpush.msra.mxu3 %v414_v6  ;;  %v889_v48 = vld [vmem:[%s2468_s5 + $0x18] sm:$0xff]  ;;  %s1610_s14 = sshra.s32 %s1406_s13, 4  ;;  %s1611_s14 = int_to_ptr.hbm [resolvable:$true] %s1610_s14 }
  0x22   : > { %s1612_s15 = scalar_lea.hbm %s1611_s14, 1  ;;  %p1617_p0 = scmp.lt.s32.totalorder %s1611_s14, %s2474_s11 }
  0x23   : > { %430 = vmatpush.msra.mxu0 %v413_v7  ;;  %1474 = vmatpush.msra.mxu3 %v413_v7  ;;  %p1613_p11 = scmp.ne.s32.totalorder %s1611_s14, %s1612_s15  ;;  %p1618_p1 = scmp.lt.s32.totalorder %s1616_s10, %s1612_s15 }
  0x25   : > { %431 = vmatpush.msra.mxu0 %v412_v8  ;;  %1475 = vmatpush.msra.mxu3 %v412_v8  ;;  %p1614_p12 = pnand %p1613_p11, %p1762_p5  ;;  %p1619_p2 = por %p1618_p1, %p1617_p0 }
  0x27   : > { %432 = vmatpush.msra.mxu0 %v411_v9  ;;  %1476 = vmatpush.msra.mxu3 %v411_v9  ;;  %p1615_p13 = pneg %p1614_p12 }
  0x29   : > { %433 = vmatpush.msra.mxu0 %v410_v10  ;;  %1477 = vmatpush.msra.mxu3 %v410_v10  ;;  %p1620_p3 = pnand %p1619_p2, %p1615_p13 }
  0x2b   : > { %434 = vmatpush.msra.mxu0 %v409_v11  ;;  %1478 = vmatpush.msra.mxu3 %v409_v11 }
  0x2d   : > { %435 = vmatpush.msra.mxu0 %v408_v12  ;;  %1479 = vmatpush.msra.mxu3 %v408_v12 }
  0x2f   : > { %436 = vmatpush.msra.mxu0 %v407_v13  ;;  %1480 = vmatpush.msra.mxu3 %v407_v13 }
  0x31   : > { %437 = vmatpush.msra.mxu0 %v406_v14  ;;  %1481 = vmatpush.msra.mxu3 %v406_v14  ;;  %v901_v14 = vld [vmem:[%s2468_s5 + $0x78] sm:$0xff] }
  0x32   : > { %906 = vmatpush.msra.mxu1 %v901_v14 }
  0x33   : > { %438 = vmatpush.msra.mxu0 %v405_v15  ;;  %1482 = vmatpush.msra.mxu3 %v405_v15 }
  0x35   : > { %439 = vmatpush.msra.mxu0 %v404_v16  ;;  %1483 = vmatpush.msra.mxu3 %v404_v16 }
  0x36   : > { %440 = vmatmul.f32.vlgmr.msra.gmra.mxu0 %v388_v17  ;;  %470 = vmatmul.f32.vlgmr.msra.gmra.mxu3 %v398_v27 }
  0x3e   : > { %443 = vmatmul.f32.gmra.mxu0 %v389_v18  ;;  %473 = vmatmul.f32.gmra.mxu3 %v399_v29 }
  0x46   : > { %446 = vmatmul.f32.gmra.mxu0 %v390_v19  ;;  %476 = vmatmul.f32.gmra.mxu3 %v400_v32 }
  0x4e   : > { %449 = vmatmul.f32.gmra.mxu0 %v391_v20  ;;  %479 = vmatmul.f32.gmra.mxu3 %v401_v35 }
  0x56   : > { %452 = vmatmul.f32.gmra.mxu0 %v392_v21  ;;  %482 = vmatmul.f32.gmra.mxu3 %v402_v46  ;;  %v891_v46 = vld [vmem:[%s2468_s5 + $0x28] sm:$0xff] }
  0x5e   : > { %455 = vmatmul.f32.gmra.mxu0 %v393_v22  ;;  %485 = vmatmul.f32.gmra.mxu3 %v403_v47  ;;  %v890_v47 = vld [vmem:[%s2468_s5 + $0x20] sm:$0xff] }
  0x66   : > { %458 = vmatmul.f32.gmra.mxu0 %v394_v23 }
  0x6e   : > { %461 = vmatmul.f32.gmra.mxu0 %v395_v24 }
  0x76   : > { %464 = vmatmul.f32.gmra.mxu0 %v396_v25 }
  0x7e   : > { %467 = vmatmul.f32.gmra.mxu0 %v397_v26 }
  0xb3   : > { %v441_v30 = vpop.f32.mrf.mxu0 }
  0xb4   : > { %v442_v31 = vadd.f32 %v1840_v28, %v441_v30 }
  0xb6   : > { %489 = vadd.xlane.f32.xlu0 %v442_v31 }
  0xb9   : > { %v471_v9 = vpop.f32.mrf.mxu3 }
  0xba   : > { %v1898_v17 = vadd.f32 %v1840_v28, %v471_v9 }
  0xbb   : > { %v444_v33 = vpop.f32.mrf.mxu0 }
  0xbc   : > { %v445_v34 = vadd.f32 %v1840_v28, %v444_v33 }
  0xbe   : > { %491 = vadd.xlane.f32.xlu0 %v445_v34 }
  0xc1   : > { %v474_v19 = vpop.f32.mrf.mxu3 }
  0xc2   : > { %v1907_v24 = vadd.f32 %v1840_v28, %v474_v19 }
  0xc3   : > { %v447_v36 = vpop.f32.mrf.mxu0 }
  0xc4   : > { %v448_v37 = vadd.f32 %v1840_v28, %v447_v36 }
  0xc6   : > { %493 = vadd.xlane.f32.xlu1 %v448_v37 }
  0xc9   : > { %v477_v27 = vpop.f32.mrf.mxu3 }
  0xca   : > { %v1917_v32 = vadd.f32 %v1840_v28, %v477_v27  ;;  %v1990_v27 = vld [vmem:[%s2466_s3] ss:$0 sm:$0xff] }
  0xcb   : > { %v450_v38 = vpop.f32.mrf.mxu0 }
  0xcc   : > { %v451_v39 = vadd.f32 %v1840_v28, %v450_v38  ;;  %v899_v38 = vld [vmem:[%s2468_s5 + $0x68] sm:$0xff] }
  0xce   : > { %495 = vadd.xlane.f32.xlu1 %v451_v39 }
  0xd1   : > { %v480_v35 = vpop.f32.mrf.mxu3 }
  0xd2   : > { %v1924_v36 = vadd.f32 %v1840_v28, %v480_v35 }
  0xd3   : > { %v453_v40 = vpop.f32.mrf.mxu0 }
  0xd4   : > { %v454_v41 = vadd.f32 %v1840_v28, %v453_v40  ;;  %v897_v40 = vld [vmem:[%s2468_s5 + $0x58] sm:$0xff] }
  0xd6   : > { %497 = vadd.xlane.f32.xlu2 %v454_v41 }
  0xd9   : > { %v483_v9 = vpop.f32.mrf.mxu3 }
  0xdb   : > { %v456_v42 = vpop.f32.mrf.mxu0 }
  0xdc   : > { %v457_v43 = vadd.f32 %v1840_v28, %v456_v42  ;;  %v895_v42 = vld [vmem:[%s2468_s5 + $0x48] sm:$0xff] }
  0xde   : > { %499 = vadd.xlane.f32.xlu2 %v457_v43 }
  0xe3   : > { %v459_v44 = vpop.f32.mrf.mxu0 }
  0xe4   : > { %v1852_v45 = vadd.f32 %v1840_v28, %v459_v44  ;;  %v893_v44 = vld [vmem:[%s2468_s5 + $0x38] sm:$0xff] }
  0xe6   : > { %501 = vadd.xlane.f32.xlu1 %v1852_v45 }
  0xeb   : > { %v462_v54 = vpop.f32.mrf.mxu0 }
  0xec   : > { %v1868_v59 = vadd.f32 %v1840_v28, %v462_v54 }
  0xf3   : > { %v465_v62 = vpop.f32.mrf.mxu0 }
  0xf4   : > { %v1877_v2 = vadd.f32 %v1840_v28, %v465_v62 }
  0xfb   : > { %v468_v7 = vpop.f32.mrf.mxu0 }
  0xfc   : > { %v1886_v10 = vadd.f32 %v1840_v28, %v468_v7 }
 0x129   : > { %v490_v50 = vpop.xlane.xlu0 %489 }
 0x12a   : > { %v521_v51 = vmul.f32 0.03125, %v490_v50  ;;  %v888_v50 = vld [vmem:[%s2468_s5 + $0x10] sm:$0xff] }
 0x12c   : > { %v1860_v52 = vsub.f32 %v442_v31, %v521_v51  ;;  %v887_v51 = vld [vmem:[%s2468_s5 + $0x8] sm:$0xff] }
 0x12e   : > { %v558_v53 = vsel %vm555_vm0, %v1860_v52, 0.0 }
 0x12f   : > { %v574_v55 = vmul.f32 %v558_v53, %v558_v53  ;;  %v886_v53 = vld [vmem:[%s2468_s5] sm:$0xff] }
 0x131   : > { %590 = vadd.xlane.f32.xlu0 %v574_v55  ;;  %v492_v56 = vpop.xlane.xlu0 %491 }
 0x132   : > { %v522_v57 = vmul.f32 0.03125, %v492_v56 }
 0x134   : > { %v1865_v58 = vsub.f32 %v445_v34, %v522_v57 }
 0x136   : > { %v559_v60 = vsel %vm555_vm0, %v1865_v58, 0.0 }
 0x137   : > { %v575_v61 = vmul.f32 %v559_v60, %v559_v60 }
 0x139   : > { %v494_v63 = vpop.xlane.xlu1 %493  ;;  %503 = vadd.xlane.f32.xlu0 %v1868_v59  ;;  %592 = vadd.xlane.f32.xlu2 %v575_v61 }
 0x13a   : > { %v523_v0 = vmul.f32 0.03125, %v494_v63 }
 0x13c   : > { %v1874_v1 = vsub.f32 %v448_v37, %v523_v0  ;;  %v900_v37 = vld [vmem:[%s2468_s5 + $0x70] sm:$0xff] }
 0x13d   : > { %907 = vmatpush.msra.mxu1 %v900_v37 }
 0x13e   : > { %v560_v3 = vsel %vm555_vm0, %v1874_v1, 0.0 }
 0x13f   : > { %v576_v4 = vmul.f32 %v560_v3, %v560_v3  ;;  %908 = vmatpush.msra.mxu1 %v899_v38 }
 0x141   : > { %594 = vadd.xlane.f32.xlu1 %v576_v4  ;;  %v496_v5 = vpop.xlane.xlu1 %495  ;;  %505 = vadd.xlane.f32.xlu2 %v1877_v2 }
 0x142   : > { %v524_v6 = vmul.f32 0.03125, %v496_v5 }
 0x144   : > { %v1883_v8 = vsub.f32 %v451_v39, %v524_v6  ;;  %v898_v39 = vld [vmem:[%s2468_s5 + $0x60] sm:$0xff] }
 0x145   : > { %909 = vmatpush.msra.mxu1 %v898_v39 }
 0x146   : > { %v561_v11 = vsel %vm555_vm0, %v1883_v8, 0.0 }
 0x147   : > { %v577_v12 = vmul.f32 %v561_v11, %v561_v11  ;;  %910 = vmatpush.msra.mxu1 %v897_v40 }
 0x149   : > { %v498_v13 = vpop.xlane.xlu2 %497  ;;  %507 = vadd.xlane.f32.xlu1 %v1886_v10  ;;  %596 = vadd.xlane.f32.xlu0 %v577_v12 }
 0x14a   : > { %v525_v15 = vmul.f32 0.03125, %v498_v13 }
 0x14c   : > { %v1895_v16 = vsub.f32 %v454_v41, %v525_v15  ;;  %v896_v41 = vld [vmem:[%s2468_s5 + $0x50] sm:$0xff] }
 0x14d   : > { %911 = vmatpush.msra.mxu1 %v896_v41  ;;  %v486_v41 = vpop.f32.mrf.mxu3 }
 0x14e   : > { %v562_v18 = vsel %vm555_vm0, %v1895_v16, 0.0 }
 0x14f   : > { %v578_v20 = vmul.f32 %v562_v18, %v562_v18  ;;  %912 = vmatpush.msra.mxu1 %v895_v42 }
 0x151   : > { %v500_v21 = vpop.xlane.xlu2 %499  ;;  %509 = vadd.xlane.f32.xlu0 %v1898_v17  ;;  %598 = vadd.xlane.f32.xlu2 %v578_v20 }
 0x152   : > { %v526_v22 = vmul.f32 0.03125, %v500_v21 }
 0x154   : > { %v1904_v23 = vsub.f32 %v457_v43, %v526_v22  ;;  %v894_v43 = vld [vmem:[%s2468_s5 + $0x40] sm:$0xff] }
 0x155   : > { %913 = vmatpush.msra.mxu1 %v894_v43 }
 0x156   : > { %v563_v25 = vsel %vm555_vm0, %v1904_v23, 0.0 }
 0x157   : > { %v579_v26 = vmul.f32 %v563_v25, %v563_v25  ;;  %914 = vmatpush.msra.mxu1 %v893_v44  ;;  %v1982_v25 = vadd.f32 %v1840_v28, %v483_v9 }
 0x159   : > { %600 = vadd.xlane.f32.xlu1 %v579_v26  ;;  %v502_v29 = vpop.xlane.xlu1 %501  ;;  %511 = vadd.xlane.f32.xlu2 %v1907_v24 }
 0x15a   : > { %v527_v30 = vmul.f32 0.03125, %v502_v29 }
 0x15c   : > { %v1914_v31 = vsub.f32 %v1852_v45, %v527_v30  ;;  %v892_v45 = vld [vmem:[%s2468_s5 + $0x30] sm:$0xff] }
 0x15d   : > { %915 = vmatpush.msra.mxu1 %v892_v45 }
 0x15e   : > { %v564_v33 = vsel %vm555_vm0, %v1914_v31, 0.0 }
 0x15f   : > { %v580_v34 = vmul.f32 %v564_v33, %v564_v33  ;;  %916 = vmatpush.msra.mxu1 %v891_v46 }
 0x161   : > { %513 = vadd.xlane.f32.xlu1 %v1917_v32  ;;  %602 = vadd.xlane.f32.xlu0 %v580_v34  ;;  %v1996_v34 = vld [vmem:[%s2467_s4] ss:$0 sm:$0xff] }
 0x162   : > { %917 = vmatpush.msra.mxu1 %v890_v47 }
 0x164   : > { %918 = vmatpush.msra.mxu1 %v889_v48 }
 0x166   : > { %919 = vmatpush.msra.mxu1 %v888_v50  ;;  %v2005_v50 = vadd.f32 %v1840_v28, %v486_v41 }
 0x168   : > { %920 = vmatpush.msra.mxu1 %v887_v51 }
 0x169   : > { %515 = vadd.xlane.f32.xlu0 %v1924_v36 }
 0x16a   : > { %921 = vmatpush.msra.mxu1 %v886_v53 }
 0x1a4   : > { %v591_v54 = vpop.xlane.xlu0 %590 }
 0x1a5   : > { %v622_v55 = vmul.f32 0.03125, %v591_v54 }
 0x1a7   : > { %v638_v56 = vadd.f32 1e-05, %v622_v55 }
 0x1a9   : > { %1532 = vrsqrt.f32 %v638_v56  ;;  %vm660_vm2 = vweird.f32 %v638_v56 }
 0x1ac   : > { %v593_v57 = vpop.xlane.xlu2 %592  ;;  %v504_v60 = vpop.xlane.xlu0 %503 }
 0x1ad   : > { %v623_v61 = vmul.f32 0.03125, %v593_v57  ;;  %v528_v62 = vmul.f32 0.03125, %v504_v60 }
 0x1af   : > { %v1533_v63 = vpop.eup %1532  ;;  %v639_v0 = vadd.f32 1e-05, %v623_v61  ;;  %v1973_v3 = vsub.f32 %v1868_v59, %v528_v62 }
 0x1b0   : > { %v655_v4 = vmul.f32 %v1533_v63, %v638_v56  ;;  %vm661_vm1 = vweird.f32 %v1533_v63 }
 0x1b1   : > { %1534 = vrsqrt.f32 %v639_v0  ;;  %v565_v5 = vsel %vm555_vm0, %v1973_v3, 0.0  ;;  %vm662_vm3 = vmor %vm660_vm2, %vm661_vm1  ;;  %vm670_vm5 = vweird.f32 %v639_v0 }
 0x1b2   : > { %v656_v6 = vmul.f32 %v1533_v63, %v655_v4  ;;  %v581_v7 = vmul.f32 %v565_v5, %v565_v5 }
 0x1b4   : > { %v657_v11 = vmul.f32 0.5, %v656_v6  ;;  %v595_v12 = vpop.xlane.xlu1 %594  ;;  %v506_v13 = vpop.xlane.xlu2 %505  ;;  %604 = vadd.xlane.f32.xlu2 %v581_v7 }
 0x1b5   : > { %v624_v14 = vmul.f32 0.03125, %v595_v12  ;;  %v529_v15 = vmul.f32 0.03125, %v506_v13 }
 0x1b6   : > { %v658_v18 = vsub.f32 1.5, %v657_v11 }
 0x1b7   : > { %v1535_v19 = vpop.eup %1534  ;;  %v640_v59 = vadd.f32 1e-05, %v624_v14  ;;  %v1979_v20 = vsub.f32 %v1877_v2, %v529_v15 }
 0x1b8   : > { %v659_v21 = vmul.f32 %v1533_v63, %v658_v18  ;;  %v665_v22 = vmul.f32 %v1535_v19, %v639_v0  ;;  %vm671_vm4 = vweird.f32 %v1535_v19 }
 0x1b9   : > { %1536 = vrsqrt.f32 %v640_v59  ;;  %v566_v26 = vsel %vm555_vm0, %v1979_v20, 0.0  ;;  %vm672_vm6 = vmor %vm670_vm5, %vm671_vm4  ;;  %vm680_vm8 = vweird.f32 %v640_v59 }
 0x1ba   : > { %v666_v29 = vmul.f32 %v1535_v19, %v665_v22  ;;  %v582_v2 = vmul.f32 %v566_v26, %v566_v26  ;;  %v663_v30 = vsel %vm662_vm3, %v1533_v63, %v659_v21 }
 0x1bb   : > { %v814_v33 = vmul.f32 %v663_v30, %v1860_v52 }
 0x1bc   : > { %v667_v35 = vmul.f32 0.5, %v666_v29  ;;  %v508_v37 = vpop.xlane.xlu1 %507  ;;  %606 = vadd.xlane.f32.xlu1 %v582_v2  ;;  %517 = vadd.xlane.f32.xlu2 %v1982_v25  ;;  %v597_v38 = vpop.xlane.xlu0 %596 }
 0x1bd   : > { %v530_v39 = vmul.f32 0.03125, %v508_v37  ;;  %v625_v40 = vmul.f32 0.03125, %v597_v38  ;;  %v834_v42 = vmul.f32 %v1990_v27, %v814_v33 }
 0x1be   : > { %v668_v43 = vsub.f32 1.5, %v667_v35 }
 0x1bf   : > { %v1537_v44 = vpop.eup %1536  ;;  %v2001_v52 = vsub.f32 %v1886_v10, %v530_v39  ;;  %v641_v45 = vadd.f32 1e-05, %v625_v40  ;;  %v854_v46 = vadd.f32 %v1996_v34, %v834_v42 }
 0x1c0   : > { %v669_v47 = vmul.f32 %v1535_v19, %v668_v43  ;;  %v675_v48 = vmul.f32 %v1537_v44, %v640_v59  ;;  %vm681_vm7 = vweird.f32 %v1537_v44 }
 0x1c1   : > { %1538 = vrsqrt.f32 %v641_v45  ;;  %v870_v51 = vmax.f32 %v854_v46, 0.0  ;;  %v567_v53 = vsel %vm555_vm0, %v2001_v52, 0.0  ;;  %vm682_vm9 = vmor %vm680_vm8, %vm681_vm7  ;;  %vm690_vm11 = vweird.f32 %v641_v45 }
 0x1c2   : > { %v676_v54 = vmul.f32 %v1537_v44, %v675_v48  ;;  %v583_v55 = vmul.f32 %v567_v53, %v567_v53  ;;  %v673_v10 = vsel %vm672_vm6, %v1535_v19, %v669_v47 }
 0x1c3   : > { %922 = vmatmul.f32.vlgmr.msra.gmra.mxu1 %v870_v51  ;;  %v815_v56 = vmul.f32 %v673_v10, %v1865_v58 }
 0x1c4   : > { %v677_v57 = vmul.f32 0.5, %v676_v54  ;;  %608 = vadd.xlane.f32.xlu0 %v583_v55  ;;  %519 = vadd.xlane.f32.xlu1 %v2005_v50  ;;  %v599_v60 = vpop.xlane.xlu2 %598  ;;  %v510_v28 = vpop.xlane.xlu0 %509 }
 0x1c5   : > { %v626_v61 = vmul.f32 0.03125, %v599_v60  ;;  %v531_v62 = vmul.f32 0.03125, %v510_v28  ;;  %v835_v63 = vmul.f32 %v1990_v27, %v815_v56 }
 0x1c6   : > { %v678_v0 = vsub.f32 1.5, %v677_v57 }
 0x1c7   : > { %v1539_v4 = vpop.eup %1538  ;;  %v642_v5 = vadd.f32 1e-05, %v626_v61  ;;  %v2014_v6 = vsub.f32 %v1898_v17, %v531_v62  ;;  %v855_v7 = vadd.f32 %v1996_v34, %v835_v63 }
 0x1c8   : > { %v679_v58 = vmul.f32 %v1537_v44, %v678_v0  ;;  %v685_v9 = vmul.f32 %v1539_v4, %v641_v45  ;;  %vm691_vm10 = vweird.f32 %v1539_v4 }
 0x1c9   : > { %1540 = vrsqrt.f32 %v642_v5  ;;  %v871_v11 = vmax.f32 %v855_v7, 0.0  ;;  %v568_v12 = vsel %vm555_vm0, %v2014_v6, 0.0  ;;  %vm692_vm12 = vmor %vm690_vm11, %vm691_vm10  ;;  %vm700_vm14 = vweird.f32 %v642_v5 }
 0x1ca   : > { %v686_v13 = vmul.f32 %v1539_v4, %v685_v9  ;;  %v584_v14 = vmul.f32 %v568_v12, %v568_v12  ;;  %v683_v15 = vsel %vm682_vm9, %v1537_v44, %v679_v58 }
 0x1cb   : > { %925 = vmatmul.f32.gmra.mxu1 %v871_v11  ;;  %v816_v18 = vmul.f32 %v683_v15, %v1874_v1 }
 0x1cc   : > { %v687_v17 = vmul.f32 0.5, %v686_v13  ;;  %v601_v19 = vpop.xlane.xlu1 %600  ;;  %v512_v21 = vpop.xlane.xlu2 %511  ;;  %610 = vadd.xlane.f32.xlu2 %v584_v14 }
 0x1cd   : > { %v627_v22 = vmul.f32 0.03125, %v601_v19  ;;  %v532_v59 = vmul.f32 0.03125, %v512_v21  ;;  %v836_v26 = vmul.f32 %v1990_v27, %v816_v18 }
 0x1ce   : > { %v688_v29 = vsub.f32 1.5, %v687_v17 }
 0x1cf   : > { %v1541_v2 = vpop.eup %1540  ;;  %v643_v30 = vadd.f32 1e-05, %v627_v22  ;;  %v2023_v33 = vsub.f32 %v1907_v24, %v532_v59  ;;  %v856_v35 = vadd.f32 %v1996_v34, %v836_v26 }
 0x1d0   : > { %v689_v37 = vmul.f32 %v1539_v4, %v688_v29  ;;  %v695_v1 = vmul.f32 %v1541_v2, %v642_v5  ;;  %vm701_vm13 = vweird.f32 %v1541_v2 }
 0x1d1   : > { %1542 = vrsqrt.f32 %v643_v30  ;;  %v872_v38 = vmax.f32 %v856_v35, 0.0  ;;  %v569_v39 = vsel %vm555_vm0, %v2023_v33, 0.0  ;;  %vm702_vm15 = vmor %vm700_vm14, %vm701_vm13  ;;  %vm710_vm2 = vweird.f32 %v643_v30 }
 0x1d2   : > { %v696_v40 = vmul.f32 %v1541_v2, %v695_v1  ;;  %v585_v41 = vmul.f32 %v569_v39, %v569_v39  ;;  %v693_v42 = vsel %vm692_vm12, %v1539_v4, %v689_v37 }
 0x1d3   : > { %928 = vmatmul.f32.gmra.mxu1 %v872_v38  ;;  %v817_v43 = vmul.f32 %v693_v42, %v1883_v8 }
 0x1d4   : > { %v697_v24 = vmul.f32 0.5, %v696_v40  ;;  %v514_v44 = vpop.xlane.xlu1 %513  ;;  %612 = vadd.xlane.f32.xlu0 %v585_v41  ;;  %v603_v46 = vpop.xlane.xlu0 %602 }
 0x1d5   : > { %v533_v47 = vmul.f32 0.03125, %v514_v44  ;;  %v628_v45 = vmul.f32 0.03125, %v603_v46  ;;  %v837_v48 = vmul.f32 %v1990_v27, %v817_v43 }
 0x1d6   : > { %v698_v51 = vsub.f32 1.5, %v697_v24 }
 0x1d7   : > { %v1543_v53 = vpop.eup %1542  ;;  %v2032_v54 = vsub.f32 %v1917_v32, %v533_v47  ;;  %v644_v55 = vadd.f32 1e-05, %v628_v45  ;;  %v857_v10 = vadd.f32 %v1996_v34, %v837_v48 }
 0x1d8   : > { %v699_v56 = vmul.f32 %v1541_v2, %v698_v51  ;;  %v705_v8 = vmul.f32 %v1543_v53, %v643_v30  ;;  %vm711_vm1 = vweird.f32 %v1543_v53 }
 0x1d9   : > { %1544 = vrsqrt.f32 %v644_v55  ;;  %v873_v57 = vmax.f32 %v857_v10, 0.0  ;;  %v570_v60 = vsel %vm555_vm0, %v2032_v54, 0.0  ;;  %vm712_vm3 = vmor %vm710_vm2, %vm711_vm1  ;;  %vm720_vm5 = vweird.f32 %v644_v55 }
 0x1da   : > { %v706_v28 = vmul.f32 %v1543_v53, %v705_v8  ;;  %v586_v61 = vmul.f32 %v570_v60, %v570_v60  ;;  %v703_v62 = vsel %vm702_vm15, %v1541_v2, %v699_v56 }
 0x1db   : > { %931 = vmatmul.f32.gmra.mxu1 %v873_v57  ;;  %v818_v32 = vmul.f32 %v703_v62, %v1895_v16 }
 0x1dc   : > { %v707_v63 = vmul.f32 0.5, %v706_v28  ;;  %614 = vadd.xlane.f32.xlu1 %v586_v61  ;;  %v516_v0 = vpop.xlane.xlu0 %515 }
 0x1dd   : > { %v534_v4 = vmul.f32 0.03125, %v516_v0  ;;  %v838_v5 = vmul.f32 %v1990_v27, %v818_v32 }
 0x1de   : > { %v708_v7 = vsub.f32 1.5, %v707_v63 }
 0x1df   : > { %v1545_v58 = vpop.eup %1544  ;;  %v2041_v9 = vsub.f32 %v1924_v36, %v534_v4  ;;  %v858_v11 = vadd.f32 %v1996_v34, %v838_v5 }
 0x1e0   : > { %v709_v12 = vmul.f32 %v1543_v53, %v708_v7  ;;  %v715_v13 = vmul.f32 %v1545_v58, %v644_v55  ;;  %vm721_vm4 = vweird.f32 %v1545_v58 }
 0x1e1   : > { %v874_v14 = vmax.f32 %v858_v11, 0.0  ;;  %v571_v16 = vsel %vm555_vm0, %v2041_v9, 0.0  ;;  %vm722_vm6 = vmor %vm720_vm5, %vm721_vm4 }
 0x1e2   : > { %v716_v15 = vmul.f32 %v1545_v58, %v715_v13  ;;  %v587_v18 = vmul.f32 %v571_v16, %v571_v16  ;;  %v713_v17 = vsel %vm712_vm3, %v1543_v53, %v709_v12 }
 0x1e3   : > { %934 = vmatmul.f32.gmra.mxu1 %v874_v14  ;;  %v819_v19 = vmul.f32 %v713_v17, %v1904_v23 }
 0x1e4   : > { %v717_v21 = vmul.f32 0.5, %v716_v15  ;;  %616 = vadd.xlane.f32.xlu2 %v587_v18 }
 0x1e5   : > { %v839_v36 = vmul.f32 %v1990_v27, %v819_v19 }
 0x1e6   : > { %v718_v22 = vsub.f32 1.5, %v717_v21 }
 0x1e7   : > { %v859_v59 = vadd.f32 %v1996_v34, %v839_v36 }
 0x1e8   : > { %v719_v26 = vmul.f32 %v1545_v58, %v718_v22 }
 0x1e9   : > { %v875_v29 = vmax.f32 %v859_v59, 0.0 }
 0x1ea   : > { %v723_v2 = vsel %vm722_vm6, %v1545_v58, %v719_v26 }
 0x1eb   : > { %937 = vmatmul.f32.gmra.mxu1 %v875_v29  ;;  %v820_v30 = vmul.f32 %v723_v2, %v1914_v31 }
 0x1ed   : > { %v840_v35 = vmul.f32 %v1990_v27, %v820_v30 }
 0x1ef   : > { %v860_v23 = vadd.f32 %v1996_v34, %v840_v35 }
 0x1f1   : > { %v876_v37 = vmax.f32 %v860_v23, 0.0 }
 0x1f3   : > { %940 = vmatmul.f32.gmra.mxu1 %v876_v37 }
 0x227   : > { %v605_v1 = vpop.xlane.xlu2 %604 }
 0x228   : > { %v629_v38 = vmul.f32 0.03125, %v605_v1 }
 0x22a   : > { %v645_v39 = vadd.f32 1e-05, %v629_v38 }
 0x22c   : > { %1546 = vrsqrt.f32 %v645_v39  ;;  %vm730_vm8 = vweird.f32 %v645_v39 }
 0x22f   : > { %v607_v40 = vpop.xlane.xlu1 %606  ;;  %v518_v41 = vpop.xlane.xlu2 %517 }
 0x230   : > { %v630_v42 = vmul.f32 0.03125, %v607_v40  ;;  %v535_v43 = vmul.f32 0.03125, %v518_v41 }
 0x232   : > { %v1547_v24 = vpop.eup %1546  ;;  %v646_v44 = vadd.f32 1e-05, %v630_v42  ;;  %v2054_v46 = vsub.f32 %v1982_v25, %v535_v43 }
 0x233   : > { %v725_v31 = vmul.f32 %v1547_v24, %v645_v39  ;;  %vm731_vm7 = vweird.f32 %v1547_v24 }
 0x234   : > { %1548 = vrsqrt.f32 %v646_v44  ;;  %v572_v47 = vsel %vm555_vm0, %v2054_v46, 0.0  ;;  %vm732_vm9 = vmor %vm730_vm8, %vm731_vm7  ;;  %vm740_vm11 = vweird.f32 %v646_v44 }
 0x235   : > { %v726_v45 = vmul.f32 %v1547_v24, %v725_v31  ;;  %v588_v48 = vmul.f32 %v572_v47, %v572_v47 }
 0x237   : > { %v727_v51 = vmul.f32 0.5, %v726_v45  ;;  %v520_v53 = vpop.xlane.xlu1 %519  ;;  %618 = vadd.xlane.f32.xlu0 %v588_v48  ;;  %v609_v55 = vpop.xlane.xlu0 %608 }
 0x238   : > { %v536_v10 = vmul.f32 0.03125, %v520_v53  ;;  %v631_v56 = vmul.f32 0.03125, %v609_v55 }
 0x239   : > { %v728_v8 = vsub.f32 1.5, %v727_v51 }
 0x23a   : > { %v1549_v57 = vpop.eup %1548  ;;  %v2060_v25 = vsub.f32 %v2005_v50, %v536_v10  ;;  %v647_v60 = vadd.f32 1e-05, %v631_v56 }
 0x23b   : > { %v729_v28 = vmul.f32 %v1547_v24, %v728_v8  ;;  %v735_v61 = vmul.f32 %v1549_v57, %v646_v44  ;;  %vm741_vm10 = vweird.f32 %v1549_v57 }
 0x23c   : > { %1550 = vrsqrt.f32 %v647_v60  ;;  %v573_v62 = vsel %vm555_vm0, %v2060_v25, 0.0  ;;  %vm742_vm12 = vmor %vm740_vm11, %vm741_vm10  ;;  %vm750_vm14 = vweird.f32 %v647_v60 }
 0x23d   : > { %v736_v32 = vmul.f32 %v1549_v57, %v735_v61  ;;  %v589_v63 = vmul.f32 %v573_v62, %v573_v62  ;;  %v733_v0 = vsel %vm732_vm9, %v1547_v24, %v729_v28 }
 0x23e   : > { %v821_v4 = vmul.f32 %v733_v0, %v1973_v3 }
 0x23f   : > { %v737_v5 = vmul.f32 0.5, %v736_v32  ;;  %620 = vadd.xlane.f32.xlu1 %v589_v63  ;;  %v611_v7 = vpop.xlane.xlu2 %610 }
 0x240   : > { %v632_v50 = vmul.f32 0.03125, %v611_v7  ;;  %v841_v58 = vmul.f32 %v1990_v27, %v821_v4 }
 0x241   : > { %v738_v11 = vsub.f32 1.5, %v737_v5 }
 0x242   : > { %v1551_v12 = vpop.eup %1550  ;;  %v648_v13 = vadd.f32 1e-05, %v632_v50  ;;  %v861_v14 = vadd.f32 %v1996_v34, %v841_v58 }
 0x243   : > { %v739_v16 = vmul.f32 %v1549_v57, %v738_v11  ;;  %v745_v15 = vmul.f32 %v1551_v12, %v647_v60  ;;  %vm751_vm13 = vweird.f32 %v1551_v12 }
 0x244   : > { %1552 = vrsqrt.f32 %v648_v13  ;;  %v877_v18 = vmax.f32 %v861_v14, 0.0  ;;  %vm752_vm15 = vmor %vm750_vm14, %vm751_vm13  ;;  %vm760_vm2 = vweird.f32 %v648_v13 }
 0x245   : > { %v746_v17 = vmul.f32 %v1551_v12, %v745_v15  ;;  %v743_v3 = vsel %vm742_vm12, %v1549_v57, %v739_v16 }
 0x246   : > { %943 = vmatmul.f32.gmra.mxu1 %v877_v18  ;;  %v822_v19 = vmul.f32 %v743_v3, %v1979_v20 }
 0x247   : > { %v747_v21 = vmul.f32 0.5, %v746_v17  ;;  %v613_v36 = vpop.xlane.xlu0 %612 }
 0x248   : > { %v633_v22 = vmul.f32 0.03125, %v613_v36  ;;  %v842_v59 = vmul.f32 %v1990_v27, %v822_v19 }
 0x249   : > { %v748_v26 = vsub.f32 1.5, %v747_v21 }
 0x24a   : > { %v1553_v29 = vpop.eup %1552  ;;  %v649_v2 = vadd.f32 1e-05, %v633_v22  ;;  %v862_v30 = vadd.f32 %v1996_v34, %v842_v59 }
 0x24b   : > { %v749_v35 = vmul.f32 %v1551_v12, %v748_v26  ;;  %v755_v23 = vmul.f32 %v1553_v29, %v648_v13  ;;  %vm761_vm1 = vweird.f32 %v1553_v29 }
 0x24c   : > { %1554 = vrsqrt.f32 %v649_v2  ;;  %v878_v37 = vmax.f32 %v862_v30, 0.0  ;;  %vm762_vm3 = vmor %vm760_vm2, %vm761_vm1  ;;  %vm770_vm5 = vweird.f32 %v649_v2 }
 0x24d   : > { %v756_v1 = vmul.f32 %v1553_v29, %v755_v23  ;;  %v753_v38 = vsel %vm752_vm15, %v1551_v12, %v749_v35 }
 0x24e   : > { %946 = vmatmul.f32.gmra.mxu1 %v878_v37  ;;  %v823_v20 = vmul.f32 %v753_v38, %v2001_v52 }
 0x24f   : > { %v757_v39 = vmul.f32 0.5, %v756_v1  ;;  %v615_v40 = vpop.xlane.xlu1 %614 }
 0x250   : > { %v634_v41 = vmul.f32 0.03125, %v615_v40  ;;  %v843_v42 = vmul.f32 %v1990_v27, %v823_v20 }
 0x251   : > { %v758_v43 = vsub.f32 1.5, %v757_v39 }
 0x252   : > { %v1555_v24 = vpop.eup %1554  ;;  %v650_v44 = vadd.f32 1e-05, %v634_v41  ;;  %v863_v31 = vadd.f32 %v1996_v34, %v843_v42 }
 0x253   : > { %v759_v47 = vmul.f32 %v1553_v29, %v758_v43  ;;  %v765_v45 = vmul.f32 %v1555_v24, %v649_v2  ;;  %vm771_vm4 = vweird.f32 %v1555_v24  ;;  %v2086_v2 = vpop.f32.mrf.mxu1 }
 0x254   : > { %1556 = vrsqrt.f32 %v650_v44  ;;  %v879_v48 = vmax.f32 %v863_v31, 0.0  ;;  %vm772_vm6 = vmor %vm770_vm5, %vm771_vm4  ;;  %vm780_vm8 = vweird.f32 %v650_v44 }
 0x255   : > { %v766_v51 = vmul.f32 %v1555_v24, %v765_v45  ;;  %v763_v53 = vsel %vm762_vm3, %v1553_v29, %v759_v47 }
 0x256   : > { %949 = vmatmul.f32.gmra.mxu1 %v879_v48  ;;  %v824_v52 = vmul.f32 %v763_v53, %v2014_v6 }
 0x257   : > { %v767_v55 = vmul.f32 0.5, %v766_v51  ;;  %v617_v10 = vpop.xlane.xlu2 %616 }
 0x258   : > { %v635_v56 = vmul.f32 0.03125, %v617_v10  ;;  %v844_v8 = vmul.f32 %v1990_v27, %v824_v52 }
 0x259   : > { %v768_v57 = vsub.f32 1.5, %v767_v55 }
 0x25a   : > { %v1557_v60 = vpop.eup %1556  ;;  %v651_v28 = vadd.f32 1e-05, %v635_v56  ;;  %v864_v61 = vadd.f32 %v1996_v34, %v844_v8 }
 0x25b   : > { %v769_v62 = vmul.f32 %v1555_v24, %v768_v57  ;;  %v775_v32 = vmul.f32 %v1557_v60, %v650_v44  ;;  %vm781_vm7 = vweird.f32 %v1557_v60  ;;  %v2088_v30 = vpop.f32.mrf.mxu1 }
 0x25c   : > { %1558 = vrsqrt.f32 %v651_v28  ;;  %v880_v63 = vmax.f32 %v864_v61, 0.0  ;;  %vm782_vm9 = vmor %vm780_vm8, %vm781_vm7  ;;  %vm790_vm11 = vweird.f32 %v651_v28 }
 0x25d   : > { %v776_v0 = vmul.f32 %v1557_v60, %v775_v32  ;;  %v773_v4 = vsel %vm772_vm6, %v1555_v24, %v769_v62 }
 0x25e   : > { %952 = vmatmul.f32.gmra.mxu1 %v880_v63  ;;  %v825_v6 = vmul.f32 %v773_v4, %v2023_v33 }
 0x25f   : > { %v777_v5 = vmul.f32 0.5, %v776_v0 }
 0x260   : > { %v845_v7 = vmul.f32 %v1990_v27, %v825_v6 }
 0x261   : > { %v778_v50 = vsub.f32 1.5, %v777_v5 }
 0x262   : > { %v1559_v58 = vpop.eup %1558  ;;  %v865_v11 = vadd.f32 %v1996_v34, %v845_v7 }
 0x263   : > { %v779_v12 = vmul.f32 %v1557_v60, %v778_v50  ;;  %v785_v13 = vmul.f32 %v1559_v58, %v651_v28  ;;  %vm791_vm10 = vweird.f32 %v1559_v58  ;;  %v2090_v35 = vpop.f32.mrf.mxu1 }
 0x264   : > { %v881_v14 = vmax.f32 %v865_v11, 0.0  ;;  %vm792_vm12 = vmor %vm790_vm11, %vm791_vm10 }
 0x265   : > { %v786_v16 = vmul.f32 %v1559_v58, %v785_v13  ;;  %v783_v15 = vsel %vm782_vm9, %v1557_v60, %v779_v12 }
 0x266   : > { %955 = vmatmul.f32.gmra.mxu1 %v881_v14  ;;  %v826_v18 = vmul.f32 %v783_v15, %v2032_v54 }
 0x267   : > { %v787_v17 = vmul.f32 0.5, %v786_v16 }
 0x268   : > { %v846_v33 = vmul.f32 %v1990_v27, %v826_v18 }
 0x269   : > { %v788_v3 = vsub.f32 1.5, %v787_v17 }
 0x26a   : > { %v866_v19 = vadd.f32 %v1996_v34, %v846_v33 }
 0x26b   : > { %v789_v21 = vmul.f32 %v1559_v58, %v788_v3  ;;  %v2092_v23 = vpop.f32.mrf.mxu1 }
 0x26c   : > { %v882_v36 = vmax.f32 %v866_v19, 0.0 }
 0x26d   : > { %v793_v22 = vsel %vm792_vm12, %v1559_v58, %v789_v21  ;;  %v1529_v58 = vld [vmem:[%s2469_s6] ss:$0 sm:$0xff] }
 0x26e   : > { %958 = vmatmul.f32.gmra.mxu1 %v882_v36  ;;  %v827_v59 = vmul.f32 %v793_v22, %v2041_v9  ;;  %v2116_v21 = vadd.f32 %v1529_v58, %v2092_v23 }
 0x270   : > { %v847_v26 = vmul.f32 %v1990_v27, %v827_v59 }
 0x272   : > { %v867_v29 = vadd.f32 %v1996_v34, %v847_v26 }
 0x273   : > { %v935_v37 = vpop.f32.mrf.mxu1 }
 0x274   : > { %v883_v54 = vmax.f32 %v867_v29, 0.0 }
 0x276   : > { %961 = vmatmul.f32.gmra.mxu1 %v883_v54 }
 0x27b   : > { %v2094_v9 = vpop.f32.mrf.mxu1 }
 0x27c   : > { %v939_v3 = vadd.f32 %v1529_v58, %v2094_v9 }
 0x283   : > { %v941_v31 = vpop.f32.mrf.mxu1 }
 0x284   : > { %v942_v36 = vadd.f32 %v1529_v58, %v941_v31 }
 0x2aa   : > { %v619_v1 = vpop.xlane.xlu0 %618 }
 0x2ab   : > { %v636_v38 = vmul.f32 0.03125, %v619_v1 }
 0x2ad   : > { %v652_v20 = vadd.f32 1e-05, %v636_v38 }
 0x2af   : > { %1560 = vrsqrt.f32 %v652_v20  ;;  %vm800_vm14 = vweird.f32 %v652_v20 }
 0x2b2   : > { %v621_v39 = vpop.xlane.xlu1 %620 }
 0x2b3   : > { %v637_v40 = vmul.f32 0.03125, %v621_v39 }
 0x2b5   : > { %v1561_v41 = vpop.eup %1560  ;;  %v653_v42 = vadd.f32 1e-05, %v637_v40 }
 0x2b6   : > { %v795_v43 = vmul.f32 %v1561_v41, %v652_v20  ;;  %vm801_vm13 = vweird.f32 %v1561_v41 }
 0x2b7   : > { %1562 = vrsqrt.f32 %v653_v42  ;;  %vm802_vm15 = vmor %vm800_vm14, %vm801_vm13  ;;  %vm810_vm2 = vweird.f32 %v653_v42 }
 0x2b8   : > { %v796_v24 = vmul.f32 %v1561_v41, %v795_v43 }
 0x2ba   : > { %v797_v44 = vmul.f32 0.5, %v796_v24  ;;  %v2139_v24 = vadd.f32 %v1529_v58, %v2088_v30 }
 0x2bc   : > { %v798_v47 = vsub.f32 1.5, %v797_v44 }
 0x2bd   : > { %v1563_v45 = vpop.eup %1562 }
 0x2be   : > { %v799_v48 = vmul.f32 %v1561_v41, %v798_v47  ;;  %v805_v51 = vmul.f32 %v1563_v45, %v653_v42  ;;  %vm811_vm1 = vweird.f32 %v1563_v45 }
 0x2bf   : > { %vm812_vm3 = vmor %vm810_vm2, %vm811_vm1 }
 0x2c0   : > { %v806_v53 = vmul.f32 %v1563_v45, %v805_v51  ;;  %v803_v52 = vsel %vm802_vm15, %v1561_v41, %v799_v48 }
 0x2c1   : > { %v828_v55 = vmul.f32 %v803_v52, %v2054_v46 }
 0x2c2   : > { %v807_v10 = vmul.f32 0.5, %v806_v53 }
 0x2c3   : > { %v944_v56 = vpop.f32.mrf.mxu1  ;;  %v848_v8 = vmul.f32 %v1990_v27, %v828_v55  ;;  %v2148_v55 = vadd.f32 %v1529_v58, %v2090_v35 }
 0x2c4   : > { %v808_v57 = vsub.f32 1.5, %v807_v10 }
 0x2c5   : > { %v868_v60 = vadd.f32 %v1996_v34, %v848_v8 }
 0x2c6   : > { %v809_v28 = vmul.f32 %v1563_v45, %v808_v57 }
 0x2c7   : > { %v884_v61 = vmax.f32 %v868_v60, 0.0 }
 0x2c8   : > { %v813_v62 = vsel %vm812_vm3, %v1563_v45, %v809_v28 }
 0x2c9   : > { %964 = vmatmul.f32.gmra.mxu1 %v884_v61  ;;  %v829_v32 = vmul.f32 %v813_v62, %v2060_v25 }
 0x2cb   : > { %v947_v63 = vpop.f32.mrf.mxu1  ;;  %v849_v0 = vmul.f32 %v1990_v27, %v829_v32  ;;  %v2108_v27 = vadd.f32 %v1529_v58, %v944_v56 }
 0x2cc   : > { %v948_v17 = vadd.f32 %v1529_v58, %v947_v63 }
 0x2cd   : > { %v869_v46 = vadd.f32 %v1996_v34, %v849_v0  ;;  %v2111_v34 = vadd.f32 %v1529_v58, %v935_v37  ;;  %v2125_v37 = vadd.f32 %v1529_v58, %v2086_v2 }
 0x2cf   : > { %v885_v4 = vmax.f32 %v869_v46, 0.0 }
 0x2d1   : > { %967 = vmatmul.f32.gmra.mxu1 %v885_v4 }
 0x2d3   : > { %v950_v6 = vpop.f32.mrf.mxu1 }
 0x2d4   : > { %v951_v19 = vadd.f32 %v1529_v58, %v950_v6 }
 0x2db   : > { %v953_v5 = vpop.f32.mrf.mxu1 }
 0x2dc   : > { %v2105_v13 = vadd.f32 %v1529_v58, %v953_v5 }
 0x2e3   : > { %v956_v7 = vpop.f32.mrf.mxu1 }
 0x2e4   : > { %v957_v15 = vadd.f32 %v1529_v58, %v956_v7 }
 0x2eb   : > { %v959_v50 = vpop.f32.mrf.mxu1 }
 0x2ec   : > { %v960_v33 = vadd.f32 %v1529_v58, %v959_v50 }
 0x2f3   : > { %v962_v11 = vpop.f32.mrf.mxu1 }
 0x2f4   : > { %v963_v12 = vadd.f32 %v1529_v58, %v962_v11 }
 0x2f6   : > { %997 = vadd.xlane.f32.xlu1 %v963_v12 }
 0x2fe   : > { %991 = vadd.xlane.f32.xlu1 %v2105_v13 }
 0x306   : > { %985 = vadd.xlane.f32.xlu1 %v2108_v27 }
 0x30e   : > { %979 = vadd.xlane.f32.xlu1 %v2111_v34 }
 0x346   : > { %v965_v25 = vpop.f32.mrf.mxu1 }
 0x347   : > { %v966_v14 = vadd.f32 %v1529_v58, %v965_v25 }
 0x349   : > { %999 = vadd.xlane.f32.xlu0 %v966_v14 }
 0x34e   : > { %v968_v16 = vpop.f32.mrf.mxu1 }
 0x34f   : > { %v969_v18 = vadd.f32 %v1529_v58, %v968_v16 }
 0x351   : > { %1001 = vadd.xlane.f32.xlu2 %v969_v18  ;;  %993 = vadd.xlane.f32.xlu0 %v957_v15 }
 0x359   : > { %995 = vadd.xlane.f32.xlu2 %v960_v33  ;;  %987 = vadd.xlane.f32.xlu0 %v948_v17 }
 0x361   : > { %989 = vadd.xlane.f32.xlu2 %v951_v19  ;;  %981 = vadd.xlane.f32.xlu0 %v939_v3 }
 0x369   : > { %v998_v22 = vpop.xlane.xlu1 %997  ;;  %983 = vadd.xlane.f32.xlu2 %v942_v36  ;;  %977 = vadd.xlane.f32.xlu0 %v2116_v21 }
 0x36a   : > { %v1016_v59 = vmul.f32 0.03125, %v998_v22 }
 0x36c   : > { %v2119_v26 = vsub.f32 %v963_v12, %v1016_v59 }
 0x36e   : > { %v1048_v29 = vsel %vm555_vm0, %v2119_v26, 0.0 }
 0x36f   : > { %v1064_v54 = vmul.f32 %v1048_v29, %v1048_v29 }
 0x371   : > { %1093 = vadd.xlane.f32.xlu0 %v1064_v54  ;;  %v992_v53 = vpop.xlane.xlu1 %991 }
 0x372   : > { %v1013_v28 = vmul.f32 0.03125, %v992_v53 }
 0x374   : > { %v2167_v6 = vsub.f32 %v2105_v13, %v1013_v28 }
 0x376   : > { %v1045_v16 = vsel %vm555_vm0, %v2167_v6, 0.0 }
 0x379   : > { %971 = vadd.xlane.f32.xlu0 %v2125_v37  ;;  %v986_v0 = vpop.xlane.xlu1 %985 }
 0x37a   : > { %v1010_v12 = vmul.f32 0.03125, %v986_v0 }
 0x3bc   : > { %v1000_v23 = vpop.xlane.xlu0 %999 }
 0x3bd   : > { %v1017_v1 = vmul.f32 0.03125, %v1000_v23 }
 0x3bf   : > { %v2128_v38 = vsub.f32 %v966_v14, %v1017_v1 }
 0x3c1   : > { %v1049_v20 = vsel %vm555_vm0, %v2128_v38, 0.0 }
 0x3c2   : > { %v1065_v9 = vmul.f32 %v1049_v20, %v1049_v20 }
 0x3c4   : > { %v1002_v39 = vpop.xlane.xlu2 %1001  ;;  %1095 = vadd.xlane.f32.xlu1 %v1065_v9  ;;  %v994_v40 = vpop.xlane.xlu0 %993 }
 0x3c5   : > { %v1018_v41 = vmul.f32 0.03125, %v1002_v39  ;;  %v1014_v43 = vmul.f32 0.03125, %v994_v40 }
 0x3c7   : > { %v2133_v42 = vsub.f32 %v969_v18, %v1018_v41  ;;  %v2141_v31 = vsub.f32 %v957_v15, %v1014_v43  ;;  %v1061_v18 = vmul.f32 %v1045_v16, %v1045_v16 }
 0x3c9   : > { %v1050_v2 = vsel %vm555_vm0, %v2133_v42, 0.0  ;;  %v1046_v51 = vsel %vm555_vm0, %v2141_v31, 0.0 }
 0x3ca   : > { %v1066_v44 = vmul.f32 %v1050_v2, %v1050_v2  ;;  %v1062_v30 = vmul.f32 %v1046_v51, %v1046_v51 }
 0x3cc   : > { %1097 = vadd.xlane.f32.xlu2 %v1066_v44  ;;  %v996_v47 = vpop.xlane.xlu2 %995  ;;  %973 = vadd.xlane.f32.xlu1 %v2139_v24  ;;  %v988_v45 = vpop.xlane.xlu0 %987 }
 0x3cd   : > { %v1015_v48 = vmul.f32 0.03125, %v996_v47  ;;  %v1011_v52 = vmul.f32 0.03125, %v988_v45 }
 0x3cf   : > { %v2150_v10 = vsub.f32 %v960_v33, %v1015_v48  ;;  %v2152_v56 = vsub.f32 %v948_v17, %v1011_v52  ;;  %v2183_v33 = vsub.f32 %v2108_v27, %v1010_v12 }
 0x3d1   : > { %v1047_v62 = vsel %vm555_vm0, %v2150_v10, 0.0  ;;  %v1043_v32 = vsel %vm555_vm0, %v2152_v56, 0.0  ;;  %v1042_v29 = vsel %vm555_vm0, %v2183_v33, 0.0 }
 0x3d2   : > { %v1063_v46 = vmul.f32 %v1047_v62, %v1047_v62  ;;  %v1059_v5 = vmul.f32 %v1043_v32, %v1043_v32  ;;  %v1058_v27 = vmul.f32 %v1042_v29, %v1042_v29 }
 0x3d4   : > { %975 = vadd.xlane.f32.xlu2 %v2148_v55  ;;  %v990_v8 = vpop.xlane.xlu2 %989  ;;  %1089 = vadd.xlane.f32.xlu1 %v1062_v30  ;;  %v982_v57 = vpop.xlane.xlu0 %981 }
 0x3d5   : > { %v1012_v60 = vmul.f32 0.03125, %v990_v8  ;;  %v1008_v35 = vmul.f32 0.03125, %v982_v57 }
 0x3d7   : > { %v2155_v61 = vsub.f32 %v951_v19, %v1012_v60  ;;  %v2169_v7 = vsub.f32 %v939_v3, %v1008_v35 }
 0x3d9   : > { %v1044_v63 = vsel %vm555_vm0, %v2155_v61, 0.0  ;;  %v1040_v13 = vsel %vm555_vm0, %v2169_v7, 0.0 }
 0x3da   : > { %v1060_v4 = vmul.f32 %v1044_v63, %v1044_v63  ;;  %v1056_v19 = vmul.f32 %v1040_v13, %v1040_v13 }
 0x3dc   : > { %1091 = vadd.xlane.f32.xlu2 %v1063_v46  ;;  %v984_v50 = vpop.xlane.xlu2 %983  ;;  %1085 = vadd.xlane.f32.xlu0 %v1060_v4  ;;  %v978_v58 = vpop.xlane.xlu0 %977 }
 0x3dd   : > { %v1009_v11 = vmul.f32 0.03125, %v984_v50  ;;  %1083 = vadd.xlane.f32.xlu1 %v1059_v5  ;;  %v1006_v14 = vmul.f32 0.03125, %v978_v58 }
 0x3df   : > { %v2171_v25 = vsub.f32 %v942_v36, %v1009_v11  ;;  %v2186_v3 = vsub.f32 %v2116_v21, %v1006_v14  ;;  %v980_v36 = vpop.xlane.xlu1 %979 }
 0x3e0   : > { %v1007_v59 = vmul.f32 0.03125, %v980_v36 }
 0x3e1   : > { %v1041_v15 = vsel %vm555_vm0, %v2171_v25, 0.0  ;;  %v1038_v54 = vsel %vm555_vm0, %v2186_v3, 0.0 }
 0x3e2   : > { %v1057_v17 = vmul.f32 %v1041_v15, %v1041_v15  ;;  %v1054_v23 = vmul.f32 %v1038_v54, %v1038_v54  ;;  %v2195_v21 = vsub.f32 %v2111_v34, %v1007_v59 }
 0x3e4   : > { %1087 = vadd.xlane.f32.xlu2 %v1061_v18  ;;  %1079 = vadd.xlane.f32.xlu0 %v1057_v17  ;;  %v1094_v22 = vpop.xlane.xlu0 %1093  ;;  %v1039_v39 = vsel %vm555_vm0, %v2195_v21, 0.0 }
 0x3e5   : > { %1077 = vadd.xlane.f32.xlu1 %v1056_v19  ;;  %v1055_v41 = vmul.f32 %v1039_v39, %v1039_v39  ;;  %v1112_v34 = vmul.f32 0.03125, %v1094_v22 }
 0x3e7   : > { %v2206_v2 = vadd.f32 1e-05, %v1112_v34 }
 0x3e9   : > { %1564 = vrsqrt.f32 %v2206_v2  ;;  %vm1267_vm10 = vweird.f32 %v2206_v2 }
 0x3ec   : > { %1081 = vadd.xlane.f32.xlu2 %v1058_v27  ;;  %1073 = vadd.xlane.f32.xlu0 %v1054_v23  ;;  %v972_v1 = vpop.xlane.xlu0 %971 }
 0x3ed   : > { %v1003_v20 = vmul.f32 0.03125, %v972_v1 }
 0x3ef   : > { %v2198_v9 = vsub.f32 %v2125_v37, %v1003_v20  ;;  %v2209_v45 = vpop.eup %1564 }
 0x3f0   : > { %v1262_v8 = vmul.f32 %v2209_v45, %v2206_v2  ;;  %vm1268_vm5 = vweird.f32 %v2209_v45 }
 0x3f1   : > { %v1035_v40 = vsel %vm555_vm0, %v2198_v9, 0.0  ;;  %vm2260_vm11 = vmor %vm1267_vm10, %vm1268_vm5 }
 0x3f2   : > { %v1051_v43 = vmul.f32 %v1035_v40, %v1035_v40  ;;  %v1263_v63 = vmul.f32 %v2209_v45, %v1262_v8 }
 0x3f4   : > { %1075 = vadd.xlane.f32.xlu2 %v1055_v41  ;;  %1067 = vadd.xlane.f32.xlu0 %v1051_v43  ;;  %v1264_v58 = vmul.f32 0.5, %v1263_v63  ;;  %v2279_v63 = vld [vmem:[%s2471_s8] ss:$0 sm:$0xff] }
 0x3f6   : > { %v1265_v17 = vsub.f32 1.5, %v1264_v58 }
 0x3f8   : > { %v1266_v1 = vmul.f32 %v2209_v45, %v1265_v17 }
 0x3fa   : > { %v1270_v8 = vsel %vm2260_vm11, %v2209_v45, %v1266_v1 }
 0x3fb   : > { %v1304_v45 = vmul.f32 %v1270_v8, %v2119_v26 }
 0x437   : > { %v1096_v44 = vpop.xlane.xlu1 %1095 }
 0x438   : > { %v1113_v47 = vmul.f32 0.03125, %v1096_v44 }
 0x43a   : > { %v1129_v37 = vadd.f32 1e-05, %v1113_v47 }
 0x43c   : > { %1566 = vrsqrt.f32 %v1129_v37 }
 0x43f   : > { %v1098_v48 = vpop.xlane.xlu2 %1097  ;;  %v974_v51 = vpop.xlane.xlu1 %973 }
 0x440   : > { %v1114_v53 = vmul.f32 0.03125, %v1098_v48  ;;  %v1004_v52 = vmul.f32 0.03125, %v974_v51 }
 0x442   : > { %v2211_v30 = vpop.eup %1566  ;;  %v1130_v57 = vadd.f32 1e-05, %v1114_v53  ;;  %v2216_v60 = vsub.f32 %v2139_v24, %v1004_v52  ;;  %v2269_v53 = vld [vmem:[%s2470_s7] ss:$0 sm:$0xff] }
 0x443   : > { %v1272_v28 = vmul.f32 %v2211_v30, %v1129_v37  ;;  %vm1278_vm4 = vweird.f32 %v2211_v30 }
 0x444   : > { %1568 = vrsqrt.f32 %v1130_v57  ;;  %v1036_v62 = vsel %vm555_vm0, %v2216_v60, 0.0  ;;  %vm1287_vm8 = vweird.f32 %v1130_v57 }
 0x445   : > { %v1273_v35 = vmul.f32 %v2211_v30, %v1272_v28  ;;  %v1052_v32 = vmul.f32 %v1036_v62, %v1036_v62 }
 0x447   : > { %v976_v0 = vpop.xlane.xlu2 %975  ;;  %1069 = vadd.xlane.f32.xlu2 %v1052_v32  ;;  %v1090_v46 = vpop.xlane.xlu1 %1089  ;;  %v1274_v4 = vmul.f32 0.5, %v1273_v35 }
 0x448   : > { %v1005_v5 = vmul.f32 0.03125, %v976_v0  ;;  %v1110_v50 = vmul.f32 0.03125, %v1090_v46 }
 0x449   : > { %v1275_v16 = vsub.f32 1.5, %v1274_v4 }
 0x44a   : > { %v1569_v24 = vpop.eup %1568  ;;  %v2225_v11 = vsub.f32 %v2148_v55, %v1005_v5  ;;  %v2227_v12 = vadd.f32 1e-05, %v1110_v50 }
 0x44b   : > { %v1282_v14 = vmul.f32 %v1569_v24, %v1130_v57  ;;  %v1276_v55 = vmul.f32 %v2211_v30, %v1275_v16  ;;  %vm1288_vm6 = vweird.f32 %v1569_v24 }
 0x44c   : > { %1570 = vrsqrt.f32 %v2227_v12  ;;  %v1037_v13 = vsel %vm555_vm0, %v2225_v11, 0.0  ;;  %vm1277_vm0 = vweird.f32 %v1129_v37  ;;  %vm1289_vm9 = vmor %vm1287_vm8, %vm1288_vm6  ;;  %vm1247_vm13 = vweird.f32 %v2227_v12 }
 0x44d   : > { %v1283_v15 = vmul.f32 %v1569_v24, %v1282_v14  ;;  %v1053_v18 = vmul.f32 %v1037_v13, %v1037_v13  ;;  %vm2243_vm7 = vmor %vm1277_vm0, %vm1278_vm4 }
 0x44e   : > { %v1280_v44 = vsel %vm2243_vm7, %v2211_v30, %v1276_v55 }
 0x44f   : > { %v1284_v19 = vmul.f32 0.5, %v1283_v15  ;;  %v1092_v36 = vpop.xlane.xlu2 %1091  ;;  %1071 = vadd.xlane.f32.xlu1 %v1053_v18  ;;  %v1086_v22 = vpop.xlane.xlu0 %1085  ;;  %v1305_v30 = vmul.f32 %v1280_v44, %v2128_v38  ;;  %v1324_v18 = vmul.f32 %v2269_v53, %v1304_v45 }
 0x450   : > { %v1111_v59 = vmul.f32 0.03125, %v1092_v36  ;;  %v1084_v29 = vpop.xlane.xlu1 %1083  ;;  %v1108_v54 = vmul.f32 0.03125, %v1086_v22 }
 0x451   : > { %v1285_v27 = vsub.f32 1.5, %v1284_v19  ;;  %v1107_v49 = vmul.f32 0.03125, %v1084_v29  ;;  %v1325_v58 = vmul.f32 %v2269_v53, %v1305_v30  ;;  %v1344_v44 = vadd.f32 %v2279_v63, %v1324_v18 }
 0x452   : > { %v2236_v23 = vpop.eup %1570  ;;  %v2239_v20 = vadd.f32 1e-05, %v1111_v59  ;;  %v2241_v39 = vadd.f32 1e-05, %v1108_v54 }
 0x453   : > { %v1242_v41 = vmul.f32 %v2236_v23, %v2227_v12  ;;  %v2249_v43 = vadd.f32 1e-05, %v1107_v49  ;;  %v1286_v34 = vmul.f32 %v1569_v24, %v1285_v27  ;;  %v1345_v59 = vadd.f32 %v2279_v63, %v1325_v58 }
 0x454   : > { %1572 = vrsqrt.f32 %v2239_v20  ;;  %vm1248_vm12 = vweird.f32 %v2236_v23  ;;  %vm1257_vm1 = vweird.f32 %v2239_v20  ;;  %vm1227_vm5 = vweird.f32 %v2241_v39 }
 0x455   : > { %v1243_v47 = vmul.f32 %v2236_v23, %v1242_v41  ;;  %1574 = vrsqrt.f32 %v2249_v43  ;;  %v1290_v37 = vsel %vm1289_vm9, %v1569_v24, %v1286_v34  ;;  %vm2318_vm14 = vmor %vm1247_vm13, %vm1248_vm12  ;;  %vm1217_vm9 = vweird.f32 %v2249_v43 }
 0x456   : > { %1576 = vrsqrt.f32 %v2241_v39  ;;  %v1306_v51 = vmul.f32 %v1290_v37, %v2133_v42 }
 0x457   : > { %v1088_v2 = vpop.xlane.xlu2 %1087  ;;  %v1080_v52 = vpop.xlane.xlu0 %1079  ;;  %v1244_v57 = vmul.f32 0.5, %v1243_v47 }
 0x458   : > { %v1109_v28 = vmul.f32 0.03125, %v1088_v2  ;;  %v1078_v62 = vpop.xlane.xlu1 %1077  ;;  %v1105_v35 = vmul.f32 0.03125, %v1080_v52  ;;  %v1326_v32 = vmul.f32 %v2269_v53, %v1306_v51  ;;  %v1361_v2 = vmax.f32 %v1345_v59, 0.0 }
 0x459   : > { %v1104_v42 = vmul.f32 0.03125, %v1078_v62  ;;  %v1245_v16 = vsub.f32 1.5, %v1244_v57 }
 0x45a   : > { %v2281_v0 = vpop.eup %1572  ;;  %v2283_v46 = vadd.f32 1e-05, %v1109_v28  ;;  %v2285_v38 = vadd.f32 1e-05, %v1105_v35  ;;  %v1346_v24 = vadd.f32 %v2279_v63, %v1326_v32  ;;  %v1360_v35 = vmax.f32 %v1344_v44, 0.0 }
 0x45b   : > { %v2288_v4 = vpop.eup %1574  ;;  %v1252_v5 = vmul.f32 %v2281_v0, %v2239_v20  ;;  %v2292_v50 = vadd.f32 1e-05, %v1104_v42  ;;  %v1246_v29 = vmul.f32 %v2236_v23, %v1245_v16  ;;  %vm1258_vm15 = vweird.f32 %v2281_v0 }
 0x45c   : > { %v2296_v14 = vpop.eup %1576  ;;  %1578 = vrsqrt.f32 %v2283_v46  ;;  %v1212_v26 = vmul.f32 %v2288_v4, %v2249_v43  ;;  %v1362_v36 = vmax.f32 %v1346_v24, 0.0  ;;  %vm1259_vm2 = vmor %vm1257_vm1, %vm1258_vm15  ;;  %vm1237_vm0 = vweird.f32 %v2283_v46 }
 0x45d   : > { %v1253_v13 = vmul.f32 %v2281_v0, %v1252_v5  ;;  %v1222_v15 = vmul.f32 %v2296_v14, %v2241_v39  ;;  %1580 = vrsqrt.f32 %v2292_v50  ;;  %v1250_v30 = vsel %vm2318_vm14, %v2236_v23, %v1246_v29 }
 0x45e   : > { %1582 = vrsqrt.f32 %v2285_v38  ;;  %v1213_v1 = vmul.f32 %v2288_v4, %v1212_v26  ;;  %1371 = vmatpush.xpose.msra.mxu2 %v1362_v36  ;;  %v1302_v5 = vmul.f32 %v1250_v30, %v2141_v31  ;;  %vm1228_vm3 = vweird.f32 %v2296_v14 }
 0x45f   : > { %v1254_v17 = vmul.f32 0.5, %v1253_v13  ;;  %v1223_v19 = vmul.f32 %v2296_v14, %v1222_v15  ;;  %v1082_v22 = vpop.xlane.xlu2 %1081  ;;  %v1074_v55 = vpop.xlane.xlu0 %1073  ;;  %vm2351_vm6 = vmor %vm1227_vm5, %vm1228_vm3  ;;  %vm1218_vm7 = vweird.f32 %v2288_v4  ;;  %vm1197_vm15 = vweird.f32 %v2285_v38 }
 0x460   : > { %v1106_v54 = vmul.f32 0.03125, %v1082_v22  ;;  %v1102_v27 = vmul.f32 0.03125, %v1074_v55  ;;  %v1214_v8 = vmul.f32 0.5, %v1213_v1  ;;  %vm2369_vm10 = vmor %vm1217_vm9, %vm1218_vm7  ;;  %vm1187_vm3 = vweird.f32 %v2292_v50 }
 0x461   : > { %v1255_v49 = vsub.f32 1.5, %v1254_v17  ;;  %v1224_v40 = vmul.f32 0.5, %v1223_v19 }
 0x462   : > { %v1579_v41 = vpop.eup %1578  ;;  %v2313_v34 = vadd.f32 1e-05, %v1106_v54  ;;  %v2329_v12 = vadd.f32 1e-05, %v1102_v27  ;;  %1372 = vmatpush.xpose.msra.mxu2 %v1361_v2  ;;  %v1215_v16 = vsub.f32 1.5, %v1214_v8 }
 0x463   : > { %v2316_v47 = vpop.eup %1580  ;;  %v1256_v48 = vmul.f32 %v2281_v0, %v1255_v49  ;;  %v1232_v51 = vmul.f32 %v1579_v41, %v2283_v46  ;;  %v1225_v57 = vsub.f32 1.5, %v1224_v40  ;;  %vm1238_vm4 = vweird.f32 %v1579_v41 }
 0x464   : > { %v2325_v52 = vpop.eup %1582  ;;  %1584 = vrsqrt.f32 %v2313_v34  ;;  %v1182_v20 = vmul.f32 %v2316_v47, %v2292_v50  ;;  %v1216_v55 = vmul.f32 %v2288_v4, %v1215_v16  ;;  %vm1239_vm8 = vmor %vm1237_vm0, %vm1238_vm4  ;;  %vm1207_vm13 = vweird.f32 %v2313_v34 }
 0x465   : > { %v1233_v28 = vmul.f32 %v1579_v41, %v1232_v51  ;;  %v1192_v62 = vmul.f32 %v2325_v52, %v2285_v38  ;;  %v1260_v45 = vsel %vm1259_vm2, %v2281_v0, %v1256_v48  ;;  %1586 = vrsqrt.f32 %v2329_v12 }
 0x466   : > { %v1303_v58 = vmul.f32 %v1260_v45, %v2150_v10  ;;  %v1226_v13 = vmul.f32 %v2296_v14, %v1225_v57  ;;  %1373 = vmatpush.xpose.msra.mxu2 %v1360_v35  ;;  %v1322_v10 = vmul.f32 %v2269_v53, %v1302_v5  ;;  %v1183_v36 = vmul.f32 %v2316_v47, %v1182_v20 }
 0x467   : > { %v1234_v32 = vmul.f32 0.5, %v1233_v28  ;;  %v1076_v42 = vpop.xlane.xlu2 %1075  ;;  %v1193_v23 = vmul.f32 %v2325_v52, %v1192_v62  ;;  %v1220_v2 = vsel %vm2369_vm10, %v2288_v4, %v1216_v55  ;;  %vm1198_vm12 = vweird.f32 %v2325_v52  ;;  %v1068_v40 = vpop.xlane.xlu0 %1067 }
 0x468   : > { %v1103_v24 = vmul.f32 0.03125, %v1076_v42  ;;  %v1323_v31 = vmul.f32 %v2269_v53, %v1303_v58  ;;  %v1230_v59 = vsel %vm2351_vm6, %v2296_v14, %v1226_v13  ;;  %v1342_v49 = vadd.f32 %v2279_v63, %v1322_v10  ;;  %vm1199_vm2 = vmor %vm1197_vm15, %vm1198_vm12 }
 0x469   : > { %v1235_v26 = vsub.f32 1.5, %v1234_v32  ;;  %v1194_v22 = vmul.f32 0.5, %v1193_v23  ;;  %v1184_v44 = vmul.f32 0.5, %v1183_v36  ;;  %v1300_v14 = vmul.f32 %v1230_v59, %v2155_v61 }
 0x46a   : > { %v1585_v15 = vpop.eup %1584  ;;  %v2345_v18 = vadd.f32 1e-05, %v1103_v24  ;;  %v1343_v54 = vadd.f32 %v2279_v63, %v1323_v31  ;;  %v1358_v8 = vmax.f32 %v1342_v49, 0.0  ;;  %v1299_v62 = vmul.f32 %v1220_v2, %v2152_v56 }
 0x46b   : > { %v1236_v0 = vmul.f32 %v1579_v41, %v1235_v26  ;;  %v1202_v17 = vmul.f32 %v1585_v15, %v2313_v34  ;;  %v2363_v29 = vpop.eup %1586  ;;  %v1195_v37 = vsub.f32 1.5, %v1194_v22  ;;  %vm1208_vm11 = vweird.f32 %v1585_v15 }
 0x46c   : > { %1588 = vrsqrt.f32 %v2345_v18  ;;  %v1359_v48 = vmax.f32 %v1343_v54, 0.0  ;;  %v1320_v28 = vmul.f32 %v2269_v53, %v1300_v14  ;;  %v1185_v35 = vsub.f32 1.5, %v1184_v44  ;;  %vm1209_vm14 = vmor %vm1207_vm13, %vm1208_vm11 }
 0x46d   : > { %v1203_v39 = vmul.f32 %v1585_v15, %v1202_v17  ;;  %v1240_v46 = vsel %vm1239_vm8, %v1579_v41, %v1236_v0  ;;  %v1162_v41 = vmul.f32 %v2363_v29, %v2329_v12  ;;  %v1196_v4 = vmul.f32 %v2325_v52, %v1195_v37 }
 0x46e   : > { %v1301_v1 = vmul.f32 %v1240_v46, %v2167_v6  ;;  %1374 = vmatpush.xpose.msra.mxu2 %v1359_v48  ;;  %vm1188_vm1 = vweird.f32 %v2316_v47  ;;  %v1340_v56 = vadd.f32 %v2279_v63, %v1320_v28  ;;  %v1319_v5 = vmul.f32 %v2269_v53, %v1299_v62 }
 0x46f   : > { %v1204_v27 = vmul.f32 0.5, %v1203_v39  ;;  %v1163_v32 = vmul.f32 %v2363_v29, %v1162_v41  ;;  %v1186_v24 = vmul.f32 %v2316_v47, %v1185_v35  ;;  %v1200_v13 = vsel %vm1199_vm2, %v2325_v52, %v1196_v4  ;;  %vm1189_vm4 = vmor %vm1187_vm3, %vm1188_vm1  ;;  %v1364_v4 = vld [vmem:[#allocation2] sm:$0x1] }
 0x470   : > { %v1321_v43 = vmul.f32 %v2269_v53, %v1301_v1  ;;  %v1356_v38 = vmax.f32 %v1340_v56, 0.0  ;;  %v1339_v26 = vadd.f32 %v2279_v63, %v1319_v5  ;;  %v1297_v31 = vmul.f32 %v1200_v13, %v2171_v25 }
 0x471   : > { %v1205_v51 = vsub.f32 1.5, %v1204_v27  ;;  %v1164_v58 = vmul.f32 0.5, %v1163_v32  ;;  %vm1177_vm6 = vweird.f32 %v2345_v18  ;;  %vm1168_vm7 = vweird.f32 %v2363_v29 }
 0x472   : > { %v1589_v6 = vpop.eup %1588  ;;  %v1341_v57 = vadd.f32 %v2279_v63, %v1321_v43  ;;  %1375 = vmatpush.xpose.msra.mxu2 %v1358_v8  ;;  %v1355_v52 = vmax.f32 %v1339_v26, 0.0  ;;  %v1317_v10 = vmul.f32 %v2269_v53, %v1297_v31  ;;  %vm1167_vm8 = vweird.f32 %v2329_v12 }
 0x473   : > { %v1206_v30 = vmul.f32 %v1585_v15, %v1205_v51  ;;  %v1172_v61 = vmul.f32 %v1589_v6, %v2345_v18  ;;  %v1165_v0 = vsub.f32 1.5, %v1164_v58  ;;  %vm1178_vm5 = vweird.f32 %v1589_v6  ;;  %vm1169_vm9 = vmor %vm1167_vm8, %vm1168_vm7 }
 0x474   : > { %v1357_v42 = vmax.f32 %v1341_v57, 0.0  ;;  %vm1179_vm0 = vmor %vm1177_vm6, %vm1178_vm5  ;;  %v1337_v18 = vadd.f32 %v2279_v63, %v1317_v10  ;;  %v1099_v44 = vmul.f32 0.03125, %v1068_v40 }
 0x475   : > { %v1173_v20 = vmul.f32 %v1589_v6, %v1172_v61  ;;  %v1210_v45 = vsel %vm1209_vm14, %v1585_v15, %v1206_v30  ;;  %v1166_v36 = vmul.f32 %v2363_v29, %v1165_v0 }
 0x476   : > { %v1298_v23 = vmul.f32 %v1210_v45, %v2183_v33  ;;  %1376 = vmatpush.xpose.msra.mxu2 %v1357_v42  ;;  %v1190_v33 = vsel %vm1189_vm4, %v2316_v47, %v1186_v24  ;;  %v1115_v37 = vadd.f32 1e-05, %v1099_v44 }
 0x477   : > { %v1174_v34 = vmul.f32 0.5, %v1173_v20  ;;  %v1296_v19 = vmul.f32 %v1190_v33, %v2169_v7  ;;  %v1170_v39 = vsel %vm1169_vm9, %v2363_v29, %v1166_v36  ;;  %v1353_v7 = vmax.f32 %v1337_v18, 0.0  ;;  %v1363_v36 = vld [vmem:[%s2472_s9] sm:$0x1] }
 0x478   : > { %v1318_v15 = vmul.f32 %v2269_v53, %v1298_v23  ;;  %v1294_v46 = vmul.f32 %v1170_v39, %v2186_v3  ;;  %1590 = vrsqrt.f32 %v1115_v37  ;;  %v1660_v20 = vmov 0  }
 0x479   : > { %v1175_v16 = vsub.f32 1.5, %v1174_v34  ;;  %v1316_v22 = vmul.f32 %v2269_v53, %v1296_v19  ;;  %1524 = vset.pattern.permute.xlu1 %v1660_v20  ;;  %1525 = vset.pattern.permute.xlu0 %v1660_v20  ;;  %vm1137_vm15 = vweird.f32 %v1115_v37 }
 0x47a   : > { %1377 = vmatpush.xpose.msra.mxu2 %v1356_v38  ;;  %v1338_v50 = vadd.f32 %v2279_v63, %v1318_v15  ;;  %v1314_v49 = vmul.f32 %v2269_v53, %v1294_v46  ;;  %1367 = vperm.xlu1 %1524, %v1364_v4  }
 0x47b   : > { %v1176_v17 = vmul.f32 %v1589_v6, %v1175_v16  ;;  %v1336_v59 = vadd.f32 %v2279_v63, %v1316_v22 }
 0x47c   : > { %v1354_v47 = vmax.f32 %v1338_v50, 0.0 }
 0x47d   : > { %v1180_v25 = vsel %vm1179_vm0, %v1589_v6, %v1176_v17  ;;  %v1352_v12 = vmax.f32 %v1336_v59, 0.0 }
 0x47e   : > { %1378 = vmatpush.xpose.msra.mxu2 %v1355_v52  ;;  %v1295_v55 = vmul.f32 %v1180_v25, %v2195_v21  ;;  %v1334_v21 = vadd.f32 %v2279_v63, %v1314_v49  ;;  %v1591_v51 = vpop.eup %1590 }
 0x47f   : > { %v1132_v2 = vmul.f32 %v1591_v51, %v1115_v37  ;;  %vm1138_vm12 = vweird.f32 %v1591_v51 }
 0x480   : > { %v1315_v54 = vmul.f32 %v2269_v53, %v1295_v55  ;;  %v1350_v29 = vmax.f32 %v1334_v21, 0.0  ;;  %vm1139_vm1 = vmor %vm1137_vm15, %vm1138_vm12 }
 0x481   : > { %v1133_v8 = vmul.f32 %v1591_v51, %v1132_v2 }
 0x482   : > { %1379 = vmatpush.xpose.msra.mxu2 %v1354_v47  ;;  %v1335_v27 = vadd.f32 %v2279_v63, %v1315_v54 }
 0x483   : > { %v1134_v62 = vmul.f32 0.5, %v1133_v8 }
 0x484   : > { %v1351_v1 = vmax.f32 %v1335_v27, 0.0 }
 0x485   : > { %v1135_v45 = vsub.f32 1.5, %v1134_v62 }
 0x486   : > { %1380 = vmatpush.xpose.msra.mxu2 %v1353_v7 }
 0x487   : > { %v1136_v23 = vmul.f32 %v1591_v51, %v1135_v45 }
 0x489   : > { %v1140_v26 = vsel %vm1139_vm1, %v1591_v51, %v1136_v23 }
 0x48a   : > { %1381 = vmatpush.xpose.msra.mxu2 %v1352_v12  ;;  %v1291_v17 = vmul.f32 %v1140_v26, %v2198_v9 }
 0x48c   : > { %v1311_v10 = vmul.f32 %v2269_v53, %v1291_v17 }
 0x48e   : > { %1382 = vmatpush.xpose.msra.mxu2 %v1351_v1  ;;  %v1331_v19 = vadd.f32 %v2279_v63, %v1311_v10 }
 0x492   : > { %1383 = vmatpush.xpose.msra.mxu2 %v1350_v29 }
 0x4ba   : > { %v1070_v48 = vpop.xlane.xlu2 %1069 }
 0x4bb   : > { %v1100_v14 = vmul.f32 0.03125, %v1070_v48 }
 0x4bd   : > { %v1116_v3 = vadd.f32 1e-05, %v1100_v14 }
 0x4bf   : > { %1592 = vrsqrt.f32 %v1116_v3  ;;  %vm1147_vm11 = vweird.f32 %v1116_v3 }
 0x4c2   : > { %v1072_v41 = vpop.xlane.xlu1 %1071 }
 0x4c3   : > { %v1101_v43 = vmul.f32 0.03125, %v1072_v41 }
 0x4c5   : > { %v1593_v6 = vpop.eup %1592  ;;  %v1117_v30 = vadd.f32 1e-05, %v1101_v43 }
 0x4c6   : > { %v1142_v61 = vmul.f32 %v1593_v6, %v1116_v3  ;;  %vm1148_vm10 = vweird.f32 %v1593_v6 }
 0x4c7   : > { %1594 = vrsqrt.f32 %v1117_v30  ;;  %vm1149_vm13 = vmor %vm1147_vm11, %vm1148_vm10  ;;  %vm1157_vm2 = vweird.f32 %v1117_v30 }
 0x4c8   : > { %v1143_v57 = vmul.f32 %v1593_v6, %v1142_v61 }
 0x4ca   : > { %v1144_v28 = vmul.f32 0.5, %v1143_v57 }
 0x4cc   : > { %v1145_v35 = vsub.f32 1.5, %v1144_v28 }
 0x4cd   : > { %v1595_v32 = vpop.eup %1594 }
 0x4ce   : > { %v1152_v42 = vmul.f32 %v1595_v32, %v1117_v30  ;;  %v1146_v34 = vmul.f32 %v1593_v6, %v1145_v35  ;;  %vm1158_vm14 = vweird.f32 %v1595_v32 }
 0x4cf   : > { %vm1159_vm3 = vmor %vm1157_vm2, %vm1158_vm14 }
 0x4d0   : > { %v1153_v56 = vmul.f32 %v1595_v32, %v1152_v42  ;;  %v1150_v58 = vsel %vm1149_vm13, %v1593_v6, %v1146_v34 }
 0x4d1   : > { %v1292_v13 = vmul.f32 %v1150_v58, %v2216_v60 }
 0x4d2   : > { %v1154_v5 = vmul.f32 0.5, %v1153_v56 }
 0x4d3   : > { %v1312_v0 = vmul.f32 %v2269_v53, %v1292_v13 }
 0x4d4   : > { %v1155_v24 = vsub.f32 1.5, %v1154_v5 }
 0x4d5   : > { %v1332_v50 = vadd.f32 %v2279_v63, %v1312_v0 }
 0x4d6   : > { %v1156_v16 = vmul.f32 %v1595_v32, %v1155_v24 }
 0x4d7   : > { %v1348_v60 = vmax.f32 %v1332_v50, 0.0 }
 0x4d8   : > { %v1160_v38 = vsel %vm1159_vm3, %v1595_v32, %v1156_v16 }
 0x4d9   : > { %v1293_v15 = vmul.f32 %v1160_v38, %v2225_v11  ;;  %v1347_v11 = vmax.f32 %v1331_v19, 0.0 }
 0x4db   : > { %v1313_v31 = vmul.f32 %v2269_v53, %v1293_v15 }
 0x4dd   : > { %v1333_v33 = vadd.f32 %v2279_v63, %v1313_v31 }
 0x4df   : > { %v1349_v52 = vmax.f32 %v1333_v33, 0.0 }
 0x4e1   : > { %1384 = vmatpush.xpose.msra.mxu2 %v1349_v52 }
 0x4e5   : > { %1385 = vmatpush.xpose.msra.mxu2 %v1348_v60 }
 0x4e9   : > { %1386 = vmatpush.xpose.msra.mxu2 %v1347_v11 }
 0x4ec   : > { %1387 = vmatmul.f32.vlgmr.msra.gmra.mxu2 %v1363_v36  ;;  %v1368_v9 = vpop.permute.xlu1 %1367 }
 0x4ed   : > { %v1370_v53 = vperm.slane %v1368_v9, 0 }
 0x56f   : > { %v1388_v63 = vpop.f32.mrf.mxu2 }
 0x570   : > { %v1389_v25 = vadd.f32 %v1388_v63, %v1370_v53 }
 0x572   : > { %1391 = vst [vmem:[%s381_s30] sm:$0x1] %v1389_v25 }
 0x573   : > { %1623 = shalt.err (!%p1620_p3)
}
 0x574   : > { %1484 = dma.vmem_to_hbm [thread:$0]  (%p1762_p5), %s1404_s12, 16, %s1406_s13, %s1393_s16  }
 0x575 PF: > { %p1490_p4 = scmp.ge.s32.totalorder %s1658_s22, 2  ;;  %s1417_s18 = sand.u32 1, %s1646_s19  }
 0x576   : > { %s1418_s26 = scalar_lea.sflag [#allocation4], %s1417_s18 }
 0x577   : > { %p1487_p7 = pnand %p1490_p4, %p1766_p6 }
 0x579   : > { %p1488_p8 = pneg %p1487_p7 }
 0x57b   : > { %1641 = dma.done.wait (%p1488_p8), %s1418_s26, 16  }
 0x57c   : > { %1643 = vsyncadd (%p1488_p8), %s1418_s26, 4294967280  ;;  %p23_p9 = scmp.ge.s32.totalorder %s1749_s24, 4   ;;  %s2489_s19 = smov %s1650_s20 }
 0x57d   : > { %s2490_s20 = smov %s1654_s21  ;;  %s2491_s21 = smov %s1760_s27 }
 0x57e   : > { %s2492_s22 = smov %s1749_s24  ;;  %25 = sbr.rel (!%p23_p9) target bundleno = 6 (0x6), region = 99 }
 0x583   :  { %1423 = vsyncpa [#allocation4], 1 }
 0x584   :  { %1425 = vsyncpa [#allocation4 + $0x1], 1 }

// kernel: deep_learning_regressor_forward.1
= control target key start
LH: loop header
LB: loop body
LE: loop exit
PB: predicated region body
PF: predicated region fallthrough
CT: control target
= control target key end

     0   :  { %s2463_s0 = inlined_call_operand.vmem [shape: f32[256,128], index: 0, kind: input, shape index: {}]   ;;  %s2464_s1 = inlined_call_operand.vmem [shape: f32[128,128], index: 1, kind: input, shape index: {}]   ;;  %s2465_s2 = inlined_call_operand.vmem [shape: f32[1,128], index: 2, kind: input, shape index: {}]   ;;  %s2466_s3 = inlined_call_operand.vmem [shape: f32[1,128], index: 3, kind: input, shape index: {}]   ;;  %s2467_s4 = inlined_call_operand.vmem [shape: f32[1,128], index: 4, kind: input, shape index: {}]   ;;  %s2468_s5 = inlined_call_operand.vmem [shape: f32[128,128], index: 5, kind: input, shape index: {}]   ;;  %s2469_s6 = inlined_call_operand.vmem [shape: f32[1,128], index: 6, kind: input, shape index: {}]   ;;  %s2470_s7 = inlined_call_operand.vmem [shape: f32[1,128], index: 7, kind: input, shape index: {}]   ;;  %s2471_s8 = inlined_call_operand.vmem [shape: f32[1,128], index: 8, kind: input, shape index: {}]   ;;  %s2472_s9 = inlined_call_operand.vmem [shape: f32[1,128], index: 9, kind: input, shape index: {}]   ;;  %s2473_s10 = inlined_call_operand.<no memory space> [shape: f32[1,1], index: 10, kind: input, shape index: {}]   ;;  %s2474_s11 = inlined_call_operand.hbm [shape: f32[1,256], index: 11, kind: output, shape index: {}]  }
   0x1   :  { %2475 = sst [smem:[#allocation6_spill]] %s2463_s0  ;;  %v16_v0 = vstv %s2473_s10 }
   0x2   :  { %17 = vst [vmem:[#allocation2] sm:$0x1] %v16_v0 }
   0x3   :  { %18 = vsyncpa [#allocation4], 0 }
   0x4   :  { %20 = vsyncpa [#allocation4 + $0x1], 0  ;;  %s1724_s19 = smov 0   ;;  %s1726_s20 = smov 0  }
   0x5   :  { %s1728_s21 = smov 0   ;;  %s1730_s22 = smov 0  }
   0x6 LB: > { %s1745_s10 = sadd.s32 4294967295, %s1658_s22   ;;  %s1460_s23 = sadd.s32 4294967294, %s1658_s22   ;;  %s1658_s22 = sphi %s1730_s22, %s2492_s22   ;;  %s1654_s21 = sphi %s1728_s21, %s2491_s21   ;;  %s1650_s20 = sphi %s1726_s20, %s2490_s20   ;;  %s1646_s19 = sphi %s1724_s19, %s2489_s19  }
   0x7   : > { %s1749_s24 = sadd.s32 1, %s1658_s22   ;;  %s269_s25 = sadd.s32 1, %s1654_s21 }
   0x8   : > { %s266_s26 = ssub.s32 %s1658_s22, %s1749_s24  ;;  %p279_p0 = scmp.ne.s32.totalorder %s1654_s21, %s1650_s20 }
   0x9   : > { %p267_p1 = scmp.eq.s32.totalorder %s266_s26, 0  ;;  %p280_p2 = scmp.eq.s32.totalorder %s1745_s10, 1 }
   0xa   : > { %p285_p3 = scmp.ne.s32.totalorder %s1650_s20, %s1646_s19  ;;  %p286_p4 = scmp.eq.s32.totalorder %s1460_s23, 1 }
   0xb   : > { %s1760_s27 = scalar_select %p267_p1, %s1654_s21, %s269_s25  }
   0xc   : > { %p1762_p5 = por %p280_p2, %p279_p0  ;;  %p1766_p6 = por %p286_p4, %p285_p3 }
   0xd   : > { %p1463_p7 = scmp.ge.s32.totalorder %s1658_s22, 1  ;;  %p343_p8 = scmp.lt.s32.totalorder %s1658_s22, 3 }
   0xf   : > { %p344_p9 = pnand %p1463_p7, %p343_p8 }
  0x10   : > { %s1464_s16 = sshll.u32 (!%p344_p9), %s1745_s10, 4  ;;  %s2478_s0 = sld [smem:[#allocation6_spill]] (!%p344_p9) }
  0x11   : > { %347 = sbr.rel (%p344_p9) target bundleno = 1397 (0x575), region = 64  ;;  %p383_p10 = scmp.lt.s32.totalorder (!%p344_p9), %s1464_s16, 31 }
  0x12   : > { %s380_s18 = sand.u32 (!%p344_p9), 1, %s1650_s20   ;;  %s1401_s26 = scalar_lea.hbm (!%p344_p9), %s2474_s11, %s1745_s10 }
  0x13   : > { %s381_s30 = scalar_lea.vmem (!%p344_p9), [#allocation3], %s380_s18  ;;  %s1616_s10 = scalar_lea.hbm (!%p344_p9), %s2474_s11, 2 }
  0x14   : > { %s1403_s12 = sshll.u32 (!%p344_p9), %s381_s30, 4  ;;  %s1404_s12 = int_to_ptr.vmem [resolvable:$true] %s1403_s12 }
  0x16   : > { %v419_v1 = vld [vmem:[%s2464_s1 + $0x78] sm:$0xff]  ;;  %v418_v2 = vld [vmem:[%s2464_s1 + $0x70] sm:$0xff]  ;;  %v417_v3 = vld [vmem:[%s2464_s1 + $0x68] sm:$0xff]  ;;  %s2494_s16 = smov (!%p383_p10, %s1464_s16), 31  ;;  %v553_v48 = vlaneseq }
  0x17   : > { %424 = vmatpush.msra.mxu0 %v419_v1  ;;  %1468 = vmatpush.msra.mxu3 %v419_v1  ;;  %v416_v4 = vld [vmem:[%s2464_s1 + $0x60] sm:$0xff]  ;;  %v415_v5 = vld [vmem:[%s2464_s1 + $0x58] sm:$0xff]  ;;  %v414_v6 = vld [vmem:[%s2464_s1 + $0x50] sm:$0xff]  ;;  %s1465_s17 = sshll.u32 %s2494_s16, 3  ;;  %s1393_s16 = scalar_lea.sflag [#allocation4], %s380_s18 }
  0x18   : > { %v413_v7 = vld [vmem:[%s2464_s1 + $0x48] sm:$0xff]  ;;  %v412_v8 = vld [vmem:[%s2464_s1 + $0x40] sm:$0xff]  ;;  %v411_v9 = vld [vmem:[%s2464_s1 + $0x38] sm:$0xff]  ;;  %s1821_s13 = scalar_lea.vmem %s2478_s0, %s1465_s17  ;;  %v1857_v49 = vand.u32 127, %v553_v48 }
  0x19   : > { %425 = vmatpush.msra.mxu0 %v418_v2  ;;  %1469 = vmatpush.msra.mxu3 %v418_v2  ;;  %v410_v10 = vld [vmem:[%s2464_s1 + $0x30] sm:$0xff]  ;;  %v409_v11 = vld [vmem:[%s2464_s1 + $0x28] sm:$0xff]  ;;  %v408_v12 = vld [vmem:[%s2464_s1 + $0x20] sm:$0xff] }
  0x1a   : > { %v407_v13 = vld [vmem:[%s2464_s1 + $0x18] sm:$0xff]  ;;  %v406_v14 = vld [vmem:[%s2464_s1 + $0x10] sm:$0xff]  ;;  %v405_v15 = vld [vmem:[%s2464_s1 + $0x8] sm:$0xff]  ;;  %vm555_vm0 = vcmp.lt.s32.totalorder %v1857_v49, 32 }
  0x1b   : > { %426 = vmatpush.msra.mxu0 %v417_v3  ;;  %1470 = vmatpush.msra.mxu3 %v417_v3  ;;  %v404_v16 = vld [vmem:[%s2464_s1] sm:$0xff]  ;;  %v389_v18 = vld [vmem:[%s1821_s13 + $0x8] sm:$0xff]  ;;  %v390_v19 = vld [vmem:[%s1821_s13 + $0x10] sm:$0xff] }
  0x1c   : > { %v388_v17 = vld [vmem:[%s1821_s13] sm:$0xff]  ;;  %v391_v20 = vld [vmem:[%s1821_s13 + $0x18] sm:$0xff]  ;;  %v393_v22 = vld [vmem:[%s1821_s13 + $0x28] sm:$0xff] }
  0x1d   : > { %427 = vmatpush.msra.mxu0 %v416_v4  ;;  %1471 = vmatpush.msra.mxu3 %v416_v4  ;;  %v392_v21 = vld [vmem:[%s1821_s13 + $0x20] sm:$0xff]  ;;  %v394_v23 = vld [vmem:[%s1821_s13 + $0x30] sm:$0xff]  ;;  %v395_v24 = vld [vmem:[%s1821_s13 + $0x38] sm:$0xff] }
  0x1e   : > { %v396_v25 = vld [vmem:[%s1821_s13 + $0x40] sm:$0xff]  ;;  %v397_v26 = vld [vmem:[%s1821_s13 + $0x48] sm:$0xff]  ;;  %v398_v27 = vld [vmem:[%s1821_s13 + $0x50] sm:$0xff] }
  0x1f   : > { %428 = vmatpush.msra.mxu0 %v415_v5  ;;  %1472 = vmatpush.msra.mxu3 %v415_v5  ;;  %v1840_v28 = vld [vmem:[%s2465_s2] ss:$0 sm:$0xff]  ;;  %v399_v29 = vld [vmem:[%s1821_s13 + $0x58] sm:$0xff]  ;;  %v401_v35 = vld [vmem:[%s1821_s13 + $0x68] sm:$0xff] }
  0x20   : > { %v400_v32 = vld [vmem:[%s1821_s13 + $0x60] sm:$0xff]  ;;  %v402_v46 = vld [vmem:[%s1821_s13 + $0x70] sm:$0xff]  ;;  %v403_v47 = vld [vmem:[%s1821_s13 + $0x78] sm:$0xff]  ;;  %s1405_s13 = sshll.u32 %s1401_s26, 4  ;;  %s1406_s13 = int_to_ptr.hbm [resolvable:$true] %s1405_s13 }
  0x21   : > { %429 = vmatpush.msra.mxu0 %v414_v6  ;;  %1473 = vmatpush.msra.mxu3 %v414_v6  ;;  %v889_v48 = vld [vmem:[%s2468_s5 + $0x18] sm:$0xff]  ;;  %s1610_s14 = sshra.s32 %s1406_s13, 4  ;;  %s1611_s14 = int_to_ptr.hbm [resolvable:$true] %s1610_s14 }
  0x22   : > { %s1612_s15 = scalar_lea.hbm %s1611_s14, 1  ;;  %p1617_p0 = scmp.lt.s32.totalorder %s1611_s14, %s2474_s11 }
  0x23   : > { %430 = vmatpush.msra.mxu0 %v413_v7  ;;  %1474 = vmatpush.msra.mxu3 %v413_v7  ;;  %p1613_p11 = scmp.ne.s32.totalorder %s1611_s14, %s1612_s15  ;;  %p1618_p1 = scmp.lt.s32.totalorder %s1616_s10, %s1612_s15 }
  0x25   : > { %431 = vmatpush.msra.mxu0 %v412_v8  ;;  %1475 = vmatpush.msra.mxu3 %v412_v8  ;;  %p1614_p12 = pnand %p1613_p11, %p1762_p5  ;;  %p1619_p2 = por %p1618_p1, %p1617_p0 }
  0x27   : > { %432 = vmatpush.msra.mxu0 %v411_v9  ;;  %1476 = vmatpush.msra.mxu3 %v411_v9  ;;  %p1615_p13 = pneg %p1614_p12 }
  0x29   : > { %433 = vmatpush.msra.mxu0 %v410_v10  ;;  %1477 = vmatpush.msra.mxu3 %v410_v10  ;;  %p1620_p3 = pnand %p1619_p2, %p1615_p13 }
  0x2b   : > { %434 = vmatpush.msra.mxu0 %v409_v11  ;;  %1478 = vmatpush.msra.mxu3 %v409_v11 }
  0x2d   : > { %435 = vmatpush.msra.mxu0 %v408_v12  ;;  %1479 = vmatpush.msra.mxu3 %v408_v12 }
  0x2f   : > { %436 = vmatpush.msra.mxu0 %v407_v13  ;;  %1480 = vmatpush.msra.mxu3 %v407_v13 }
  0x31   : > { %437 = vmatpush.msra.mxu0 %v406_v14  ;;  %1481 = vmatpush.msra.mxu3 %v406_v14  ;;  %v901_v14 = vld [vmem:[%s2468_s5 + $0x78] sm:$0xff] }
  0x32   : > { %906 = vmatpush.msra.mxu1 %v901_v14 }
  0x33   : > { %438 = vmatpush.msra.mxu0 %v405_v15  ;;  %1482 = vmatpush.msra.mxu3 %v405_v15 }
  0x35   : > { %439 = vmatpush.msra.mxu0 %v404_v16  ;;  %1483 = vmatpush.msra.mxu3 %v404_v16 }
  0x36   : > { %440 = vmatmul.f32.vlgmr.msra.gmra.mxu0 %v388_v17  ;;  %470 = vmatmul.f32.vlgmr.msra.gmra.mxu3 %v398_v27 }
  0x3e   : > { %443 = vmatmul.f32.gmra.mxu0 %v389_v18  ;;  %473 = vmatmul.f32.gmra.mxu3 %v399_v29 }
  0x46   : > { %446 = vmatmul.f32.gmra.mxu0 %v390_v19  ;;  %476 = vmatmul.f32.gmra.mxu3 %v400_v32 }
  0x4e   : > { %449 = vmatmul.f32.gmra.mxu0 %v391_v20  ;;  %479 = vmatmul.f32.gmra.mxu3 %v401_v35 }
  0x56   : > { %452 = vmatmul.f32.gmra.mxu0 %v392_v21  ;;  %482 = vmatmul.f32.gmra.mxu3 %v402_v46  ;;  %v891_v46 = vld [vmem:[%s2468_s5 + $0x28] sm:$0xff] }
  0x5e   : > { %455 = vmatmul.f32.gmra.mxu0 %v393_v22  ;;  %485 = vmatmul.f32.gmra.mxu3 %v403_v47  ;;  %v890_v47 = vld [vmem:[%s2468_s5 + $0x20] sm:$0xff] }
  0x66   : > { %458 = vmatmul.f32.gmra.mxu0 %v394_v23 }
  0x6e   : > { %461 = vmatmul.f32.gmra.mxu0 %v395_v24 }
  0x76   : > { %464 = vmatmul.f32.gmra.mxu0 %v396_v25 }
  0x7e   : > { %467 = vmatmul.f32.gmra.mxu0 %v397_v26 }
  0xb3   : > { %v441_v30 = vpop.f32.mrf.mxu0 }
  0xb4   : > { %v442_v31 = vadd.f32 %v1840_v28, %v441_v30 }
  0xb6   : > { %489 = vadd.xlane.f32.xlu0 %v442_v31 }
  0xb9   : > { %v471_v9 = vpop.f32.mrf.mxu3 }
  0xba   : > { %v1898_v17 = vadd.f32 %v1840_v28, %v471_v9 }
  0xbb   : > { %v444_v33 = vpop.f32.mrf.mxu0 }
  0xbc   : > { %v445_v34 = vadd.f32 %v1840_v28, %v444_v33 }
  0xbe   : > { %491 = vadd.xlane.f32.xlu0 %v445_v34 }
  0xc1   : > { %v474_v19 = vpop.f32.mrf.mxu3 }
  0xc2   : > { %v1907_v24 = vadd.f32 %v1840_v28, %v474_v19 }
  0xc3   : > { %v447_v36 = vpop.f32.mrf.mxu0 }
  0xc4   : > { %v448_v37 = vadd.f32 %v1840_v28, %v447_v36 }
  0xc6   : > { %493 = vadd.xlane.f32.xlu1 %v448_v37 }
  0xc9   : > { %v477_v27 = vpop.f32.mrf.mxu3 }
  0xca   : > { %v1917_v32 = vadd.f32 %v1840_v28, %v477_v27  ;;  %v1990_v27 = vld [vmem:[%s2466_s3] ss:$0 sm:$0xff] }
  0xcb   : > { %v450_v38 = vpop.f32.mrf.mxu0 }
  0xcc   : > { %v451_v39 = vadd.f32 %v1840_v28, %v450_v38  ;;  %v899_v38 = vld [vmem:[%s2468_s5 + $0x68] sm:$0xff] }
  0xce   : > { %495 = vadd.xlane.f32.xlu1 %v451_v39 }
  0xd1   : > { %v480_v35 = vpop.f32.mrf.mxu3 }
  0xd2   : > { %v1924_v36 = vadd.f32 %v1840_v28, %v480_v35 }
  0xd3   : > { %v453_v40 = vpop.f32.mrf.mxu0 }
  0xd4   : > { %v454_v41 = vadd.f32 %v1840_v28, %v453_v40  ;;  %v897_v40 = vld [vmem:[%s2468_s5 + $0x58] sm:$0xff] }
  0xd6   : > { %497 = vadd.xlane.f32.xlu2 %v454_v41 }
  0xd9   : > { %v483_v9 = vpop.f32.mrf.mxu3 }
  0xdb   : > { %v456_v42 = vpop.f32.mrf.mxu0 }
  0xdc   : > { %v457_v43 = vadd.f32 %v1840_v28, %v456_v42  ;;  %v895_v42 = vld [vmem:[%s2468_s5 + $0x48] sm:$0xff] }
  0xde   : > { %499 = vadd.xlane.f32.xlu2 %v457_v43 }
  0xe3   : > { %v459_v44 = vpop.f32.mrf.mxu0 }
  0xe4   : > { %v1852_v45 = vadd.f32 %v1840_v28, %v459_v44  ;;  %v893_v44 = vld [vmem:[%s2468_s5 + $0x38] sm:$0xff] }
  0xe6   : > { %501 = vadd.xlane.f32.xlu1 %v1852_v45 }
  0xeb   : > { %v462_v54 = vpop.f32.mrf.mxu0 }
  0xec   : > { %v1868_v59 = vadd.f32 %v1840_v28, %v462_v54 }
  0xf3   : > { %v465_v62 = vpop.f32.mrf.mxu0 }
  0xf4   : > { %v1877_v2 = vadd.f32 %v1840_v28, %v465_v62 }
  0xfb   : > { %v468_v7 = vpop.f32.mrf.mxu0 }
  0xfc   : > { %v1886_v10 = vadd.f32 %v1840_v28, %v468_v7 }
 0x129   : > { %v490_v50 = vpop.xlane.xlu0 %489 }
 0x12a   : > { %v521_v51 = vmul.f32 0.03125, %v490_v50  ;;  %v888_v50 = vld [vmem:[%s2468_s5 + $0x10] sm:$0xff] }
 0x12c   : > { %v1860_v52 = vsub.f32 %v442_v31, %v521_v51  ;;  %v887_v51 = vld [vmem:[%s2468_s5 + $0x8] sm:$0xff] }
 0x12e   : > { %v558_v53 = vsel %vm555_vm0, %v1860_v52, 0.0 }
 0x12f   : > { %v574_v55 = vmul.f32 %v558_v53, %v558_v53  ;;  %v886_v53 = vld [vmem:[%s2468_s5] sm:$0xff] }
 0x131   : > { %590 = vadd.xlane.f32.xlu0 %v574_v55  ;;  %v492_v56 = vpop.xlane.xlu0 %491 }
 0x132   : > { %v522_v57 = vmul.f32 0.03125, %v492_v56 }
 0x134   : > { %v1865_v58 = vsub.f32 %v445_v34, %v522_v57 }
 0x136   : > { %v559_v60 = vsel %vm555_vm0, %v1865_v58, 0.0 }
 0x137   : > { %v575_v61 = vmul.f32 %v559_v60, %v559_v60 }
 0x139   : > { %v494_v63 = vpop.xlane.xlu1 %493  ;;  %503 = vadd.xlane.f32.xlu0 %v1868_v59  ;;  %592 = vadd.xlane.f32.xlu2 %v575_v61 }
 0x13a   : > { %v523_v0 = vmul.f32 0.03125, %v494_v63 }
 0x13c   : > { %v1874_v1 = vsub.f32 %v448_v37, %v523_v0  ;;  %v900_v37 = vld [vmem:[%s2468_s5 + $0x70] sm:$0xff] }
 0x13d   : > { %907 = vmatpush.msra.mxu1 %v900_v37 }
 0x13e   : > { %v560_v3 = vsel %vm555_vm0, %v1874_v1, 0.0 }
 0x13f   : > { %v576_v4 = vmul.f32 %v560_v3, %v560_v3  ;;  %908 = vmatpush.msra.mxu1 %v899_v38 }
 0x141   : > { %594 = vadd.xlane.f32.xlu1 %v576_v4  ;;  %v496_v5 = vpop.xlane.xlu1 %495  ;;  %505 = vadd.xlane.f32.xlu2 %v1877_v2 }
 0x142   : > { %v524_v6 = vmul.f32 0.03125, %v496_v5 }
 0x144   : > { %v1883_v8 = vsub.f32 %v451_v39, %v524_v6  ;;  %v898_v39 = vld [vmem:[%s2468_s5 + $0x60] sm:$0xff] }
 0x145   : > { %909 = vmatpush.msra.mxu1 %v898_v39 }
 0x146   : > { %v561_v11 = vsel %vm555_vm0, %v1883_v8, 0.0 }
 0x147   : > { %v577_v12 = vmul.f32 %v561_v11, %v561_v11  ;;  %910 = vmatpush.msra.mxu1 %v897_v40 }
 0x149   : > { %v498_v13 = vpop.xlane.xlu2 %497  ;;  %507 = vadd.xlane.f32.xlu1 %v1886_v10  ;;  %596 = vadd.xlane.f32.xlu0 %v577_v12 }
 0x14a   : > { %v525_v15 = vmul.f32 0.03125, %v498_v13 }
 0x14c   : > { %v1895_v16 = vsub.f32 %v454_v41, %v525_v15  ;;  %v896_v41 = vld [vmem:[%s2468_s5 + $0x50] sm:$0xff] }
 0x14d   : > { %911 = vmatpush.msra.mxu1 %v896_v41  ;;  %v486_v41 = vpop.f32.mrf.mxu3 }
 0x14e   : > { %v562_v18 = vsel %vm555_vm0, %v1895_v16, 0.0 }
 0x14f   : > { %v578_v20 = vmul.f32 %v562_v18, %v562_v18  ;;  %912 = vmatpush.msra.mxu1 %v895_v42 }
 0x151   : > { %v500_v21 = vpop.xlane.xlu2 %499  ;;  %509 = vadd.xlane.f32.xlu0 %v1898_v17  ;;  %598 = vadd.xlane.f32.xlu2 %v578_v20 }
 0x152   : > { %v526_v22 = vmul.f32 0.03125, %v500_v21 }
 0x154   : > { %v1904_v23 = vsub.f32 %v457_v43, %v526_v22  ;;  %v894_v43 = vld [vmem:[%s2468_s5 + $0x40] sm:$0xff] }
 0x155   : > { %913 = vmatpush.msra.mxu1 %v894_v43 }
 0x156   : > { %v563_v25 = vsel %vm555_vm0, %v1904_v23, 0.0 }
 0x157   : > { %v579_v26 = vmul.f32 %v563_v25, %v563_v25  ;;  %914 = vmatpush.msra.mxu1 %v893_v44  ;;  %v1982_v25 = vadd.f32 %v1840_v28, %v483_v9 }
 0x159   : > { %600 = vadd.xlane.f32.xlu1 %v579_v26  ;;  %v502_v29 = vpop.xlane.xlu1 %501  ;;  %511 = vadd.xlane.f32.xlu2 %v1907_v24 }
 0x15a   : > { %v527_v30 = vmul.f32 0.03125, %v502_v29 }
 0x15c   : > { %v1914_v31 = vsub.f32 %v1852_v45, %v527_v30  ;;  %v892_v45 = vld [vmem:[%s2468_s5 + $0x30] sm:$0xff] }
 0x15d   : > { %915 = vmatpush.msra.mxu1 %v892_v45 }
 0x15e   : > { %v564_v33 = vsel %vm555_vm0, %v1914_v31, 0.0 }
 0x15f   : > { %v580_v34 = vmul.f32 %v564_v33, %v564_v33  ;;  %916 = vmatpush.msra.mxu1 %v891_v46 }
 0x161   : > { %513 = vadd.xlane.f32.xlu1 %v1917_v32  ;;  %602 = vadd.xlane.f32.xlu0 %v580_v34  ;;  %v1996_v34 = vld [vmem:[%s2467_s4] ss:$0 sm:$0xff] }
 0x162   : > { %917 = vmatpush.msra.mxu1 %v890_v47 }
 0x164   : > { %918 = vmatpush.msra.mxu1 %v889_v48 }
 0x166   : > { %919 = vmatpush.msra.mxu1 %v888_v50  ;;  %v2005_v50 = vadd.f32 %v1840_v28, %v486_v41 }
 0x168   : > { %920 = vmatpush.msra.mxu1 %v887_v51 }
 0x169   : > { %515 = vadd.xlane.f32.xlu0 %v1924_v36 }
 0x16a   : > { %921 = vmatpush.msra.mxu1 %v886_v53 }
 0x1a4   : > { %v591_v54 = vpop.xlane.xlu0 %590 }
 0x1a5   : > { %v622_v55 = vmul.f32 0.03125, %v591_v54 }
 0x1a7   : > { %v638_v56 = vadd.f32 1e-05, %v622_v55 }
 0x1a9   : > { %1532 = vrsqrt.f32 %v638_v56  ;;  %vm660_vm2 = vweird.f32 %v638_v56 }
 0x1ac   : > { %v593_v57 = vpop.xlane.xlu2 %592  ;;  %v504_v60 = vpop.xlane.xlu0 %503 }
 0x1ad   : > { %v623_v61 = vmul.f32 0.03125, %v593_v57  ;;  %v528_v62 = vmul.f32 0.03125, %v504_v60 }
 0x1af   : > { %v1533_v63 = vpop.eup %1532  ;;  %v639_v0 = vadd.f32 1e-05, %v623_v61  ;;  %v1973_v3 = vsub.f32 %v1868_v59, %v528_v62 }
 0x1b0   : > { %v655_v4 = vmul.f32 %v1533_v63, %v638_v56  ;;  %vm661_vm1 = vweird.f32 %v1533_v63 }
 0x1b1   : > { %1534 = vrsqrt.f32 %v639_v0  ;;  %v565_v5 = vsel %vm555_vm0, %v1973_v3, 0.0  ;;  %vm662_vm3 = vmor %vm660_vm2, %vm661_vm1  ;;  %vm670_vm5 = vweird.f32 %v639_v0 }
 0x1b2   : > { %v656_v6 = vmul.f32 %v1533_v63, %v655_v4  ;;  %v581_v7 = vmul.f32 %v565_v5, %v565_v5 }
 0x1b4   : > { %v657_v11 = vmul.f32 0.5, %v656_v6  ;;  %v595_v12 = vpop.xlane.xlu1 %594  ;;  %v506_v13 = vpop.xlane.xlu2 %505  ;;  %604 = vadd.xlane.f32.xlu2 %v581_v7 }
 0x1b5   : > { %v624_v14 = vmul.f32 0.03125, %v595_v12  ;;  %v529_v15 = vmul.f32 0.03125, %v506_v13 }
 0x1b6   : > { %v658_v18 = vsub.f32 1.5, %v657_v11 }
 0x1b7   : > { %v1535_v19 = vpop.eup %1534  ;;  %v640_v59 = vadd.f32 1e-05, %v624_v14  ;;  %v1979_v20 = vsub.f32 %v1877_v2, %v529_v15 }
 0x1b8   : > { %v659_v21 = vmul.f32 %v1533_v63, %v658_v18  ;;  %v665_v22 = vmul.f32 %v1535_v19, %v639_v0  ;;  %vm671_vm4 = vweird.f32 %v1535_v19 }
 0x1b9   : > { %1536 = vrsqrt.f32 %v640_v59  ;;  %v566_v26 = vsel %vm555_vm0, %v1979_v20, 0.0  ;;  %vm672_vm6 = vmor %vm670_vm5, %vm671_vm4  ;;  %vm680_vm8 = vweird.f32 %v640_v59 }
 0x1ba   : > { %v666_v29 = vmul.f32 %v1535_v19, %v665_v22  ;;  %v582_v2 = vmul.f32 %v566_v26, %v566_v26  ;;  %v663_v30 = vsel %vm662_vm3, %v1533_v63, %v659_v21 }
 0x1bb   : > { %v814_v33 = vmul.f32 %v663_v30, %v1860_v52 }
 0x1bc   : > { %v667_v35 = vmul.f32 0.5, %v666_v29  ;;  %v508_v37 = vpop.xlane.xlu1 %507  ;;  %606 = vadd.xlane.f32.xlu1 %v582_v2  ;;  %517 = vadd.xlane.f32.xlu2 %v1982_v25  ;;  %v597_v38 = vpop.xlane.xlu0 %596 }
 0x1bd   : > { %v530_v39 = vmul.f32 0.03125, %v508_v37  ;;  %v625_v40 = vmul.f32 0.03125, %v597_v38  ;;  %v834_v42 = vmul.f32 %v1990_v27, %v814_v33 }
 0x1be   : > { %v668_v43 = vsub.f32 1.5, %v667_v35 }
 0x1bf   : > { %v1537_v44 = vpop.eup %1536  ;;  %v2001_v52 = vsub.f32 %v1886_v10, %v530_v39  ;;  %v641_v45 = vadd.f32 1e-05, %v625_v40  ;;  %v854_v46 = vadd.f32 %v1996_v34, %v834_v42 }
 0x1c0   : > { %v669_v47 = vmul.f32 %v1535_v19, %v668_v43  ;;  %v675_v48 = vmul.f32 %v1537_v44, %v640_v59  ;;  %vm681_vm7 = vweird.f32 %v1537_v44 }
 0x1c1   : > { %1538 = vrsqrt.f32 %v641_v45  ;;  %v870_v51 = vmax.f32 %v854_v46, 0.0  ;;  %v567_v53 = vsel %vm555_vm0, %v2001_v52, 0.0  ;;  %vm682_vm9 = vmor %vm680_vm8, %vm681_vm7  ;;  %vm690_vm11 = vweird.f32 %v641_v45 }
 0x1c2   : > { %v676_v54 = vmul.f32 %v1537_v44, %v675_v48  ;;  %v583_v55 = vmul.f32 %v567_v53, %v567_v53  ;;  %v673_v10 = vsel %vm672_vm6, %v1535_v19, %v669_v47 }
 0x1c3   : > { %922 = vmatmul.f32.vlgmr.msra.gmra.mxu1 %v870_v51  ;;  %v815_v56 = vmul.f32 %v673_v10, %v1865_v58 }
 0x1c4   : > { %v677_v57 = vmul.f32 0.5, %v676_v54  ;;  %608 = vadd.xlane.f32.xlu0 %v583_v55  ;;  %519 = vadd.xlane.f32.xlu1 %v2005_v50  ;;  %v599_v60 = vpop.xlane.xlu2 %598  ;;  %v510_v28 = vpop.xlane.xlu0 %509 }
 0x1c5   : > { %v626_v61 = vmul.f32 0.03125, %v599_v60  ;;  %v531_v62 = vmul.f32 0.03125, %v510_v28  ;;  %v835_v63 = vmul.f32 %v1990_v27, %v815_v56 }
 0x1c6   : > { %v678_v0 = vsub.f32 1.5, %v677_v57 }
 0x1c7   : > { %v1539_v4 = vpop.eup %1538  ;;  %v642_v5 = vadd.f32 1e-05, %v626_v61  ;;  %v2014_v6 = vsub.f32 %v1898_v17, %v531_v62  ;;  %v855_v7 = vadd.f32 %v1996_v34, %v835_v63 }
 0x1c8   : > { %v679_v58 = vmul.f32 %v1537_v44, %v678_v0  ;;  %v685_v9 = vmul.f32 %v1539_v4, %v641_v45  ;;  %vm691_vm10 = vweird.f32 %v1539_v4 }
 0x1c9   : > { %1540 = vrsqrt.f32 %v642_v5  ;;  %v871_v11 = vmax.f32 %v855_v7, 0.0  ;;  %v568_v12 = vsel %vm555_vm0, %v2014_v6, 0.0  ;;  %vm692_vm12 = vmor %vm690_vm11, %vm691_vm10  ;;  %vm700_vm14 = vweird.f32 %v642_v5 }
 0x1ca   : > { %v686_v13 = vmul.f32 %v1539_v4, %v685_v9  ;;  %v584_v14 = vmul.f32 %v568_v12, %v568_v12  ;;  %v683_v15 = vsel %vm682_vm9, %v1537_v44, %v679_v58 }
 0x1cb   : > { %925 = vmatmul.f32.gmra.mxu1 %v871_v11  ;;  %v816_v18 = vmul.f32 %v683_v15, %v1874_v1 }
 0x1cc   : > { %v687_v17 = vmul.f32 0.5, %v686_v13  ;;  %v601_v19 = vpop.xlane.xlu1 %600  ;;  %v512_v21 = vpop.xlane.xlu2 %511  ;;  %610 = vadd.xlane.f32.xlu2 %v584_v14 }
 0x1cd   : > { %v627_v22 = vmul.f32 0.03125, %v601_v19  ;;  %v532_v59 = vmul.f32 0.03125, %v512_v21  ;;  %v836_v26 = vmul.f32 %v1990_v27, %v816_v18 }
 0x1ce   : > { %v688_v29 = vsub.f32 1.5, %v687_v17 }
 0x1cf   : > { %v1541_v2 = vpop.eup %1540  ;;  %v643_v30 = vadd.f32 1e-05, %v627_v22  ;;  %v2023_v33 = vsub.f32 %v1907_v24, %v532_v59  ;;  %v856_v35 = vadd.f32 %v1996_v34, %v836_v26 }
 0x1d0   : > { %v689_v37 = vmul.f32 %v1539_v4, %v688_v29  ;;  %v695_v1 = vmul.f32 %v1541_v2, %v642_v5  ;;  %vm701_vm13 = vweird.f32 %v1541_v2 }
 0x1d1   : > { %1542 = vrsqrt.f32 %v643_v30  ;;  %v872_v38 = vmax.f32 %v856_v35, 0.0  ;;  %v569_v39 = vsel %vm555_vm0, %v2023_v33, 0.0  ;;  %vm702_vm15 = vmor %vm700_vm14, %vm701_vm13  ;;  %vm710_vm2 = vweird.f32 %v643_v30 }
 0x1d2   : > { %v696_v40 = vmul.f32 %v1541_v2, %v695_v1  ;;  %v585_v41 = vmul.f32 %v569_v39, %v569_v39  ;;  %v693_v42 = vsel %vm692_vm12, %v1539_v4, %v689_v37 }
 0x1d3   : > { %928 = vmatmul.f32.gmra.mxu1 %v872_v38  ;;  %v817_v43 = vmul.f32 %v693_v42, %v1883_v8 }
 0x1d4   : > { %v697_v24 = vmul.f32 0.5, %v696_v40  ;;  %v514_v44 = vpop.xlane.xlu1 %513  ;;  %612 = vadd.xlane.f32.xlu0 %v585_v41  ;;  %v603_v46 = vpop.xlane.xlu0 %602 }
 0x1d5   : > { %v533_v47 = vmul.f32 0.03125, %v514_v44  ;;  %v628_v45 = vmul.f32 0.03125, %v603_v46  ;;  %v837_v48 = vmul.f32 %v1990_v27, %v817_v43 }
 0x1d6   : > { %v698_v51 = vsub.f32 1.5, %v697_v24 }
 0x1d7   : > { %v1543_v53 = vpop.eup %1542  ;;  %v2032_v54 = vsub.f32 %v1917_v32, %v533_v47  ;;  %v644_v55 = vadd.f32 1e-05, %v628_v45  ;;  %v857_v10 = vadd.f32 %v1996_v34, %v837_v48 }
 0x1d8   : > { %v699_v56 = vmul.f32 %v1541_v2, %v698_v51  ;;  %v705_v8 = vmul.f32 %v1543_v53, %v643_v30  ;;  %vm711_vm1 = vweird.f32 %v1543_v53 }
 0x1d9   : > { %1544 = vrsqrt.f32 %v644_v55  ;;  %v873_v57 = vmax.f32 %v857_v10, 0.0  ;;  %v570_v60 = vsel %vm555_vm0, %v2032_v54, 0.0  ;;  %vm712_vm3 = vmor %vm710_vm2, %vm711_vm1  ;;  %vm720_vm5 = vweird.f32 %v644_v55 }
 0x1da   : > { %v706_v28 = vmul.f32 %v1543_v53, %v705_v8  ;;  %v586_v61 = vmul.f32 %v570_v60, %v570_v60  ;;  %v703_v62 = vsel %vm702_vm15, %v1541_v2, %v699_v56 }
 0x1db   : > { %931 = vmatmul.f32.gmra.mxu1 %v873_v57  ;;  %v818_v32 = vmul.f32 %v703_v62, %v1895_v16 }
 0x1dc   : > { %v707_v63 = vmul.f32 0.5, %v706_v28  ;;  %614 = vadd.xlane.f32.xlu1 %v586_v61  ;;  %v516_v0 = vpop.xlane.xlu0 %515 }
 0x1dd   : > { %v534_v4 = vmul.f32 0.03125, %v516_v0  ;;  %v838_v5 = vmul.f32 %v1990_v27, %v818_v32 }
 0x1de   : > { %v708_v7 = vsub.f32 1.5, %v707_v63 }
 0x1df   : > { %v1545_v58 = vpop.eup %1544  ;;  %v2041_v9 = vsub.f32 %v1924_v36, %v534_v4  ;;  %v858_v11 = vadd.f32 %v1996_v34, %v838_v5 }
 0x1e0   : > { %v709_v12 = vmul.f32 %v1543_v53, %v708_v7  ;;  %v715_v13 = vmul.f32 %v1545_v58, %v644_v55  ;;  %vm721_vm4 = vweird.f32 %v1545_v58 }
 0x1e1   : > { %v874_v14 = vmax.f32 %v858_v11, 0.0  ;;  %v571_v16 = vsel %vm555_vm0, %v2041_v9, 0.0  ;;  %vm722_vm6 = vmor %vm720_vm5, %vm721_vm4 }
 0x1e2   : > { %v716_v15 = vmul.f32 %v1545_v58, %v715_v13  ;;  %v587_v18 = vmul.f32 %v571_v16, %v571_v16  ;;  %v713_v17 = vsel %vm712_vm3, %v1543_v53, %v709_v12 }
 0x1e3   : > { %934 = vmatmul.f32.gmra.mxu1 %v874_v14  ;;  %v819_v19 = vmul.f32 %v713_v17, %v1904_v23 }
 0x1e4   : > { %v717_v21 = vmul.f32 0.5, %v716_v15  ;;  %616 = vadd.xlane.f32.xlu2 %v587_v18 }
 0x1e5   : > { %v839_v36 = vmul.f32 %v1990_v27, %v819_v19 }
 0x1e6   : > { %v718_v22 = vsub.f32 1.5, %v717_v21 }
 0x1e7   : > { %v859_v59 = vadd.f32 %v1996_v34, %v839_v36 }
 0x1e8   : > { %v719_v26 = vmul.f32 %v1545_v58, %v718_v22 }
 0x1e9   : > { %v875_v29 = vmax.f32 %v859_v59, 0.0 }
 0x1ea   : > { %v723_v2 = vsel %vm722_vm6, %v1545_v58, %v719_v26 }
 0x1eb   : > { %937 = vmatmul.f32.gmra.mxu1 %v875_v29  ;;  %v820_v30 = vmul.f32 %v723_v2, %v1914_v31 }
 0x1ed   : > { %v840_v35 = vmul.f32 %v1990_v27, %v820_v30 }
 0x1ef   : > { %v860_v23 = vadd.f32 %v1996_v34, %v840_v35 }
 0x1f1   : > { %v876_v37 = vmax.f32 %v860_v23, 0.0 }
 0x1f3   : > { %940 = vmatmul.f32.gmra.mxu1 %v876_v37 }
 0x227   : > { %v605_v1 = vpop.xlane.xlu2 %604 }
 0x228   : > { %v629_v38 = vmul.f32 0.03125, %v605_v1 }
 0x22a   : > { %v645_v39 = vadd.f32 1e-05, %v629_v38 }
 0x22c   : > { %1546 = vrsqrt.f32 %v645_v39  ;;  %vm730_vm8 = vweird.f32 %v645_v39 }
 0x22f   : > { %v607_v40 = vpop.xlane.xlu1 %606  ;;  %v518_v41 = vpop.xlane.xlu2 %517 }
 0x230   : > { %v630_v42 = vmul.f32 0.03125, %v607_v40  ;;  %v535_v43 = vmul.f32 0.03125, %v518_v41 }
 0x232   : > { %v1547_v24 = vpop.eup %1546  ;;  %v646_v44 = vadd.f32 1e-05, %v630_v42  ;;  %v2054_v46 = vsub.f32 %v1982_v25, %v535_v43 }
 0x233   : > { %v725_v31 = vmul.f32 %v1547_v24, %v645_v39  ;;  %vm731_vm7 = vweird.f32 %v1547_v24 }
 0x234   : > { %1548 = vrsqrt.f32 %v646_v44  ;;  %v572_v47 = vsel %vm555_vm0, %v2054_v46, 0.0  ;;  %vm732_vm9 = vmor %vm730_vm8, %vm731_vm7  ;;  %vm740_vm11 = vweird.f32 %v646_v44 }
 0x235   : > { %v726_v45 = vmul.f32 %v1547_v24, %v725_v31  ;;  %v588_v48 = vmul.f32 %v572_v47, %v572_v47 }
 0x237   : > { %v727_v51 = vmul.f32 0.5, %v726_v45  ;;  %v520_v53 = vpop.xlane.xlu1 %519  ;;  %618 = vadd.xlane.f32.xlu0 %v588_v48  ;;  %v609_v55 = vpop.xlane.xlu0 %608 }
 0x238   : > { %v536_v10 = vmul.f32 0.03125, %v520_v53  ;;  %v631_v56 = vmul.f32 0.03125, %v609_v55 }
 0x239   : > { %v728_v8 = vsub.f32 1.5, %v727_v51 }
 0x23a   : > { %v1549_v57 = vpop.eup %1548  ;;  %v2060_v25 = vsub.f32 %v2005_v50, %v536_v10  ;;  %v647_v60 = vadd.f32 1e-05, %v631_v56 }
 0x23b   : > { %v729_v28 = vmul.f32 %v1547_v24, %v728_v8  ;;  %v735_v61 = vmul.f32 %v1549_v57, %v646_v44  ;;  %vm741_vm10 = vweird.f32 %v1549_v57 }
 0x23c   : > { %1550 = vrsqrt.f32 %v647_v60  ;;  %v573_v62 = vsel %vm555_vm0, %v2060_v25, 0.0  ;;  %vm742_vm12 = vmor %vm740_vm11, %vm741_vm10  ;;  %vm750_vm14 = vweird.f32 %v647_v60 }
 0x23d   : > { %v736_v32 = vmul.f32 %v1549_v57, %v735_v61  ;;  %v589_v63 = vmul.f32 %v573_v62, %v573_v62  ;;  %v733_v0 = vsel %vm732_vm9, %v1547_v24, %v729_v28 }
 0x23e   : > { %v821_v4 = vmul.f32 %v733_v0, %v1973_v3 }
 0x23f   : > { %v737_v5 = vmul.f32 0.5, %v736_v32  ;;  %620 = vadd.xlane.f32.xlu1 %v589_v63  ;;  %v611_v7 = vpop.xlane.xlu2 %610 }
 0x240   : > { %v632_v50 = vmul.f32 0.03125, %v611_v7  ;;  %v841_v58 = vmul.f32 %v1990_v27, %v821_v4 }
 0x241   : > { %v738_v11 = vsub.f32 1.5, %v737_v5 }
 0x242   : > { %v1551_v12 = vpop.eup %1550  ;;  %v648_v13 = vadd.f32 1e-05, %v632_v50  ;;  %v861_v14 = vadd.f32 %v1996_v34, %v841_v58 }
 0x243   : > { %v739_v16 = vmul.f32 %v1549_v57, %v738_v11  ;;  %v745_v15 = vmul.f32 %v1551_v12, %v647_v60  ;;  %vm751_vm13 = vweird.f32 %v1551_v12 }
 0x244   : > { %1552 = vrsqrt.f32 %v648_v13  ;;  %v877_v18 = vmax.f32 %v861_v14, 0.0  ;;  %vm752_vm15 = vmor %vm750_vm14, %vm751_vm13  ;;  %vm760_vm2 = vweird.f32 %v648_v13 }
 0x245   : > { %v746_v17 = vmul.f32 %v1551_v12, %v745_v15  ;;  %v743_v3 = vsel %vm742_vm12, %v1549_v57, %v739_v16 }
 0x246   : > { %943 = vmatmul.f32.gmra.mxu1 %v877_v18  ;;  %v822_v19 = vmul.f32 %v743_v3, %v1979_v20 }
 0x247   : > { %v747_v21 = vmul.f32 0.5, %v746_v17  ;;  %v613_v36 = vpop.xlane.xlu0 %612 }
 0x248   : > { %v633_v22 = vmul.f32 0.03125, %v613_v36  ;;  %v842_v59 = vmul.f32 %v1990_v27, %v822_v19 }
 0x249   : > { %v748_v26 = vsub.f32 1.5, %v747_v21 }
 0x24a   : > { %v1553_v29 = vpop.eup %1552  ;;  %v649_v2 = vadd.f32 1e-05, %v633_v22  ;;  %v862_v30 = vadd.f32 %v1996_v34, %v842_v59 }
 0x24b   : > { %v749_v35 = vmul.f32 %v1551_v12, %v748_v26  ;;  %v755_v23 = vmul.f32 %v1553_v29, %v648_v13  ;;  %vm761_vm1 = vweird.f32 %v1553_v29 }
 0x24c   : > { %1554 = vrsqrt.f32 %v649_v2  ;;  %v878_v37 = vmax.f32 %v862_v30, 0.0  ;;  %vm762_vm3 = vmor %vm760_vm2, %vm761_vm1  ;;  %vm770_vm5 = vweird.f32 %v649_v2 }
 0x24d   : > { %v756_v1 = vmul.f32 %v1553_v29, %v755_v23  ;;  %v753_v38 = vsel %vm752_vm15, %v1551_v12, %v749_v35 }
 0x24e   : > { %946 = vmatmul.f32.gmra.mxu1 %v878_v37  ;;  %v823_v20 = vmul.f32 %v753_v38, %v2001_v52 }
 0x24f   : > { %v757_v39 = vmul.f32 0.5, %v756_v1  ;;  %v615_v40 = vpop.xlane.xlu1 %614 }
 0x250   : > { %v634_v41 = vmul.f32 0.03125, %v615_v40  ;;  %v843_v42 = vmul.f32 %v1990_v27, %v823_v20 }
 0x251   : > { %v758_v43 = vsub.f32 1.5, %v757_v39 }
 0x252   : > { %v1555_v24 = vpop.eup %1554  ;;  %v650_v44 = vadd.f32 1e-05, %v634_v41  ;;  %v863_v31 = vadd.f32 %v1996_v34, %v843_v42 }
 0x253   : > { %v759_v47 = vmul.f32 %v1553_v29, %v758_v43  ;;  %v765_v45 = vmul.f32 %v1555_v24, %v649_v2  ;;  %vm771_vm4 = vweird.f32 %v1555_v24  ;;  %v2086_v2 = vpop.f32.mrf.mxu1 }
 0x254   : > { %1556 = vrsqrt.f32 %v650_v44  ;;  %v879_v48 = vmax.f32 %v863_v31, 0.0  ;;  %vm772_vm6 = vmor %vm770_vm5, %vm771_vm4  ;;  %vm780_vm8 = vweird.f32 %v650_v44 }
 0x255   : > { %v766_v51 = vmul.f32 %v1555_v24, %v765_v45  ;;  %v763_v53 = vsel %vm762_vm3, %v1553_v29, %v759_v47 }
 0x256   : > { %949 = vmatmul.f32.gmra.mxu1 %v879_v48  ;;  %v824_v52 = vmul.f32 %v763_v53, %v2014_v6 }
 0x257   : > { %v767_v55 = vmul.f32 0.5, %v766_v51  ;;  %v617_v10 = vpop.xlane.xlu2 %616 }
 0x258   : > { %v635_v56 = vmul.f32 0.03125, %v617_v10  ;;  %v844_v8 = vmul.f32 %v1990_v27, %v824_v52 }
 0x259   : > { %v768_v57 = vsub.f32 1.5, %v767_v55 }
 0x25a   : > { %v1557_v60 = vpop.eup %1556  ;;  %v651_v28 = vadd.f32 1e-05, %v635_v56  ;;  %v864_v61 = vadd.f32 %v1996_v34, %v844_v8 }
 0x25b   : > { %v769_v62 = vmul.f32 %v1555_v24, %v768_v57  ;;  %v775_v32 = vmul.f32 %v1557_v60, %v650_v44  ;;  %vm781_vm7 = vweird.f32 %v1557_v60  ;;  %v2088_v30 = vpop.f32.mrf.mxu1 }
 0x25c   : > { %1558 = vrsqrt.f32 %v651_v28  ;;  %v880_v63 = vmax.f32 %v864_v61, 0.0  ;;  %vm782_vm9 = vmor %vm780_vm8, %vm781_vm7  ;;  %vm790_vm11 = vweird.f32 %v651_v28 }
 0x25d   : > { %v776_v0 = vmul.f32 %v1557_v60, %v775_v32  ;;  %v773_v4 = vsel %vm772_vm6, %v1555_v24, %v769_v62 }
 0x25e   : > { %952 = vmatmul.f32.gmra.mxu1 %v880_v63  ;;  %v825_v6 = vmul.f32 %v773_v4, %v2023_v33 }
 0x25f   : > { %v777_v5 = vmul.f32 0.5, %v776_v0 }
 0x260   : > { %v845_v7 = vmul.f32 %v1990_v27, %v825_v6 }
 0x261   : > { %v778_v50 = vsub.f32 1.5, %v777_v5 }
 0x262   : > { %v1559_v58 = vpop.eup %1558  ;;  %v865_v11 = vadd.f32 %v1996_v34, %v845_v7 }
 0x263   : > { %v779_v12 = vmul.f32 %v1557_v60, %v778_v50  ;;  %v785_v13 = vmul.f32 %v1559_v58, %v651_v28  ;;  %vm791_vm10 = vweird.f32 %v1559_v58  ;;  %v2090_v35 = vpop.f32.mrf.mxu1 }
 0x264   : > { %v881_v14 = vmax.f32 %v865_v11, 0.0  ;;  %vm792_vm12 = vmor %vm790_vm11, %vm791_vm10 }
 0x265   : > { %v786_v16 = vmul.f32 %v1559_v58, %v785_v13  ;;  %v783_v15 = vsel %vm782_vm9, %v1557_v60, %v779_v12 }
 0x266   : > { %955 = vmatmul.f32.gmra.mxu1 %v881_v14  ;;  %v826_v18 = vmul.f32 %v783_v15, %v2032_v54 }
 0x267   : > { %v787_v17 = vmul.f32 0.5, %v786_v16 }
 0x268   : > { %v846_v33 = vmul.f32 %v1990_v27, %v826_v18 }
 0x269   : > { %v788_v3 = vsub.f32 1.5, %v787_v17 }
 0x26a   : > { %v866_v19 = vadd.f32 %v1996_v34, %v846_v33 }
 0x26b   : > { %v789_v21 = vmul.f32 %v1559_v58, %v788_v3  ;;  %v2092_v23 = vpop.f32.mrf.mxu1 }
 0x26c   : > { %v882_v36 = vmax.f32 %v866_v19, 0.0 }
 0x26d   : > { %v793_v22 = vsel %vm792_vm12, %v1559_v58, %v789_v21  ;;  %v1529_v58 = vld [vmem:[%s2469_s6] ss:$0 sm:$0xff] }
 0x26e   : > { %958 = vmatmul.f32.gmra.mxu1 %v882_v36  ;;  %v827_v59 = vmul.f32 %v793_v22, %v2041_v9  ;;  %v2116_v21 = vadd.f32 %v1529_v58, %v2092_v23 }
 0x270   : > { %v847_v26 = vmul.f32 %v1990_v27, %v827_v59 }
 0x272   : > { %v867_v29 = vadd.f32 %v1996_v34, %v847_v26 }
 0x273   : > { %v935_v37 = vpop.f32.mrf.mxu1 }
 0x274   : > { %v883_v54 = vmax.f32 %v867_v29, 0.0 }
 0x276   : > { %961 = vmatmul.f32.gmra.mxu1 %v883_v54 }
 0x27b   : > { %v2094_v9 = vpop.f32.mrf.mxu1 }
 0x27c   : > { %v939_v3 = vadd.f32 %v1529_v58, %v2094_v9 }
 0x283   : > { %v941_v31 = vpop.f32.mrf.mxu1 }
 0x284   : > { %v942_v36 = vadd.f32 %v1529_v58, %v941_v31 }
 0x2aa   : > { %v619_v1 = vpop.xlane.xlu0 %618 }
 0x2ab   : > { %v636_v38 = vmul.f32 0.03125, %v619_v1 }
 0x2ad   : > { %v652_v20 = vadd.f32 1e-05, %v636_v38 }
 0x2af   : > { %1560 = vrsqrt.f32 %v652_v20  ;;  %vm800_vm14 = vweird.f32 %v652_v20 }
 0x2b2   : > { %v621_v39 = vpop.xlane.xlu1 %620 }
 0x2b3   : > { %v637_v40 = vmul.f32 0.03125, %v621_v39 }
 0x2b5   : > { %v1561_v41 = vpop.eup %1560  ;;  %v653_v42 = vadd.f32 1e-05, %v637_v40 }
 0x2b6   : > { %v795_v43 = vmul.f32 %v1561_v41, %v652_v20  ;;  %vm801_vm13 = vweird.f32 %v1561_v41 }
 0x2b7   : > { %1562 = vrsqrt.f32 %v653_v42  ;;  %vm802_vm15 = vmor %vm800_vm14, %vm801_vm13  ;;  %vm810_vm2 = vweird.f32 %v653_v42 }
 0x2b8   : > { %v796_v24 = vmul.f32 %v1561_v41, %v795_v43 }
 0x2ba   : > { %v797_v44 = vmul.f32 0.5, %v796_v24  ;;  %v2139_v24 = vadd.f32 %v1529_v58, %v2088_v30 }
 0x2bc   : > { %v798_v47 = vsub.f32 1.5, %v797_v44 }
 0x2bd   : > { %v1563_v45 = vpop.eup %1562 }
 0x2be   : > { %v799_v48 = vmul.f32 %v1561_v41, %v798_v47  ;;  %v805_v51 = vmul.f32 %v1563_v45, %v653_v42  ;;  %vm811_vm1 = vweird.f32 %v1563_v45 }
 0x2bf   : > { %vm812_vm3 = vmor %vm810_vm2, %vm811_vm1 }
 0x2c0   : > { %v806_v53 = vmul.f32 %v1563_v45, %v805_v51  ;;  %v803_v52 = vsel %vm802_vm15, %v1561_v41, %v799_v48 }
 0x2c1   : > { %v828_v55 = vmul.f32 %v803_v52, %v2054_v46 }
 0x2c2   : > { %v807_v10 = vmul.f32 0.5, %v806_v53 }
 0x2c3   : > { %v944_v56 = vpop.f32.mrf.mxu1  ;;  %v848_v8 = vmul.f32 %v1990_v27, %v828_v55  ;;  %v2148_v55 = vadd.f32 %v1529_v58, %v2090_v35 }
 0x2c4   : > { %v808_v57 = vsub.f32 1.5, %v807_v10 }
 0x2c5   : > { %v868_v60 = vadd.f32 %v1996_v34, %v848_v8 }
 0x2c6   : > { %v809_v28 = vmul.f32 %v1563_v45, %v808_v57 }
 0x2c7   : > { %v884_v61 = vmax.f32 %v868_v60, 0.0 }
 0x2c8   : > { %v813_v62 = vsel %vm812_vm3, %v1563_v45, %v809_v28 }
 0x2c9   : > { %964 = vmatmul.f32.gmra.mxu1 %v884_v61  ;;  %v829_v32 = vmul.f32 %v813_v62, %v2060_v25 }
 0x2cb   : > { %v947_v63 = vpop.f32.mrf.mxu1  ;;  %v849_v0 = vmul.f32 %v1990_v27, %v829_v32  ;;  %v2108_v27 = vadd.f32 %v1529_v58, %v944_v56 }
 0x2cc   : > { %v948_v17 = vadd.f32 %v1529_v58, %v947_v63 }
 0x2cd   : > { %v869_v46 = vadd.f32 %v1996_v34, %v849_v0  ;;  %v2111_v34 = vadd.f32 %v1529_v58, %v935_v37  ;;  %v2125_v37 = vadd.f32 %v1529_v58, %v2086_v2 }
 0x2cf   : > { %v885_v4 = vmax.f32 %v869_v46, 0.0 }
 0x2d1   : > { %967 = vmatmul.f32.gmra.mxu1 %v885_v4 }
 0x2d3   : > { %v950_v6 = vpop.f32.mrf.mxu1 }
 0x2d4   : > { %v951_v19 = vadd.f32 %v1529_v58, %v950_v6 }
 0x2db   : > { %v953_v5 = vpop.f32.mrf.mxu1 }
 0x2dc   : > { %v2105_v13 = vadd.f32 %v1529_v58, %v953_v5 }
 0x2e3   : > { %v956_v7 = vpop.f32.mrf.mxu1 }
 0x2e4   : > { %v957_v15 = vadd.f32 %v1529_v58, %v956_v7 }
 0x2eb   : > { %v959_v50 = vpop.f32.mrf.mxu1 }
 0x2ec   : > { %v960_v33 = vadd.f32 %v1529_v58, %v959_v50 }
 0x2f3   : > { %v962_v11 = vpop.f32.mrf.mxu1 }
 0x2f4   : > { %v963_v12 = vadd.f32 %v1529_v58, %v962_v11 }
 0x2f6   : > { %997 = vadd.xlane.f32.xlu1 %v963_v12 }
 0x2fe   : > { %991 = vadd.xlane.f32.xlu1 %v2105_v13 }
 0x306   : > { %985 = vadd.xlane.f32.xlu1 %v2108_v27 }
 0x30e   : > { %979 = vadd.xlane.f32.xlu1 %v2111_v34 }
 0x346   : > { %v965_v25 = vpop.f32.mrf.mxu1 }
 0x347   : > { %v966_v14 = vadd.f32 %v1529_v58, %v965_v25 }
 0x349   : > { %999 = vadd.xlane.f32.xlu0 %v966_v14 }
 0x34e   : > { %v968_v16 = vpop.f32.mrf.mxu1 }
 0x34f   : > { %v969_v18 = vadd.f32 %v1529_v58, %v968_v16 }
 0x351   : > { %1001 = vadd.xlane.f32.xlu2 %v969_v18  ;;  %993 = vadd.xlane.f32.xlu0 %v957_v15 }
 0x359   : > { %995 = vadd.xlane.f32.xlu2 %v960_v33  ;;  %987 = vadd.xlane.f32.xlu0 %v948_v17 }
 0x361   : > { %989 = vadd.xlane.f32.xlu2 %v951_v19  ;;  %981 = vadd.xlane.f32.xlu0 %v939_v3 }
 0x369   : > { %v998_v22 = vpop.xlane.xlu1 %997  ;;  %983 = vadd.xlane.f32.xlu2 %v942_v36  ;;  %977 = vadd.xlane.f32.xlu0 %v2116_v21 }
 0x36a   : > { %v1016_v59 = vmul.f32 0.03125, %v998_v22 }
 0x36c   : > { %v2119_v26 = vsub.f32 %v963_v12, %v1016_v59 }
 0x36e   : > { %v1048_v29 = vsel %vm555_vm0, %v2119_v26, 0.0 }
 0x36f   : > { %v1064_v54 = vmul.f32 %v1048_v29, %v1048_v29 }
 0x371   : > { %1093 = vadd.xlane.f32.xlu0 %v1064_v54  ;;  %v992_v53 = vpop.xlane.xlu1 %991 }
 0x372   : > { %v1013_v28 = vmul.f32 0.03125, %v992_v53 }
 0x374   : > { %v2167_v6 = vsub.f32 %v2105_v13, %v1013_v28 }
 0x376   : > { %v1045_v16 = vsel %vm555_vm0, %v2167_v6, 0.0 }
 0x379   : > { %971 = vadd.xlane.f32.xlu0 %v2125_v37  ;;  %v986_v0 = vpop.xlane.xlu1 %985 }
 0x37a   : > { %v1010_v12 = vmul.f32 0.03125, %v986_v0 }
 0x3bc   : > { %v1000_v23 = vpop.xlane.xlu0 %999 }
 0x3bd   : > { %v1017_v1 = vmul.f32 0.03125, %v1000_v23 }
 0x3bf   : > { %v2128_v38 = vsub.f32 %v966_v14, %v1017_v1 }
 0x3c1   : > { %v1049_v20 = vsel %vm555_vm0, %v2128_v38, 0.0 }
 0x3c2   : > { %v1065_v9 = vmul.f32 %v1049_v20, %v1049_v20 }
 0x3c4   : > { %v1002_v39 = vpop.xlane.xlu2 %1001  ;;  %1095 = vadd.xlane.f32.xlu1 %v1065_v9  ;;  %v994_v40 = vpop.xlane.xlu0 %993 }
 0x3c5   : > { %v1018_v41 = vmul.f32 0.03125, %v1002_v39  ;;  %v1014_v43 = vmul.f32 0.03125, %v994_v40 }
 0x3c7   : > { %v2133_v42 = vsub.f32 %v969_v18, %v1018_v41  ;;  %v2141_v31 = vsub.f32 %v957_v15, %v1014_v43  ;;  %v1061_v18 = vmul.f32 %v1045_v16, %v1045_v16 }
 0x3c9   : > { %v1050_v2 = vsel %vm555_vm0, %v2133_v42, 0.0  ;;  %v1046_v51 = vsel %vm555_vm0, %v2141_v31, 0.0 }
 0x3ca   : > { %v1066_v44 = vmul.f32 %v1050_v2, %v1050_v2  ;;  %v1062_v30 = vmul.f32 %v1046_v51, %v1046_v51 }
 0x3cc   : > { %1097 = vadd.xlane.f32.xlu2 %v1066_v44  ;;  %v996_v47 = vpop.xlane.xlu2 %995  ;;  %973 = vadd.xlane.f32.xlu1 %v2139_v24  ;;  %v988_v45 = vpop.xlane.xlu0 %987 }
 0x3cd   : > { %v1015_v48 = vmul.f32 0.03125, %v996_v47  ;;  %v1011_v52 = vmul.f32 0.03125, %v988_v45 }
 0x3cf   : > { %v2150_v10 = vsub.f32 %v960_v33, %v1015_v48  ;;  %v2152_v56 = vsub.f32 %v948_v17, %v1011_v52  ;;  %v2183_v33 = vsub.f32 %v2108_v27, %v1010_v12 }
 0x3d1   : > { %v1047_v62 = vsel %vm555_vm0, %v2150_v10, 0.0  ;;  %v1043_v32 = vsel %vm555_vm0, %v2152_v56, 0.0  ;;  %v1042_v29 = vsel %vm555_vm0, %v2183_v33, 0.0 }
 0x3d2   : > { %v1063_v46 = vmul.f32 %v1047_v62, %v1047_v62  ;;  %v1059_v5 = vmul.f32 %v1043_v32, %v1043_v32  ;;  %v1058_v27 = vmul.f32 %v1042_v29, %v1042_v29 }
 0x3d4   : > { %975 = vadd.xlane.f32.xlu2 %v2148_v55  ;;  %v990_v8 = vpop.xlane.xlu2 %989  ;;  %1089 = vadd.xlane.f32.xlu1 %v1062_v30  ;;  %v982_v57 = vpop.xlane.xlu0 %981 }
 0x3d5   : > { %v1012_v60 = vmul.f32 0.03125, %v990_v8  ;;  %v1008_v35 = vmul.f32 0.03125, %v982_v57 }
 0x3d7   : > { %v2155_v61 = vsub.f32 %v951_v19, %v1012_v60  ;;  %v2169_v7 = vsub.f32 %v939_v3, %v1008_v35 }
 0x3d9   : > { %v1044_v63 = vsel %vm555_vm0, %v2155_v61, 0.0  ;;  %v1040_v13 = vsel %vm555_vm0, %v2169_v7, 0.0 }
 0x3da   : > { %v1060_v4 = vmul.f32 %v1044_v63, %v1044_v63  ;;  %v1056_v19 = vmul.f32 %v1040_v13, %v1040_v13 }
 0x3dc   : > { %1091 = vadd.xlane.f32.xlu2 %v1063_v46  ;;  %v984_v50 = vpop.xlane.xlu2 %983  ;;  %1085 = vadd.xlane.f32.xlu0 %v1060_v4  ;;  %v978_v58 = vpop.xlane.xlu0 %977 }
 0x3dd   : > { %v1009_v11 = vmul.f32 0.03125, %v984_v50  ;;  %1083 = vadd.xlane.f32.xlu1 %v1059_v5  ;;  %v1006_v14 = vmul.f32 0.03125, %v978_v58 }
 0x3df   : > { %v2171_v25 = vsub.f32 %v942_v36, %v1009_v11  ;;  %v2186_v3 = vsub.f32 %v2116_v21, %v1006_v14  ;;  %v980_v36 = vpop.xlane.xlu1 %979 }
 0x3e0   : > { %v1007_v59 = vmul.f32 0.03125, %v980_v36 }
 0x3e1   : > { %v1041_v15 = vsel %vm555_vm0, %v2171_v25, 0.0  ;;  %v1038_v54 = vsel %vm555_vm0, %v2186_v3, 0.0 }
 0x3e2   : > { %v1057_v17 = vmul.f32 %v1041_v15, %v1041_v15  ;;  %v1054_v23 = vmul.f32 %v1038_v54, %v1038_v54  ;;  %v2195_v21 = vsub.f32 %v2111_v34, %v1007_v59 }
 0x3e4   : > { %1087 = vadd.xlane.f32.xlu2 %v1061_v18  ;;  %1079 = vadd.xlane.f32.xlu0 %v1057_v17  ;;  %v1094_v22 = vpop.xlane.xlu0 %1093  ;;  %v1039_v39 = vsel %vm555_vm0, %v2195_v21, 0.0 }
 0x3e5   : > { %1077 = vadd.xlane.f32.xlu1 %v1056_v19  ;;  %v1055_v41 = vmul.f32 %v1039_v39, %v1039_v39  ;;  %v1112_v34 = vmul.f32 0.03125, %v1094_v22 }
 0x3e7   : > { %v2206_v2 = vadd.f32 1e-05, %v1112_v34 }
 0x3e9   : > { %1564 = vrsqrt.f32 %v2206_v2  ;;  %vm1267_vm10 = vweird.f32 %v2206_v2 }
 0x3ec   : > { %1081 = vadd.xlane.f32.xlu2 %v1058_v27  ;;  %1073 = vadd.xlane.f32.xlu0 %v1054_v23  ;;  %v972_v1 = vpop.xlane.xlu0 %971 }
 0x3ed   : > { %v1003_v20 = vmul.f32 0.03125, %v972_v1 }
 0x3ef   : > { %v2198_v9 = vsub.f32 %v2125_v37, %v1003_v20  ;;  %v2209_v45 = vpop.eup %1564 }
 0x3f0   : > { %v1262_v8 = vmul.f32 %v2209_v45, %v2206_v2  ;;  %vm1268_vm5 = vweird.f32 %v2209_v45 }
 0x3f1   : > { %v1035_v40 = vsel %vm555_vm0, %v2198_v9, 0.0  ;;  %vm2260_vm11 = vmor %vm1267_vm10, %vm1268_vm5 }
 0x3f2   : > { %v1051_v43 = vmul.f32 %v1035_v40, %v1035_v40  ;;  %v1263_v63 = vmul.f32 %v2209_v45, %v1262_v8 }
 0x3f4   : > { %1075 = vadd.xlane.f32.xlu2 %v1055_v41  ;;  %1067 = vadd.xlane.f32.xlu0 %v1051_v43  ;;  %v1264_v58 = vmul.f32 0.5, %v1263_v63  ;;  %v2279_v63 = vld [vmem:[%s2471_s8] ss:$0 sm:$0xff] }
 0x3f6   : > { %v1265_v17 = vsub.f32 1.5, %v1264_v58 }
 0x3f8   : > { %v1266_v1 = vmul.f32 %v2209_v45, %v1265_v17 }
 0x3fa   : > { %v1270_v8 = vsel %vm2260_vm11, %v2209_v45, %v1266_v1 }
 0x3fb   : > { %v1304_v45 = vmul.f32 %v1270_v8, %v2119_v26 }
 0x437   : > { %v1096_v44 = vpop.xlane.xlu1 %1095 }
 0x438   : > { %v1113_v47 = vmul.f32 0.03125, %v1096_v44 }
 0x43a   : > { %v1129_v37 = vadd.f32 1e-05, %v1113_v47 }
 0x43c   : > { %1566 = vrsqrt.f32 %v1129_v37 }
 0x43f   : > { %v1098_v48 = vpop.xlane.xlu2 %1097  ;;  %v974_v51 = vpop.xlane.xlu1 %973 }
 0x440   : > { %v1114_v53 = vmul.f32 0.03125, %v1098_v48  ;;  %v1004_v52 = vmul.f32 0.03125, %v974_v51 }
 0x442   : > { %v2211_v30 = vpop.eup %1566  ;;  %v1130_v57 = vadd.f32 1e-05, %v1114_v53  ;;  %v2216_v60 = vsub.f32 %v2139_v24, %v1004_v52  ;;  %v2269_v53 = vld [vmem:[%s2470_s7] ss:$0 sm:$0xff] }
 0x443   : > { %v1272_v28 = vmul.f32 %v2211_v30, %v1129_v37  ;;  %vm1278_vm4 = vweird.f32 %v2211_v30 }
 0x444   : > { %1568 = vrsqrt.f32 %v1130_v57  ;;  %v1036_v62 = vsel %vm555_vm0, %v2216_v60, 0.0  ;;  %vm1287_vm8 = vweird.f32 %v1130_v57 }
 0x445   : > { %v1273_v35 = vmul.f32 %v2211_v30, %v1272_v28  ;;  %v1052_v32 = vmul.f32 %v1036_v62, %v1036_v62 }
 0x447   : > { %v976_v0 = vpop.xlane.xlu2 %975  ;;  %1069 = vadd.xlane.f32.xlu2 %v1052_v32  ;;  %v1090_v46 = vpop.xlane.xlu1 %1089  ;;  %v1274_v4 = vmul.f32 0.5, %v1273_v35 }
 0x448   : > { %v1005_v5 = vmul.f32 0.03125, %v976_v0  ;;  %v1110_v50 = vmul.f32 0.03125, %v1090_v46 }
 0x449   : > { %v1275_v16 = vsub.f32 1.5, %v1274_v4 }
 0x44a   : > { %v1569_v24 = vpop.eup %1568  ;;  %v2225_v11 = vsub.f32 %v2148_v55, %v1005_v5  ;;  %v2227_v12 = vadd.f32 1e-05, %v1110_v50 }
 0x44b   : > { %v1282_v14 = vmul.f32 %v1569_v24, %v1130_v57  ;;  %v1276_v55 = vmul.f32 %v2211_v30, %v1275_v16  ;;  %vm1288_vm6 = vweird.f32 %v1569_v24 }
 0x44c   : > { %1570 = vrsqrt.f32 %v2227_v12  ;;  %v1037_v13 = vsel %vm555_vm0, %v2225_v11, 0.0  ;;  %vm1277_vm0 = vweird.f32 %v1129_v37  ;;  %vm1289_vm9 = vmor %vm1287_vm8, %vm1288_vm6  ;;  %vm1247_vm13 = vweird.f32 %v2227_v12 }
 0x44d   : > { %v1283_v15 = vmul.f32 %v1569_v24, %v1282_v14  ;;  %v1053_v18 = vmul.f32 %v1037_v13, %v1037_v13  ;;  %vm2243_vm7 = vmor %vm1277_vm0, %vm1278_vm4 }
 0x44e   : > { %v1280_v44 = vsel %vm2243_vm7, %v2211_v30, %v1276_v55 }
 0x44f   : > { %v1284_v19 = vmul.f32 0.5, %v1283_v15  ;;  %v1092_v36 = vpop.xlane.xlu2 %1091  ;;  %1071 = vadd.xlane.f32.xlu1 %v1053_v18  ;;  %v1086_v22 = vpop.xlane.xlu0 %1085  ;;  %v1305_v30 = vmul.f32 %v1280_v44, %v2128_v38  ;;  %v1324_v18 = vmul.f32 %v2269_v53, %v1304_v45 }
 0x450   : > { %v1111_v59 = vmul.f32 0.03125, %v1092_v36  ;;  %v1084_v29 = vpop.xlane.xlu1 %1083  ;;  %v1108_v54 = vmul.f32 0.03125, %v1086_v22 }
 0x451   : > { %v1285_v27 = vsub.f32 1.5, %v1284_v19  ;;  %v1107_v49 = vmul.f32 0.03125, %v1084_v29  ;;  %v1325_v58 = vmul.f32 %v2269_v53, %v1305_v30  ;;  %v1344_v44 = vadd.f32 %v2279_v63, %v1324_v18 }
 0x452   : > { %v2236_v23 = vpop.eup %1570  ;;  %v2239_v20 = vadd.f32 1e-05, %v1111_v59  ;;  %v2241_v39 = vadd.f32 1e-05, %v1108_v54 }
 0x453   : > { %v1242_v41 = vmul.f32 %v2236_v23, %v2227_v12  ;;  %v2249_v43 = vadd.f32 1e-05, %v1107_v49  ;;  %v1286_v34 = vmul.f32 %v1569_v24, %v1285_v27  ;;  %v1345_v59 = vadd.f32 %v2279_v63, %v1325_v58 }
 0x454   : > { %1572 = vrsqrt.f32 %v2239_v20  ;;  %vm1248_vm12 = vweird.f32 %v2236_v23  ;;  %vm1257_vm1 = vweird.f32 %v2239_v20  ;;  %vm1227_vm5 = vweird.f32 %v2241_v39 }
 0x455   : > { %v1243_v47 = vmul.f32 %v2236_v23, %v1242_v41  ;;  %1574 = vrsqrt.f32 %v2249_v43  ;;  %v1290_v37 = vsel %vm1289_vm9, %v1569_v24, %v1286_v34  ;;  %vm2318_vm14 = vmor %vm1247_vm13, %vm1248_vm12  ;;  %vm1217_vm9 = vweird.f32 %v2249_v43 }
 0x456   : > { %1576 = vrsqrt.f32 %v2241_v39  ;;  %v1306_v51 = vmul.f32 %v1290_v37, %v2133_v42 }
 0x457   : > { %v1088_v2 = vpop.xlane.xlu2 %1087  ;;  %v1080_v52 = vpop.xlane.xlu0 %1079  ;;  %v1244_v57 = vmul.f32 0.5, %v1243_v47 }
 0x458   : > { %v1109_v28 = vmul.f32 0.03125, %v1088_v2  ;;  %v1078_v62 = vpop.xlane.xlu1 %1077  ;;  %v1105_v35 = vmul.f32 0.03125, %v1080_v52  ;;  %v1326_v32 = vmul.f32 %v2269_v53, %v1306_v51  ;;  %v1361_v2 = vmax.f32 %v1345_v59, 0.0 }
 0x459   : > { %v1104_v42 = vmul.f32 0.03125, %v1078_v62  ;;  %v1245_v16 = vsub.f32 1.5, %v1244_v57 }
 0x45a   : > { %v2281_v0 = vpop.eup %1572  ;;  %v2283_v46 = vadd.f32 1e-05, %v1109_v28  ;;  %v2285_v38 = vadd.f32 1e-05, %v1105_v35  ;;  %v1346_v24 = vadd.f32 %v2279_v63, %v1326_v32  ;;  %v1360_v35 = vmax.f32 %v1344_v44, 0.0 }
 0x45b   : > { %v2288_v4 = vpop.eup %1574  ;;  %v1252_v5 = vmul.f32 %v2281_v0, %v2239_v20  ;;  %v2292_v50 = vadd.f32 1e-05, %v1104_v42  ;;  %v1246_v29 = vmul.f32 %v2236_v23, %v1245_v16  ;;  %vm1258_vm15 = vweird.f32 %v2281_v0 }
 0x45c   : > { %v2296_v14 = vpop.eup %1576  ;;  %1578 = vrsqrt.f32 %v2283_v46  ;;  %v1212_v26 = vmul.f32 %v2288_v4, %v2249_v43  ;;  %v1362_v36 = vmax.f32 %v1346_v24, 0.0  ;;  %vm1259_vm2 = vmor %vm1257_vm1, %vm1258_vm15  ;;  %vm1237_vm0 = vweird.f32 %v2283_v46 }
 0x45d   : > { %v1253_v13 = vmul.f32 %v2281_v0, %v1252_v5  ;;  %v1222_v15 = vmul.f32 %v2296_v14, %v2241_v39  ;;  %1580 = vrsqrt.f32 %v2292_v50  ;;  %v1250_v30 = vsel %vm2318_vm14, %v2236_v23, %v1246_v29 }
 0x45e   : > { %1582 = vrsqrt.f32 %v2285_v38  ;;  %v1213_v1 = vmul.f32 %v2288_v4, %v1212_v26  ;;  %1371 = vmatpush.xpose.msra.mxu2 %v1362_v36  ;;  %v1302_v5 = vmul.f32 %v1250_v30, %v2141_v31  ;;  %vm1228_vm3 = vweird.f32 %v2296_v14 }
 0x45f   : > { %v1254_v17 = vmul.f32 0.5, %v1253_v13  ;;  %v1223_v19 = vmul.f32 %v2296_v14, %v1222_v15  ;;  %v1082_v22 = vpop.xlane.xlu2 %1081  ;;  %v1074_v55 = vpop.xlane.xlu0 %1073  ;;  %vm2351_vm6 = vmor %vm1227_vm5, %vm1228_vm3  ;;  %vm1218_vm7 = vweird.f32 %v2288_v4  ;;  %vm1197_vm15 = vweird.f32 %v2285_v38 }
 0x460   : > { %v1106_v54 = vmul.f32 0.03125, %v1082_v22  ;;  %v1102_v27 = vmul.f32 0.03125, %v1074_v55  ;;  %v1214_v8 = vmul.f32 0.5, %v1213_v1  ;;  %vm2369_vm10 = vmor %vm1217_vm9, %vm1218_vm7  ;;  %vm1187_vm3 = vweird.f32 %v2292_v50 }
 0x461   : > { %v1255_v49 = vsub.f32 1.5, %v1254_v17  ;;  %v1224_v40 = vmul.f32 0.5, %v1223_v19 }
 0x462   : > { %v1579_v41 = vpop.eup %1578  ;;  %v2313_v34 = vadd.f32 1e-05, %v1106_v54  ;;  %v2329_v12 = vadd.f32 1e-05, %v1102_v27  ;;  %1372 = vmatpush.xpose.msra.mxu2 %v1361_v2  ;;  %v1215_v16 = vsub.f32 1.5, %v1214_v8 }
 0x463   : > { %v2316_v47 = vpop.eup %1580  ;;  %v1256_v48 = vmul.f32 %v2281_v0, %v1255_v49  ;;  %v1232_v51 = vmul.f32 %v1579_v41, %v2283_v46  ;;  %v1225_v57 = vsub.f32 1.5, %v1224_v40  ;;  %vm1238_vm4 = vweird.f32 %v1579_v41 }
 0x464   : > { %v2325_v52 = vpop.eup %1582  ;;  %1584 = vrsqrt.f32 %v2313_v34  ;;  %v1182_v20 = vmul.f32 %v2316_v47, %v2292_v50  ;;  %v1216_v55 = vmul.f32 %v2288_v4, %v1215_v16  ;;  %vm1239_vm8 = vmor %vm1237_vm0, %vm1238_vm4  ;;  %vm1207_vm13 = vweird.f32 %v2313_v34 }
 0x465   : > { %v1233_v28 = vmul.f32 %v1579_v41, %v1232_v51  ;;  %v1192_v62 = vmul.f32 %v2325_v52, %v2285_v38  ;;  %v1260_v45 = vsel %vm1259_vm2, %v2281_v0, %v1256_v48  ;;  %1586 = vrsqrt.f32 %v2329_v12 }
 0x466   : > { %v1303_v58 = vmul.f32 %v1260_v45, %v2150_v10  ;;  %v1226_v13 = vmul.f32 %v2296_v14, %v1225_v57  ;;  %1373 = vmatpush.xpose.msra.mxu2 %v1360_v35  ;;  %v1322_v10 = vmul.f32 %v2269_v53, %v1302_v5  ;;  %v1183_v36 = vmul.f32 %v2316_v47, %v1182_v20 }
 0x467   : > { %v1234_v32 = vmul.f32 0.5, %v1233_v28  ;;  %v1076_v42 = vpop.xlane.xlu2 %1075  ;;  %v1193_v23 = vmul.f32 %v2325_v52, %v1192_v62  ;;  %v1220_v2 = vsel %vm2369_vm10, %v2288_v4, %v1216_v55  ;;  %vm1198_vm12 = vweird.f32 %v2325_v52  ;;  %v1068_v40 = vpop.xlane.xlu0 %1067 }
 0x468   : > { %v1103_v24 = vmul.f32 0.03125, %v1076_v42  ;;  %v1323_v31 = vmul.f32 %v2269_v53, %v1303_v58  ;;  %v1230_v59 = vsel %vm2351_vm6, %v2296_v14, %v1226_v13  ;;  %v1342_v49 = vadd.f32 %v2279_v63, %v1322_v10  ;;  %vm1199_vm2 = vmor %vm1197_vm15, %vm1198_vm12 }
 0x469   : > { %v1235_v26 = vsub.f32 1.5, %v1234_v32  ;;  %v1194_v22 = vmul.f32 0.5, %v1193_v23  ;;  %v1184_v44 = vmul.f32 0.5, %v1183_v36  ;;  %v1300_v14 = vmul.f32 %v1230_v59, %v2155_v61 }
 0x46a   : > { %v1585_v15 = vpop.eup %1584  ;;  %v2345_v18 = vadd.f32 1e-05, %v1103_v24  ;;  %v1343_v54 = vadd.f32 %v2279_v63, %v1323_v31  ;;  %v1358_v8 = vmax.f32 %v1342_v49, 0.0  ;;  %v1299_v62 = vmul.f32 %v1220_v2, %v2152_v56 }
 0x46b   : > { %v1236_v0 = vmul.f32 %v1579_v41, %v1235_v26  ;;  %v1202_v17 = vmul.f32 %v1585_v15, %v2313_v34  ;;  %v2363_v29 = vpop.eup %1586  ;;  %v1195_v37 = vsub.f32 1.5, %v1194_v22  ;;  %vm1208_vm11 = vweird.f32 %v1585_v15 }
 0x46c   : > { %1588 = vrsqrt.f32 %v2345_v18  ;;  %v1359_v48 = vmax.f32 %v1343_v54, 0.0  ;;  %v1320_v28 = vmul.f32 %v2269_v53, %v1300_v14  ;;  %v1185_v35 = vsub.f32 1.5, %v1184_v44  ;;  %vm1209_vm14 = vmor %vm1207_vm13, %vm1208_vm11 }
 0x46d   : > { %v1203_v39 = vmul.f32 %v1585_v15, %v1202_v17  ;;  %v1240_v46 = vsel %vm1239_vm8, %v1579_v41, %v1236_v0  ;;  %v1162_v41 = vmul.f32 %v2363_v29, %v2329_v12  ;;  %v1196_v4 = vmul.f32 %v2325_v52, %v1195_v37 }
 0x46e   : > { %v1301_v1 = vmul.f32 %v1240_v46, %v2167_v6  ;;  %1374 = vmatpush.xpose.msra.mxu2 %v1359_v48  ;;  %vm1188_vm1 = vweird.f32 %v2316_v47  ;;  %v1340_v56 = vadd.f32 %v2279_v63, %v1320_v28  ;;  %v1319_v5 = vmul.f32 %v2269_v53, %v1299_v62 }
 0x46f   : > { %v1204_v27 = vmul.f32 0.5, %v1203_v39  ;;  %v1163_v32 = vmul.f32 %v2363_v29, %v1162_v41  ;;  %v1186_v24 = vmul.f32 %v2316_v47, %v1185_v35  ;;  %v1200_v13 = vsel %vm1199_vm2, %v2325_v52, %v1196_v4  ;;  %vm1189_vm4 = vmor %vm1187_vm3, %vm1188_vm1  ;;  %v1364_v4 = vld [vmem:[#allocation2] sm:$0x1] }
 0x470   : > { %v1321_v43 = vmul.f32 %v2269_v53, %v1301_v1  ;;  %v1356_v38 = vmax.f32 %v1340_v56, 0.0  ;;  %v1339_v26 = vadd.f32 %v2279_v63, %v1319_v5  ;;  %v1297_v31 = vmul.f32 %v1200_v13, %v2171_v25 }
 0x471   : > { %v1205_v51 = vsub.f32 1.5, %v1204_v27  ;;  %v1164_v58 = vmul.f32 0.5, %v1163_v32  ;;  %vm1177_vm6 = vweird.f32 %v2345_v18  ;;  %vm1168_vm7 = vweird.f32 %v2363_v29 }
 0x472   : > { %v1589_v6 = vpop.eup %1588  ;;  %v1341_v57 = vadd.f32 %v2279_v63, %v1321_v43  ;;  %1375 = vmatpush.xpose.msra.mxu2 %v1358_v8  ;;  %v1355_v52 = vmax.f32 %v1339_v26, 0.0  ;;  %v1317_v10 = vmul.f32 %v2269_v53, %v1297_v31  ;;  %vm1167_vm8 = vweird.f32 %v2329_v12 }
 0x473   : > { %v1206_v30 = vmul.f32 %v1585_v15, %v1205_v51  ;;  %v1172_v61 = vmul.f32 %v1589_v6, %v2345_v18  ;;  %v1165_v0 = vsub.f32 1.5, %v1164_v58  ;;  %vm1178_vm5 = vweird.f32 %v1589_v6  ;;  %vm1169_vm9 = vmor %vm1167_vm8, %vm1168_vm7 }
 0x474   : > { %v1357_v42 = vmax.f32 %v1341_v57, 0.0  ;;  %vm1179_vm0 = vmor %vm1177_vm6, %vm1178_vm5  ;;  %v1337_v18 = vadd.f32 %v2279_v63, %v1317_v10  ;;  %v1099_v44 = vmul.f32 0.03125, %v1068_v40 }
 0x475   : > { %v1173_v20 = vmul.f32 %v1589_v6, %v1172_v61  ;;  %v1210_v45 = vsel %vm1209_vm14, %v1585_v15, %v1206_v30  ;;  %v1166_v36 = vmul.f32 %v2363_v29, %v1165_v0 }
 0x476   : > { %v1298_v23 = vmul.f32 %v1210_v45, %v2183_v33  ;;  %1376 = vmatpush.xpose.msra.mxu2 %v1357_v42  ;;  %v1190_v33 = vsel %vm1189_vm4, %v2316_v47, %v1186_v24  ;;  %v1115_v37 = vadd.f32 1e-05, %v1099_v44 }
 0x477   : > { %v1174_v34 = vmul.f32 0.5, %v1173_v20  ;;  %v1296_v19 = vmul.f32 %v1190_v33, %v2169_v7  ;;  %v1170_v39 = vsel %vm1169_vm9, %v2363_v29, %v1166_v36  ;;  %v1353_v7 = vmax.f32 %v1337_v18, 0.0  ;;  %v1363_v36 = vld [vmem:[%s2472_s9] sm:$0x1] }
 0x478   : > { %v1318_v15 = vmul.f32 %v2269_v53, %v1298_v23  ;;  %v1294_v46 = vmul.f32 %v1170_v39, %v2186_v3  ;;  %1590 = vrsqrt.f32 %v1115_v37  ;;  %v1660_v20 = vmov 0  }
 0x479   : > { %v1175_v16 = vsub.f32 1.5, %v1174_v34  ;;  %v1316_v22 = vmul.f32 %v2269_v53, %v1296_v19  ;;  %1524 = vset.pattern.permute.xlu1 %v1660_v20  ;;  %1525 = vset.pattern.permute.xlu0 %v1660_v20  ;;  %vm1137_vm15 = vweird.f32 %v1115_v37 }
 0x47a   : > { %1377 = vmatpush.xpose.msra.mxu2 %v1356_v38  ;;  %v1338_v50 = vadd.f32 %v2279_v63, %v1318_v15  ;;  %v1314_v49 = vmul.f32 %v2269_v53, %v1294_v46  ;;  %1367 = vperm.xlu1 %1524, %v1364_v4  }
 0x47b   : > { %v1176_v17 = vmul.f32 %v1589_v6, %v1175_v16  ;;  %v1336_v59 = vadd.f32 %v2279_v63, %v1316_v22 }
 0x47c   : > { %v1354_v47 = vmax.f32 %v1338_v50, 0.0 }
 0x47d   : > { %v1180_v25 = vsel %vm1179_vm0, %v1589_v6, %v1176_v17  ;;  %v1352_v12 = vmax.f32 %v1336_v59, 0.0 }
 0x47e   : > { %1378 = vmatpush.xpose.msra.mxu2 %v1355_v52  ;;  %v1295_v55 = vmul.f32 %v1180_v25, %v2195_v21  ;;  %v1334_v21 = vadd.f32 %v2279_v63, %v1314_v49  ;;  %v1591_v51 = vpop.eup %1590 }
 0x47f   : > { %v1132_v2 = vmul.f32 %v1591_v51, %v1115_v37  ;;  %vm1138_vm12 = vweird.f32 %v1591_v51 }
 0x480   : > { %v1315_v54 = vmul.f32 %v2269_v53, %v1295_v55  ;;  %v1350_v29 = vmax.f32 %v1334_v21, 0.0  ;;  %vm1139_vm1 = vmor %vm1137_vm15, %vm1138_vm12 }
 0x481   : > { %v1133_v8 = vmul.f32 %v1591_v51, %v1132_v2 }
 0x482   : > { %1379 = vmatpush.xpose.msra.mxu2 %v1354_v47  ;;  %v1335_v27 = vadd.f32 %v2279_v63, %v1315_v54 }
 0x483   : > { %v1134_v62 = vmul.f32 0.5, %v1133_v8 }
 0x484   : > { %v1351_v1 = vmax.f32 %v1335_v27, 0.0 }
 0x485   : > { %v1135_v45 = vsub.f32 1.5, %v1134_v62 }
 0x486   : > { %1380 = vmatpush.xpose.msra.mxu2 %v1353_v7 }
 0x487   : > { %v1136_v23 = vmul.f32 %v1591_v51, %v1135_v45 }
 0x489   : > { %v1140_v26 = vsel %vm1139_vm1, %v1591_v51, %v1136_v23 }
 0x48a   : > { %1381 = vmatpush.xpose.msra.mxu2 %v1352_v12  ;;  %v1291_v17 = vmul.f32 %v1140_v26, %v2198_v9 }
 0x48c   : > { %v1311_v10 = vmul.f32 %v2269_v53, %v1291_v17 }
 0x48e   : > { %1382 = vmatpush.xpose.msra.mxu2 %v1351_v1  ;;  %v1331_v19 = vadd.f32 %v2279_v63, %v1311_v10 }
 0x492   : > { %1383 = vmatpush.xpose.msra.mxu2 %v1350_v29 }
 0x4ba   : > { %v1070_v48 = vpop.xlane.xlu2 %1069 }
 0x4bb   : > { %v1100_v14 = vmul.f32 0.03125, %v1070_v48 }
 0x4bd   : > { %v1116_v3 = vadd.f32 1e-05, %v1100_v14 }
 0x4bf   : > { %1592 = vrsqrt.f32 %v1116_v3  ;;  %vm1147_vm11 = vweird.f32 %v1116_v3 }
 0x4c2   : > { %v1072_v41 = vpop.xlane.xlu1 %1071 }
 0x4c3   : > { %v1101_v43 = vmul.f32 0.03125, %v1072_v41 }
 0x4c5   : > { %v1593_v6 = vpop.eup %1592  ;;  %v1117_v30 = vadd.f32 1e-05, %v1101_v43 }
 0x4c6   : > { %v1142_v61 = vmul.f32 %v1593_v6, %v1116_v3  ;;  %vm1148_vm10 = vweird.f32 %v1593_v6 }
 0x4c7   : > { %1594 = vrsqrt.f32 %v1117_v30  ;;  %vm1149_vm13 = vmor %vm1147_vm11, %vm1148_vm10  ;;  %vm1157_vm2 = vweird.f32 %v1117_v30 }
 0x4c8   : > { %v1143_v57 = vmul.f32 %v1593_v6, %v1142_v61 }
 0x4ca   : > { %v1144_v28 = vmul.f32 0.5, %v1143_v57 }
 0x4cc   : > { %v1145_v35 = vsub.f32 1.5, %v1144_v28 }
 0x4cd   : > { %v1595_v32 = vpop.eup %1594 }
 0x4ce   : > { %v1152_v42 = vmul.f32 %v1595_v32, %v1117_v30  ;;  %v1146_v34 = vmul.f32 %v1593_v6, %v1145_v35  ;;  %vm1158_vm14 = vweird.f32 %v1595_v32 }
 0x4cf   : > { %vm1159_vm3 = vmor %vm1157_vm2, %vm1158_vm14 }
 0x4d0   : > { %v1153_v56 = vmul.f32 %v1595_v32, %v1152_v42  ;;  %v1150_v58 = vsel %vm1149_vm13, %v1593_v6, %v1146_v34 }
 0x4d1   : > { %v1292_v13 = vmul.f32 %v1150_v58, %v2216_v60 }
 0x4d2   : > { %v1154_v5 = vmul.f32 0.5, %v1153_v56 }
 0x4d3   : > { %v1312_v0 = vmul.f32 %v2269_v53, %v1292_v13 }
 0x4d4   : > { %v1155_v24 = vsub.f32 1.5, %v1154_v5 }
 0x4d5   : > { %v1332_v50 = vadd.f32 %v2279_v63, %v1312_v0 }
 0x4d6   : > { %v1156_v16 = vmul.f32 %v1595_v32, %v1155_v24 }
 0x4d7   : > { %v1348_v60 = vmax.f32 %v1332_v50, 0.0 }
 0x4d8   : > { %v1160_v38 = vsel %vm1159_vm3, %v1595_v32, %v1156_v16 }
 0x4d9   : > { %v1293_v15 = vmul.f32 %v1160_v38, %v2225_v11  ;;  %v1347_v11 = vmax.f32 %v1331_v19, 0.0 }
 0x4db   : > { %v1313_v31 = vmul.f32 %v2269_v53, %v1293_v15 }
 0x4dd   : > { %v1333_v33 = vadd.f32 %v2279_v63, %v1313_v31 }
 0x4df   : > { %v1349_v52 = vmax.f32 %v1333_v33, 0.0 }
 0x4e1   : > { %1384 = vmatpush.xpose.msra.mxu2 %v1349_v52 }
 0x4e5   : > { %1385 = vmatpush.xpose.msra.mxu2 %v1348_v60 }
 0x4e9   : > { %1386 = vmatpush.xpose.msra.mxu2 %v1347_v11 }
 0x4ec   : > { %1387 = vmatmul.f32.vlgmr.msra.gmra.mxu2 %v1363_v36  ;;  %v1368_v9 = vpop.permute.xlu1 %1367 }
 0x4ed   : > { %v1370_v53 = vperm.slane %v1368_v9, 0 }
 0x56f   : > { %v1388_v63 = vpop.f32.mrf.mxu2 }
 0x570   : > { %v1389_v25 = vadd.f32 %v1388_v63, %v1370_v53 }
 0x572   : > { %1391 = vst [vmem:[%s381_s30] sm:$0x1] %v1389_v25 }
 0x573   : > { %1623 = shalt.err (!%p1620_p3)
}
 0x574   : > { %1484 = dma.vmem_to_hbm [thread:$0]  (%p1762_p5), %s1404_s12, 16, %s1406_s13, %s1393_s16  }
 0x575 PF: > { %p1490_p4 = scmp.ge.s32.totalorder %s1658_s22, 2  ;;  %s1417_s18 = sand.u32 1, %s1646_s19  }
 0x576   : > { %s1418_s26 = scalar_lea.sflag [#allocation4], %s1417_s18 }
 0x577   : > { %p1487_p7 = pnand %p1490_p4, %p1766_p6 }
 0x579   : > { %p1488_p8 = pneg %p1487_p7 }
 0x57b   : > { %1641 = dma.done.wait (%p1488_p8), %s1418_s26, 16  }
 0x57c   : > { %1643 = vsyncadd (%p1488_p8), %s1418_s26, 4294967280  ;;  %p23_p9 = scmp.ge.s32.totalorder %s1749_s24, 4   ;;  %s2489_s19 = smov %s1650_s20 }
 0x57d   : > { %s2490_s20 = smov %s1654_s21  ;;  %s2491_s21 = smov %s1760_s27 }
 0x57e   : > { %s2492_s22 = smov %s1749_s24  ;;  %25 = sbr.rel (!%p23_p9) target bundleno = 6 (0x6), region = 99 }
 0x583   :  { %1423 = vsyncpa [#allocation4], 1 }
 0x584   :  { %1425 = vsyncpa [#allocation4 + $0x1], 1 }

</bundles_post_ra>
